<compile_context>
chip_gen: v6e
topology: v6e:2x2x1
jax: 0.10.0
libtpu: 0.0.40
codegen_flags: <defaults>
</compile_context>

<pallas_src>
import jax
import jax.numpy as jnp
import numpy as np
from jax.experimental import pallas as pl
from jax.experimental.pallas import tpu as pltpu

# --- module hyper-parameters (small, TPU-friendly) ---
DIM_EMBEDDING = 128          # dim_embedding
NUM_HEADS = 4                # num_heads
SEQ_LEN = 128                # sequence_length (T)
BATCH = 2
HEAD_SIZE = DIM_EMBEDDING // NUM_HEADS
HIDDEN = 4 * DIM_EMBEDDING
LN_EPS = 1e-5
NEG_BIAS = -1e30             # finite "minus infinity" for the causal mask


def _layer_norm(v, gamma, beta):
    mu = jnp.mean(v, axis=-1, keepdims=True)
    var = jnp.mean((v - mu) ** 2, axis=-1, keepdims=True)
    return (v - mu) * jax.lax.rsqrt(var + LN_EPS) * gamma + beta


def block_kernel(x_ref, mask_ref,
                 wkv_ref, wproj_ref, bproj_ref,
                 g1_ref, b1_ref, g2_ref, b2_ref,
                 w1_ref, bb1_ref, w2_ref, bb2_ref,
                 o_ref):
    x = x_ref[0]                                   # (T, D) f32
    T, D = x.shape
    scale = D ** -0.5                              # C**-0.5 with C = dim_embedding
    bias = mask_ref[...]                           # (T, T) additive causal bias (0 / -1e30)

    # --- sub-layer 1: multi-head self-attention on LN1(x) ---
    xn1 = _layer_norm(x, g1_ref[0], b1_ref[0])     # f32
    xn1_b = xn1.astype(jnp.bfloat16)               # MXU operand

    attn = jnp.zeros((T, D), jnp.float32)
    for h in range(NUM_HEADS):                     # static unroll, hs = 32
        # q = k = v = xn1 @ W_h  (matches the PyTorch Head, which reuses self.key)
        kh = jnp.dot(xn1_b, wkv_ref[h],
                     preferred_element_type=jnp.float32)          # (T, hs) f32
        kh_b = kh.astype(jnp.bfloat16)
        q_b = (kh * scale).astype(jnp.bfloat16)    # fold scale into the narrow operand

        # scores: contract on the head dim of both operands (no explicit transpose)
        s = jax.lax.dot_general(q_b, kh_b, (((1,), (1,)), ((), ())),
                                preferred_element_type=jnp.float32)  # (T, T)
        s = s + bias
        s = s - jnp.max(s, axis=-1, keepdims=True)
        p = jnp.exp(s)
        denom = jnp.sum(p, axis=-1, keepdims=True)                 # (T, 1)

        # p @ v first, then normalize the (T, hs) result (4x less multiply volume),
        # reciprocal on the otherwise-idle EUP slot.
        out_h = jnp.dot(p.astype(jnp.bfloat16), kh_b,
                        preferred_element_type=jnp.float32)        # (T, hs)
        out_h = out_h * pl.reciprocal(denom, approx=True)

        # fold the output projection per head: attn += out_h @ Wproj[h*hs:(h+1)*hs, :]
        attn = attn + jnp.dot(out_h.astype(jnp.bfloat16), wproj_ref[h],
                              preferred_element_type=jnp.float32)  # (T, D)

    x1 = x + attn + bproj_ref[0]                   # first residual

    # --- sub-layer 2: feed-forward on LN2(x1) ---
    xn2 = _layer_norm(x1, g2_ref[0], b2_ref[0])
    h1 = jnp.dot(xn2.astype(jnp.bfloat16), w1_ref[...],
                 preferred_element_type=jnp.float32) + bb1_ref[0]
    h1 = jnp.maximum(h1, 0.0)                      # ReLU
    ff = jnp.dot(h1.astype(jnp.bfloat16), w2_ref[...],
                 preferred_element_type=jnp.float32) + bb2_ref[0]

    o_ref[0] = x1 + ff                             # second residual


def block_forward(x, params):
    B, T, D = x.shape
    hs = D // NUM_HEADS
    H = 4 * D
    wkv, wproj, bproj, g1, b1, g2, b2, w1, bb1, w2, bb2 = params

    # Wrapper-side layout plumbing (outside the kernel):
    #   * per-head weight slabs so the kernel never lane-slices activations,
    #   * bf16 casts for every matmul operand; biases & LN params stay f32.
    wkv_heads = (wkv.reshape(D, NUM_HEADS, hs)
                    .transpose(1, 0, 2)
                    .astype(jnp.bfloat16))                 # (H, D, hs)
    wproj_heads = wproj.reshape(NUM_HEADS, hs, D).astype(jnp.bfloat16)   # (H, hs, D)
    w1_b = w1.astype(jnp.bfloat16)
    w2_b = w2.astype(jnp.bfloat16)

    causal = jnp.tril(jnp.ones((T, T), bool))
    mask_bias = jnp.where(causal, 0.0, NEG_BIAS).astype(jnp.float32)     # (T, T)

    def full_spec(shape):
        return pl.BlockSpec(shape, lambda b, _s=len(shape): (0,) * _s)

    in_specs = [
        pl.BlockSpec((1, T, D), lambda b: (b, 0, 0)),  # x
        full_spec((T, T)),               # causal additive bias
        full_spec((NUM_HEADS, D, hs)),   # shared q/k/v per-head weights (bf16)
        full_spec((NUM_HEADS, hs, D)),   # per-head output-projection slabs (bf16)
        full_spec((1, D)),               # bproj
        full_spec((1, D)),               # ln1 gamma
        full_spec((1, D)),               # ln1 beta
        full_spec((1, D)),               # ln2 gamma
        full_spec((1, D)),               # ln2 beta
        full_spec((D, H)),               # ffn w1 (bf16)
        full_spec((1, H)),               # ffn b1
        full_spec((H, D)),               # ffn w2 (bf16)
        full_spec((1, D)),               # ffn b2
    ]

    return pl.pallas_call(
        block_kernel,
        out_shape=jax.ShapeDtypeStruct((B, T, D), jnp.float32),
        grid=(B,),
        in_specs=in_specs,
        out_specs=pl.BlockSpec((1, T, D), lambda b: (b, 0, 0)),
        compiler_params=pltpu.CompilerParams(dimension_semantics=("parallel",)),
    )(x, mask_bias, wkv_heads, wproj_heads, bproj,
      g1, b1, g2, b2, w1_b, bb1, w2_b, bb2)


def init_params(key, D, n_heads):
    H = 4 * D
    ks = jax.random.split(key, 6)
    scale = 0.02
    wkv = scale * jax.random.normal(ks[0], (D, D), jnp.float32)   # heads concat on cols
    wproj = scale * jax.random.normal(ks[1], (D, D), jnp.float32)
    bproj = scale * jax.random.normal(ks[2], (1, D), jnp.float32)
    g1 = jnp.ones((1, D), jnp.float32)
    b1 = jnp.zeros((1, D), jnp.float32)
    g2 = jnp.ones((1, D), jnp.float32)
    b2 = jnp.zeros((1, D), jnp.float32)
    w1 = scale * jax.random.normal(ks[3], (D, H), jnp.float32)
    bb1 = scale * jax.random.normal(ks[4], (1, H), jnp.float32)
    w2 = scale * jax.random.normal(ks[5], (H, D), jnp.float32)
    bb2 = jnp.zeros((1, D), jnp.float32)
    return [wkv, wproj, bproj, g1, b1, g2, b2, w1, bb1, w2, bb2]


def reference_forward(x, params):
    """Pure-JAX f32 reference of the same math for a correctness check."""
    wkv, wproj, bproj, g1, b1, g2, b2, w1, bb1, w2, bb2 = params
    B, T, D = x.shape
    hs = D // NUM_HEADS

    def ln(v, g, b):
        mu = jnp.mean(v, axis=-1, keepdims=True)
        var = jnp.mean((v - mu) ** 2, axis=-1, keepdims=True)
        return (v - mu) * jax.lax.rsqrt(var + LN_EPS) * g + b

    xn1 = ln(x, g1[0], b1[0])
    kqv = jnp.einsum("btd,de->bte", xn1, wkv)
    causal = jnp.tril(jnp.ones((T, T), bool))
    outs = []
    for h in range(NUM_HEADS):
        kh = kqv[..., h * hs:(h + 1) * hs]
        s = jnp.einsum("bqd,bkd->bqk", kh, kh) * (D ** -0.5)
        s = jnp.where(causal, s, -jnp.inf)
        p = jax.nn.softmax(s, axis=-1)
        outs.append(jnp.einsum("bqk,bkd->bqd", p, kh))
    cat = jnp.concatenate(outs, axis=-1)
    x1 = x + jnp.einsum("btd,de->bte", cat, wproj) + bproj[0]
    xn2 = ln(x1, g2[0], b2[0])
    h1 = jnp.maximum(jnp.einsum("btd,dh->bth", xn2, w1) + bb1[0], 0.0)
    ff = jnp.einsum("bth,hd->btd", h1, w2) + bb2[0]
    return x1 + ff


if __name__ == "__main__":
    key = jax.random.PRNGKey(0)
    kx, kp = jax.random.split(key)
    x = jax.random.normal(kx, (BATCH, SEQ_LEN, DIM_EMBEDDING), jnp.float32)
    params = init_params(kp, DIM_EMBEDDING, NUM_HEADS)

    out = jax.block_until_ready(block_forward(x, params))
    ref = jax.block_until_ready(reference_forward(x, params))

    # bf16 matmul operands with f32 accumulation: comfortably within 1e-2 tolerance.
    np.testing.assert_allclose(np.asarray(out), np.asarray(ref), rtol=2e-2, atol=2e-2)

    print("KERNEL_OK")
</pallas_src>

<mosaic_0001>
module attributes {stable_mosaic.version = 11 : i64} {
  func.func @block_kernel(%arg0: i32, %arg1: memref<1x128x128xf32, #tpu.memory_space<vmem>>, %arg2: memref<128x128xf32, #tpu.memory_space<vmem>>, %arg3: memref<4x128x32xbf16, #tpu.memory_space<vmem>>, %arg4: memref<4x32x128xbf16, #tpu.memory_space<vmem>>, %arg5: memref<1x128xf32, #tpu.memory_space<vmem>>, %arg6: memref<1x128xf32, #tpu.memory_space<vmem>>, %arg7: memref<1x128xf32, #tpu.memory_space<vmem>>, %arg8: memref<1x128xf32, #tpu.memory_space<vmem>>, %arg9: memref<1x128xf32, #tpu.memory_space<vmem>>, %arg10: memref<128x512xbf16, #tpu.memory_space<vmem>>, %arg11: memref<1x512xf32, #tpu.memory_space<vmem>>, %arg12: memref<512x128xbf16, #tpu.memory_space<vmem>>, %arg13: memref<1x128xf32, #tpu.memory_space<vmem>>, %arg14: memref<1x128x128xf32, #tpu.memory_space<vmem>>) attributes {dimension_semantics = [#tpu.dimension_semantics<parallel>], iteration_bounds = array<i64: 2>, scalar_prefetch = 0 : i64, scratch_operands = 0 : i64, tpu.core_type = #tpu.core_type<tc>, window_params = [{transform_indices = @transform_0, window_bounds = array<i64: 1, 128, 128>}, {pipeline_mode = #tpu.pipeline_mode<synchronous>, transform_indices = @transform_1, window_bounds = array<i64: 128, 128>}, {pipeline_mode = #tpu.pipeline_mode<synchronous>, transform_indices = @transform_2, window_bounds = array<i64: 4, 128, 32>}, {pipeline_mode = #tpu.pipeline_mode<synchronous>, transform_indices = @transform_3, window_bounds = array<i64: 4, 32, 128>}, {pipeline_mode = #tpu.pipeline_mode<synchronous>, transform_indices = @transform_4, window_bounds = array<i64: 1, 128>}, {pipeline_mode = #tpu.pipeline_mode<synchronous>, transform_indices = @transform_5, window_bounds = array<i64: 1, 128>}, {pipeline_mode = #tpu.pipeline_mode<synchronous>, transform_indices = @transform_6, window_bounds = array<i64: 1, 128>}, {pipeline_mode = #tpu.pipeline_mode<synchronous>, transform_indices = @transform_7, window_bounds = array<i64: 1, 128>}, {pipeline_mode = #tpu.pipeline_mode<synchronous>, transform_indices = @transform_8, window_bounds = array<i64: 1, 128>}, {pipeline_mode = #tpu.pipeline_mode<synchronous>, transform_indices = @transform_9, window_bounds = array<i64: 128, 512>}, {pipeline_mode = #tpu.pipeline_mode<synchronous>, transform_indices = @transform_10, window_bounds = array<i64: 1, 512>}, {pipeline_mode = #tpu.pipeline_mode<synchronous>, transform_indices = @transform_11, window_bounds = array<i64: 512, 128>}, {pipeline_mode = #tpu.pipeline_mode<synchronous>, transform_indices = @transform_12, window_bounds = array<i64: 1, 128>}, {transform_indices = @transform_13, window_bounds = array<i64: 1, 128, 128>}]} {
    %c0 = arith.constant 0 : index
    %c0_0 = arith.constant 0 : index
    %c0_1 = arith.constant 0 : index
    %0 = vector.load %arg1[%c0, %c0_0, %c0_1] : memref<1x128x128xf32, #tpu.memory_space<vmem>>, vector<1x128x128xf32>
    %1 = vector.shape_cast %0 : vector<1x128x128xf32> to vector<128x128xf32>
    %c0_2 = arith.constant 0 : index
    %c0_3 = arith.constant 0 : index
    %2 = vector.load %arg2[%c0_2, %c0_3] : memref<128x128xf32, #tpu.memory_space<vmem>>, vector<128x128xf32>
    %c0_4 = arith.constant 0 : index
    %c0_5 = arith.constant 0 : index
    %3 = vector.load %arg6[%c0_4, %c0_5] : memref<1x128xf32, #tpu.memory_space<vmem>>, vector<1x128xf32>
    %4 = vector.shape_cast %3 : vector<1x128xf32> to vector<128xf32>
    %c0_6 = arith.constant 0 : index
    %c0_7 = arith.constant 0 : index
    %5 = vector.load %arg7[%c0_6, %c0_7] : memref<1x128xf32, #tpu.memory_space<vmem>>, vector<1x128xf32>
    %6 = vector.shape_cast %5 : vector<1x128xf32> to vector<128xf32>
    %cst = arith.constant dense<0.000000e+00> : vector<128xf32>
    %7 = vector.multi_reduction <add>, %1, %cst [1] : vector<128x128xf32> to vector<128xf32>
    %8 = vector.shape_cast %7 : vector<128xf32> to vector<128x1xf32>
    %cst_8 = arith.constant 1.280000e+02 : f32
    %9 = vector.broadcast %cst_8 : f32 to vector<128x1xf32>
    %10 = arith.divf %8, %9 : vector<128x1xf32>
    %11 = vector.broadcast %10 : vector<128x1xf32> to vector<128x128xf32>
    %12 = arith.subf %1, %11 : vector<128x128xf32>
    %13 = arith.mulf %12, %12 : vector<128x128xf32>
    %cst_9 = arith.constant dense<0.000000e+00> : vector<128xf32>
    %14 = vector.multi_reduction <add>, %13, %cst_9 [1] : vector<128x128xf32> to vector<128xf32>
    %15 = vector.shape_cast %14 : vector<128xf32> to vector<128x1xf32>
    %cst_10 = arith.constant 1.280000e+02 : f32
    %16 = vector.broadcast %cst_10 : f32 to vector<128x1xf32>
    %17 = arith.divf %15, %16 : vector<128x1xf32>
    %18 = vector.broadcast %10 : vector<128x1xf32> to vector<128x128xf32>
    %19 = arith.subf %1, %18 : vector<128x128xf32>
    %cst_11 = arith.constant 9.99999974E-6 : f32
    %20 = vector.broadcast %cst_11 : f32 to vector<128x1xf32>
    %21 = arith.addf %17, %20 : vector<128x1xf32>
    %22 = math.rsqrt %21 : vector<128x1xf32>
    %23 = vector.broadcast %22 : vector<128x1xf32> to vector<128x128xf32>
    %24 = arith.mulf %19, %23 : vector<128x128xf32>
    %25 = vector.shape_cast %4 : vector<128xf32> to vector<1x128xf32>
    %26 = vector.broadcast %25 : vector<1x128xf32> to vector<128x128xf32>
    %27 = arith.mulf %24, %26 : vector<128x128xf32>
    %28 = vector.shape_cast %6 : vector<128xf32> to vector<1x128xf32>
    %29 = vector.broadcast %28 : vector<1x128xf32> to vector<128x128xf32>
    %30 = arith.addf %27, %29 : vector<128x128xf32>
    %31 = arith.truncf %30 : vector<128x128xf32> to vector<128x128xbf16>
    %cst_12 = arith.constant 0.000000e+00 : f32
    %32 = vector.broadcast %cst_12 : f32 to vector<128x128xf32>
    %c0_13 = arith.constant 0 : index
    %c0_14 = arith.constant 0 : index
    %c0_15 = arith.constant 0 : index
    %33 = vector.load %arg3[%c0_13, %c0_14, %c0_15] : memref<4x128x32xbf16, #tpu.memory_space<vmem>>, vector<1x128x32xbf16>
    %34 = vector.shape_cast %33 : vector<1x128x32xbf16> to vector<128x32xbf16>
    %cst_16 = arith.constant dense<0.000000e+00> : vector<128x32xf32>
    %35 = tpu.matmul %31, %34, %cst_16 {dimension_numbers = #tpu.dot_dimension_numbers<[1], [0], [0], [1], [0, 0, 1, 1], [], []>} : vector<128x128xbf16>, vector<128x32xbf16>, vector<128x32xf32> -> vector<128x32xf32>
    %36 = arith.truncf %35 : vector<128x32xf32> to vector<128x32xbf16>
    %cst_17 = arith.constant 0.0883883461 : f32
    %37 = vector.broadcast %cst_17 : f32 to vector<128x32xf32>
    %38 = arith.mulf %35, %37 : vector<128x32xf32>
    %39 = arith.truncf %38 : vector<128x32xf32> to vector<128x32xbf16>
    %cst_18 = arith.constant dense<0.000000e+00> : vector<128x128xf32>
    %40 = tpu.matmul %39, %36, %cst_18 {dimension_numbers = #tpu.dot_dimension_numbers<[1], [1], [0], [0], [0, 0, 1, 0], [], []>} : vector<128x32xbf16>, vector<128x32xbf16>, vector<128x128xf32> -> vector<128x128xf32>
    %41 = arith.addf %40, %2 : vector<128x128xf32>
    %cst_19 = arith.constant dense<0xFF800000> : vector<128xf32>
    %42 = vector.multi_reduction <maximumf>, %41, %cst_19 [1] : vector<128x128xf32> to vector<128xf32>
    %43 = vector.shape_cast %42 : vector<128xf32> to vector<128x1xf32>
    %44 = vector.broadcast %43 : vector<128x1xf32> to vector<128x128xf32>
    %45 = arith.subf %41, %44 : vector<128x128xf32>
    %46 = math.exp %45 : vector<128x128xf32>
    %cst_20 = arith.constant dense<0.000000e+00> : vector<128xf32>
    %47 = vector.multi_reduction <add>, %46, %cst_20 [1] : vector<128x128xf32> to vector<128xf32>
    %48 = vector.shape_cast %47 : vector<128xf32> to vector<128x1xf32>
    %49 = arith.truncf %46 : vector<128x128xf32> to vector<128x128xbf16>
    %cst_21 = arith.constant dense<0.000000e+00> : vector<128x32xf32>
    %50 = tpu.matmul %49, %36, %cst_21 {dimension_numbers = #tpu.dot_dimension_numbers<[1], [0], [0], [1], [0, 0, 1, 1], [], []>} : vector<128x128xbf16>, vector<128x32xbf16>, vector<128x32xf32> -> vector<128x32xf32>
    %51 = tpu.reciprocal %48 {approx = true} : vector<128x1xf32> -> vector<128x1xf32>
    %52 = vector.broadcast %51 : vector<128x1xf32> to vector<128x32xf32>
    %53 = arith.mulf %50, %52 : vector<128x32xf32>
    %54 = arith.truncf %53 : vector<128x32xf32> to vector<128x32xbf16>
    %c0_22 = arith.constant 0 : index
    %c0_23 = arith.constant 0 : index
    %c0_24 = arith.constant 0 : index
    %55 = vector.load %arg4[%c0_22, %c0_23, %c0_24] : memref<4x32x128xbf16, #tpu.memory_space<vmem>>, vector<1x32x128xbf16>
    %56 = vector.shape_cast %55 : vector<1x32x128xbf16> to vector<32x128xbf16>
    %cst_25 = arith.constant dense<0.000000e+00> : vector<128x128xf32>
    %57 = tpu.matmul %54, %56, %cst_25 {dimension_numbers = #tpu.dot_dimension_numbers<[1], [0], [0], [1], [0, 0, 1, 1], [], []>} : vector<128x32xbf16>, vector<32x128xbf16>, vector<128x128xf32> -> vector<128x128xf32>
    %58 = arith.addf %32, %57 : vector<128x128xf32>
    %c1 = arith.constant 1 : index
    %c0_26 = arith.constant 0 : index
    %c0_27 = arith.constant 0 : index
    %59 = vector.load %arg3[%c1, %c0_26, %c0_27] : memref<4x128x32xbf16, #tpu.memory_space<vmem>>, vector<1x128x32xbf16>
    %60 = vector.shape_cast %59 : vector<1x128x32xbf16> to vector<128x32xbf16>
    %cst_28 = arith.constant dense<0.000000e+00> : vector<128x32xf32>
    %61 = tpu.matmul %31, %60, %cst_28 {dimension_numbers = #tpu.dot_dimension_numbers<[1], [0], [0], [1], [0, 0, 1, 1], [], []>} : vector<128x128xbf16>, vector<128x32xbf16>, vector<128x32xf32> -> vector<128x32xf32>
    %62 = arith.truncf %61 : vector<128x32xf32> to vector<128x32xbf16>
    %cst_29 = arith.constant 0.0883883461 : f32
    %63 = vector.broadcast %cst_29 : f32 to vector<128x32xf32>
    %64 = arith.mulf %61, %63 : vector<128x32xf32>
    %65 = arith.truncf %64 : vector<128x32xf32> to vector<128x32xbf16>
    %cst_30 = arith.constant dense<0.000000e+00> : vector<128x128xf32>
    %66 = tpu.matmul %65, %62, %cst_30 {dimension_numbers = #tpu.dot_dimension_numbers<[1], [1], [0], [0], [0, 0, 1, 0], [], []>} : vector<128x32xbf16>, vector<128x32xbf16>, vector<128x128xf32> -> vector<128x128xf32>
    %67 = arith.addf %66, %2 : vector<128x128xf32>
    %cst_31 = arith.constant dense<0xFF800000> : vector<128xf32>
    %68 = vector.multi_reduction <maximumf>, %67, %cst_31 [1] : vector<128x128xf32> to vector<128xf32>
    %69 = vector.shape_cast %68 : vector<128xf32> to vector<128x1xf32>
    %70 = vector.broadcast %69 : vector<128x1xf32> to vector<128x128xf32>
    %71 = arith.subf %67, %70 : vector<128x128xf32>
    %72 = math.exp %71 : vector<128x128xf32>
    %cst_32 = arith.constant dense<0.000000e+00> : vector<128xf32>
    %73 = vector.multi_reduction <add>, %72, %cst_32 [1] : vector<128x128xf32> to vector<128xf32>
    %74 = vector.shape_cast %73 : vector<128xf32> to vector<128x1xf32>
    %75 = arith.truncf %72 : vector<128x128xf32> to vector<128x128xbf16>
    %cst_33 = arith.constant dense<0.000000e+00> : vector<128x32xf32>
    %76 = tpu.matmul %75, %62, %cst_33 {dimension_numbers = #tpu.dot_dimension_numbers<[1], [0], [0], [1], [0, 0, 1, 1], [], []>} : vector<128x128xbf16>, vector<128x32xbf16>, vector<128x32xf32> -> vector<128x32xf32>
    %77 = tpu.reciprocal %74 {approx = true} : vector<128x1xf32> -> vector<128x1xf32>
    %78 = vector.broadcast %77 : vector<128x1xf32> to vector<128x32xf32>
    %79 = arith.mulf %76, %78 : vector<128x32xf32>
    %80 = arith.truncf %79 : vector<128x32xf32> to vector<128x32xbf16>
    %c1_34 = arith.constant 1 : index
    %c0_35 = arith.constant 0 : index
    %c0_36 = arith.constant 0 : index
    %81 = vector.load %arg4[%c1_34, %c0_35, %c0_36] : memref<4x32x128xbf16, #tpu.memory_space<vmem>>, vector<1x32x128xbf16>
    %82 = vector.shape_cast %81 : vector<1x32x128xbf16> to vector<32x128xbf16>
    %cst_37 = arith.constant dense<0.000000e+00> : vector<128x128xf32>
    %83 = tpu.matmul %80, %82, %cst_37 {dimension_numbers = #tpu.dot_dimension_numbers<[1], [0], [0], [1], [0, 0, 1, 1], [], []>} : vector<128x32xbf16>, vector<32x128xbf16>, vector<128x128xf32> -> vector<128x128xf32>
    %84 = arith.addf %58, %83 : vector<128x128xf32>
    %c2 = arith.constant 2 : index
    %c0_38 = arith.constant 0 : index
    %c0_39 = arith.constant 0 : index
    %85 = vector.load %arg3[%c2, %c0_38, %c0_39] : memref<4x128x32xbf16, #tpu.memory_space<vmem>>, vector<1x128x32xbf16>
    %86 = vector.shape_cast %85 : vector<1x128x32xbf16> to vector<128x32xbf16>
    %cst_40 = arith.constant dense<0.000000e+00> : vector<128x32xf32>
    %87 = tpu.matmul %31, %86, %cst_40 {dimension_numbers = #tpu.dot_dimension_numbers<[1], [0], [0], [1], [0, 0, 1, 1], [], []>} : vector<128x128xbf16>, vector<128x32xbf16>, vector<128x32xf32> -> vector<128x32xf32>
    %88 = arith.truncf %87 : vector<128x32xf32> to vector<128x32xbf16>
    %cst_41 = arith.constant 0.0883883461 : f32
    %89 = vector.broadcast %cst_41 : f32 to vector<128x32xf32>
    %90 = arith.mulf %87, %89 : vector<128x32xf32>
    %91 = arith.truncf %90 : vector<128x32xf32> to vector<128x32xbf16>
    %cst_42 = arith.constant dense<0.000000e+00> : vector<128x128xf32>
    %92 = tpu.matmul %91, %88, %cst_42 {dimension_numbers = #tpu.dot_dimension_numbers<[1], [1], [0], [0], [0, 0, 1, 0], [], []>} : vector<128x32xbf16>, vector<128x32xbf16>, vector<128x128xf32> -> vector<128x128xf32>
    %93 = arith.addf %92, %2 : vector<128x128xf32>
    %cst_43 = arith.constant dense<0xFF800000> : vector<128xf32>
    %94 = vector.multi_reduction <maximumf>, %93, %cst_43 [1] : vector<128x128xf32> to vector<128xf32>
    %95 = vector.shape_cast %94 : vector<128xf32> to vector<128x1xf32>
    %96 = vector.broadcast %95 : vector<128x1xf32> to vector<128x128xf32>
    %97 = arith.subf %93, %96 : vector<128x128xf32>
    %98 = math.exp %97 : vector<128x128xf32>
    %cst_44 = arith.constant dense<0.000000e+00> : vector<128xf32>
    %99 = vector.multi_reduction <add>, %98, %cst_44 [1] : vector<128x128xf32> to vector<128xf32>
    %100 = vector.shape_cast %99 : vector<128xf32> to vector<128x1xf32>
    %101 = arith.truncf %98 : vector<128x128xf32> to vector<128x128xbf16>
    %cst_45 = arith.constant dense<0.000000e+00> : vector<128x32xf32>
    %102 = tpu.matmul %101, %88, %cst_45 {dimension_numbers = #tpu.dot_dimension_numbers<[1], [0], [0], [1], [0, 0, 1, 1], [], []>} : vector<128x128xbf16>, vector<128x32xbf16>, vector<128x32xf32> -> vector<128x32xf32>
    %103 = tpu.reciprocal %100 {approx = true} : vector<128x1xf32> -> vector<128x1xf32>
    %104 = vector.broadcast %103 : vector<128x1xf32> to vector<128x32xf32>
    %105 = arith.mulf %102, %104 : vector<128x32xf32>
    %106 = arith.truncf %105 : vector<128x32xf32> to vector<128x32xbf16>
    %c2_46 = arith.constant 2 : index
    %c0_47 = arith.constant 0 : index
    %c0_48 = arith.constant 0 : index
    %107 = vector.load %arg4[%c2_46, %c0_47, %c0_48] : memref<4x32x128xbf16, #tpu.memory_space<vmem>>, vector<1x32x128xbf16>
    %108 = vector.shape_cast %107 : vector<1x32x128xbf16> to vector<32x128xbf16>
    %cst_49 = arith.constant dense<0.000000e+00> : vector<128x128xf32>
    %109 = tpu.matmul %106, %108, %cst_49 {dimension_numbers = #tpu.dot_dimension_numbers<[1], [0], [0], [1], [0, 0, 1, 1], [], []>} : vector<128x32xbf16>, vector<32x128xbf16>, vector<128x128xf32> -> vector<128x128xf32>
    %110 = arith.addf %84, %109 : vector<128x128xf32>
    %c3 = arith.constant 3 : index
    %c0_50 = arith.constant 0 : index
    %c0_51 = arith.constant 0 : index
    %111 = vector.load %arg3[%c3, %c0_50, %c0_51] : memref<4x128x32xbf16, #tpu.memory_space<vmem>>, vector<1x128x32xbf16>
    %112 = vector.shape_cast %111 : vector<1x128x32xbf16> to vector<128x32xbf16>
    %cst_52 = arith.constant dense<0.000000e+00> : vector<128x32xf32>
    %113 = tpu.matmul %31, %112, %cst_52 {dimension_numbers = #tpu.dot_dimension_numbers<[1], [0], [0], [1], [0, 0, 1, 1], [], []>} : vector<128x128xbf16>, vector<128x32xbf16>, vector<128x32xf32> -> vector<128x32xf32>
    %114 = arith.truncf %113 : vector<128x32xf32> to vector<128x32xbf16>
    %cst_53 = arith.constant 0.0883883461 : f32
    %115 = vector.broadcast %cst_53 : f32 to vector<128x32xf32>
    %116 = arith.mulf %113, %115 : vector<128x32xf32>
    %117 = arith.truncf %116 : vector<128x32xf32> to vector<128x32xbf16>
    %cst_54 = arith.constant dense<0.000000e+00> : vector<128x128xf32>
    %118 = tpu.matmul %117, %114, %cst_54 {dimension_numbers = #tpu.dot_dimension_numbers<[1], [1], [0], [0], [0, 0, 1, 0], [], []>} : vector<128x32xbf16>, vector<128x32xbf16>, vector<128x128xf32> -> vector<128x128xf32>
    %119 = arith.addf %118, %2 : vector<128x128xf32>
    %cst_55 = arith.constant dense<0xFF800000> : vector<128xf32>
    %120 = vector.multi_reduction <maximumf>, %119, %cst_55 [1] : vector<128x128xf32> to vector<128xf32>
    %121 = vector.shape_cast %120 : vector<128xf32> to vector<128x1xf32>
    %122 = vector.broadcast %121 : vector<128x1xf32> to vector<128x128xf32>
    %123 = arith.subf %119, %122 : vector<128x128xf32>
    %124 = math.exp %123 : vector<128x128xf32>
    %cst_56 = arith.constant dense<0.000000e+00> : vector<128xf32>
    %125 = vector.multi_reduction <add>, %124, %cst_56 [1] : vector<128x128xf32> to vector<128xf32>
    %126 = vector.shape_cast %125 : vector<128xf32> to vector<128x1xf32>
    %127 = arith.truncf %124 : vector<128x128xf32> to vector<128x128xbf16>
    %cst_57 = arith.constant dense<0.000000e+00> : vector<128x32xf32>
    %128 = tpu.matmul %127, %114, %cst_57 {dimension_numbers = #tpu.dot_dimension_numbers<[1], [0], [0], [1], [0, 0, 1, 1], [], []>} : vector<128x128xbf16>, vector<128x32xbf16>, vector<128x32xf32> -> vector<128x32xf32>
    %129 = tpu.reciprocal %126 {approx = true} : vector<128x1xf32> -> vector<128x1xf32>
    %130 = vector.broadcast %129 : vector<128x1xf32> to vector<128x32xf32>
    %131 = arith.mulf %128, %130 : vector<128x32xf32>
    %132 = arith.truncf %131 : vector<128x32xf32> to vector<128x32xbf16>
    %c3_58 = arith.constant 3 : index
    %c0_59 = arith.constant 0 : index
    %c0_60 = arith.constant 0 : index
    %133 = vector.load %arg4[%c3_58, %c0_59, %c0_60] : memref<4x32x128xbf16, #tpu.memory_space<vmem>>, vector<1x32x128xbf16>
    %134 = vector.shape_cast %133 : vector<1x32x128xbf16> to vector<32x128xbf16>
    %cst_61 = arith.constant dense<0.000000e+00> : vector<128x128xf32>
    %135 = tpu.matmul %132, %134, %cst_61 {dimension_numbers = #tpu.dot_dimension_numbers<[1], [0], [0], [1], [0, 0, 1, 1], [], []>} : vector<128x32xbf16>, vector<32x128xbf16>, vector<128x128xf32> -> vector<128x128xf32>
    %136 = arith.addf %110, %135 : vector<128x128xf32>
    %137 = arith.addf %1, %136 : vector<128x128xf32>
    %c0_62 = arith.constant 0 : index
    %c0_63 = arith.constant 0 : index
    %138 = vector.load %arg5[%c0_62, %c0_63] : memref<1x128xf32, #tpu.memory_space<vmem>>, vector<1x128xf32>
    %139 = vector.shape_cast %138 : vector<1x128xf32> to vector<128xf32>
    %140 = vector.shape_cast %139 : vector<128xf32> to vector<1x128xf32>
    %141 = vector.broadcast %140 : vector<1x128xf32> to vector<128x128xf32>
    %142 = arith.addf %137, %141 : vector<128x128xf32>
    %c0_64 = arith.constant 0 : index
    %c0_65 = arith.constant 0 : index
    %143 = vector.load %arg8[%c0_64, %c0_65] : memref<1x128xf32, #tpu.memory_space<vmem>>, vector<1x128xf32>
    %144 = vector.shape_cast %143 : vector<1x128xf32> to vector<128xf32>
    %c0_66 = arith.constant 0 : index
    %c0_67 = arith.constant 0 : index
    %145 = vector.load %arg9[%c0_66, %c0_67] : memref<1x128xf32, #tpu.memory_space<vmem>>, vector<1x128xf32>
    %146 = vector.shape_cast %145 : vector<1x128xf32> to vector<128xf32>
    %cst_68 = arith.constant dense<0.000000e+00> : vector<128xf32>
    %147 = vector.multi_reduction <add>, %142, %cst_68 [1] : vector<128x128xf32> to vector<128xf32>
    %148 = vector.shape_cast %147 : vector<128xf32> to vector<128x1xf32>
    %cst_69 = arith.constant 1.280000e+02 : f32
    %149 = vector.broadcast %cst_69 : f32 to vector<128x1xf32>
    %150 = arith.divf %148, %149 : vector<128x1xf32>
    %151 = vector.broadcast %150 : vector<128x1xf32> to vector<128x128xf32>
    %152 = arith.subf %142, %151 : vector<128x128xf32>
    %153 = arith.mulf %152, %152 : vector<128x128xf32>
    %cst_70 = arith.constant dense<0.000000e+00> : vector<128xf32>
    %154 = vector.multi_reduction <add>, %153, %cst_70 [1] : vector<128x128xf32> to vector<128xf32>
    %155 = vector.shape_cast %154 : vector<128xf32> to vector<128x1xf32>
    %cst_71 = arith.constant 1.280000e+02 : f32
    %156 = vector.broadcast %cst_71 : f32 to vector<128x1xf32>
    %157 = arith.divf %155, %156 : vector<128x1xf32>
    %158 = vector.broadcast %150 : vector<128x1xf32> to vector<128x128xf32>
    %159 = arith.subf %142, %158 : vector<128x128xf32>
    %cst_72 = arith.constant 9.99999974E-6 : f32
    %160 = vector.broadcast %cst_72 : f32 to vector<128x1xf32>
    %161 = arith.addf %157, %160 : vector<128x1xf32>
    %162 = math.rsqrt %161 : vector<128x1xf32>
    %163 = vector.broadcast %162 : vector<128x1xf32> to vector<128x128xf32>
    %164 = arith.mulf %159, %163 : vector<128x128xf32>
    %165 = vector.shape_cast %144 : vector<128xf32> to vector<1x128xf32>
    %166 = vector.broadcast %165 : vector<1x128xf32> to vector<128x128xf32>
    %167 = arith.mulf %164, %166 : vector<128x128xf32>
    %168 = vector.shape_cast %146 : vector<128xf32> to vector<1x128xf32>
    %169 = vector.broadcast %168 : vector<1x128xf32> to vector<128x128xf32>
    %170 = arith.addf %167, %169 : vector<128x128xf32>
    %171 = arith.truncf %170 : vector<128x128xf32> to vector<128x128xbf16>
    %c0_73 = arith.constant 0 : index
    %c0_74 = arith.constant 0 : index
    %172 = vector.load %arg10[%c0_73, %c0_74] : memref<128x512xbf16, #tpu.memory_space<vmem>>, vector<128x512xbf16>
    %cst_75 = arith.constant dense<0.000000e+00> : vector<128x512xf32>
    %173 = tpu.matmul %171, %172, %cst_75 {dimension_numbers = #tpu.dot_dimension_numbers<[1], [0], [0], [1], [0, 0, 1, 1], [], []>} : vector<128x128xbf16>, vector<128x512xbf16>, vector<128x512xf32> -> vector<128x512xf32>
    %c0_76 = arith.constant 0 : index
    %c0_77 = arith.constant 0 : index
    %174 = vector.load %arg11[%c0_76, %c0_77] : memref<1x512xf32, #tpu.memory_space<vmem>>, vector<1x512xf32>
    %175 = vector.shape_cast %174 : vector<1x512xf32> to vector<512xf32>
    %176 = vector.shape_cast %175 : vector<512xf32> to vector<1x512xf32>
    %177 = vector.broadcast %176 : vector<1x512xf32> to vector<128x512xf32>
    %178 = arith.addf %173, %177 : vector<128x512xf32>
    %cst_78 = arith.constant 0.000000e+00 : f32
    %179 = vector.broadcast %cst_78 : f32 to vector<128x512xf32>
    %180 = arith.maximumf %178, %179 : vector<128x512xf32>
    %181 = arith.truncf %180 : vector<128x512xf32> to vector<128x512xbf16>
    %c0_79 = arith.constant 0 : index
    %c0_80 = arith.constant 0 : index
    %182 = vector.load %arg12[%c0_79, %c0_80] : memref<512x128xbf16, #tpu.memory_space<vmem>>, vector<512x128xbf16>
    %cst_81 = arith.constant dense<0.000000e+00> : vector<128x128xf32>
    %183 = tpu.matmul %181, %182, %cst_81 {dimension_numbers = #tpu.dot_dimension_numbers<[1], [0], [0], [1], [0, 0, 1, 1], [], []>} : vector<128x512xbf16>, vector<512x128xbf16>, vector<128x128xf32> -> vector<128x128xf32>
    %c0_82 = arith.constant 0 : index
    %c0_83 = arith.constant 0 : index
    %184 = vector.load %arg13[%c0_82, %c0_83] : memref<1x128xf32, #tpu.memory_space<vmem>>, vector<1x128xf32>
    %185 = vector.shape_cast %184 : vector<1x128xf32> to vector<128xf32>
    %186 = vector.shape_cast %185 : vector<128xf32> to vector<1x128xf32>
    %187 = vector.broadcast %186 : vector<1x128xf32> to vector<128x128xf32>
    %188 = arith.addf %183, %187 : vector<128x128xf32>
    %189 = arith.addf %142, %188 : vector<128x128xf32>
    %c0_84 = arith.constant 0 : index
    %c0_85 = arith.constant 0 : index
    %c0_86 = arith.constant 0 : index
    %190 = vector.load %arg14[%c0_84, %c0_85, %c0_86] : memref<1x128x128xf32, #tpu.memory_space<vmem>>, vector<1x128x128xf32>
    %191 = vector.shape_cast %190 : vector<1x128x128xf32> to vector<128x128xf32>
    %192 = vector.shape_cast %189 : vector<128x128xf32> to vector<1x128x128xf32>
    tpu.vector_store %arg14[%c0_84, %c0_85, %c0_86], %192 {strides = array<i32>} : memref<1x128x128xf32, #tpu.memory_space<vmem>>, vector<1x128x128xf32>,
    return
  }
  func.func @transform_0(%arg0: i32) -> (i32, i32, i32) {
    %c0_i32 = arith.constant 0 : i32
    %c0_i32_0 = arith.constant 0 : i32
    %c0_i32_1 = arith.constant 0 : i32
    return %arg0, %c0_i32, %c0_i32_0 : i32, i32, i32
  }
  func.func @transform_1(%arg0: i32) -> (i32, i32) {
    %c0_i32 = arith.constant 0 : i32
    %c0_i32_0 = arith.constant 0 : i32
    %c0_i32_1 = arith.constant 0 : i32
    return %c0_i32, %c0_i32_0 : i32, i32
  }
  func.func @transform_2(%arg0: i32) -> (i32, i32, i32) {
    %c0_i32 = arith.constant 0 : i32
    %c0_i32_0 = arith.constant 0 : i32
    %c0_i32_1 = arith.constant 0 : i32
    %c0_i32_2 = arith.constant 0 : i32
    return %c0_i32, %c0_i32_0, %c0_i32_1 : i32, i32, i32
  }
  func.func @transform_3(%arg0: i32) -> (i32, i32, i32) {
    %c0_i32 = arith.constant 0 : i32
    %c0_i32_0 = arith.constant 0 : i32
    %c0_i32_1 = arith.constant 0 : i32
    %c0_i32_2 = arith.constant 0 : i32
    return %c0_i32, %c0_i32_0, %c0_i32_1 : i32, i32, i32
  }
  func.func @transform_4(%arg0: i32) -> (i32, i32) {
    %c0_i32 = arith.constant 0 : i32
    %c0_i32_0 = arith.constant 0 : i32
    %c0_i32_1 = arith.constant 0 : i32
    return %c0_i32, %c0_i32_0 : i32, i32
  }
  func.func @transform_5(%arg0: i32) -> (i32, i32) {
    %c0_i32 = arith.constant 0 : i32
    %c0_i32_0 = arith.constant 0 : i32
    %c0_i32_1 = arith.constant 0 : i32
    return %c0_i32, %c0_i32_0 : i32, i32
  }
  func.func @transform_6(%arg0: i32) -> (i32, i32) {
    %c0_i32 = arith.constant 0 : i32
    %c0_i32_0 = arith.constant 0 : i32
    %c0_i32_1 = arith.constant 0 : i32
    return %c0_i32, %c0_i32_0 : i32, i32
  }
  func.func @transform_7(%arg0: i32) -> (i32, i32) {
    %c0_i32 = arith.constant 0 : i32
    %c0_i32_0 = arith.constant 0 : i32
    %c0_i32_1 = arith.constant 0 : i32
    return %c0_i32, %c0_i32_0 : i32, i32
  }
  func.func @transform_8(%arg0: i32) -> (i32, i32) {
    %c0_i32 = arith.constant 0 : i32
    %c0_i32_0 = arith.constant 0 : i32
    %c0_i32_1 = arith.constant 0 : i32
    return %c0_i32, %c0_i32_0 : i32, i32
  }
  func.func @transform_9(%arg0: i32) -> (i32, i32) {
    %c0_i32 = arith.constant 0 : i32
    %c0_i32_0 = arith.constant 0 : i32
    %c0_i32_1 = arith.constant 0 : i32
    return %c0_i32, %c0_i32_0 : i32, i32
  }
  func.func @transform_10(%arg0: i32) -> (i32, i32) {
    %c0_i32 = arith.constant 0 : i32
    %c0_i32_0 = arith.constant 0 : i32
    %c0_i32_1 = arith.constant 0 : i32
    return %c0_i32, %c0_i32_0 : i32, i32
  }
  func.func @transform_11(%arg0: i32) -> (i32, i32) {
    %c0_i32 = arith.constant 0 : i32
    %c0_i32_0 = arith.constant 0 : i32
    %c0_i32_1 = arith.constant 0 : i32
    return %c0_i32, %c0_i32_0 : i32, i32
  }
  func.func @transform_12(%arg0: i32) -> (i32, i32) {
    %c0_i32 = arith.constant 0 : i32
    %c0_i32_0 = arith.constant 0 : i32
    %c0_i32_1 = arith.constant 0 : i32
    return %c0_i32, %c0_i32_0 : i32, i32
  }
  func.func @transform_13(%arg0: i32) -> (i32, i32, i32) {
    %c0_i32 = arith.constant 0 : i32
    %c0_i32_0 = arith.constant 0 : i32
    %c0_i32_1 = arith.constant 0 : i32
    return %arg0, %c0_i32, %c0_i32_0 : i32, i32, i32
  }
}

</mosaic_0001>

<bundles_post_ra>
// kernel: tpu_custom_call.1
= control target key start
LH: loop header
LB: loop body
LE: loop exit
PB: predicated region body
PF: predicated region fallthrough
CT: control target
= control target key end

     0   :  { %18 = vsyncpa [#allocation3], 0  ;;  %s8847_s0 = inlined_call_operand.vmem [shape: f32[2,128,128], index: 0, kind: input, shape index: {}]   ;;  %s8848_s1 = inlined_call_operand.hbm [shape: f32[128,128], index: 1, kind: input, shape index: {}]   ;;  %s8849_s2 = inlined_call_operand.vmem [shape: bf16[4,128,32], index: 2, kind: input, shape index: {}]   ;;  %s8850_s3 = inlined_call_operand.vmem [shape: bf16[4,32,128], index: 3, kind: input, shape index: {}]   ;;  %s8851_s4 = inlined_call_operand.vmem [shape: f32[1,128], index: 4, kind: input, shape index: {}]   ;;  %s8852_s5 = inlined_call_operand.vmem [shape: f32[1,128], index: 5, kind: input, shape index: {}]   ;;  %s8853_s6 = inlined_call_operand.vmem [shape: f32[1,128], index: 6, kind: input, shape index: {}]   ;;  %s8854_s7 = inlined_call_operand.vmem [shape: f32[1,128], index: 7, kind: input, shape index: {}]   ;;  %s8855_s8 = inlined_call_operand.vmem [shape: f32[1,128], index: 8, kind: input, shape index: {}]   ;;  %s8856_s9 = inlined_call_operand.hbm [shape: bf16[128,512], index: 9, kind: input, shape index: {}]   ;;  %s8857_s10 = inlined_call_operand.vmem [shape: f32[1,512], index: 10, kind: input, shape index: {}]   ;;  %s8858_s11 = inlined_call_operand.hbm [shape: bf16[512,128], index: 11, kind: input, shape index: {}]   ;;  %s8859_s12 = inlined_call_operand.vmem [shape: f32[1,128], index: 12, kind: input, shape index: {}]   ;;  %s8860_s13 = inlined_call_operand.hbm [shape: f32[2,128,128], index: 13, kind: output, shape index: {}]  }
   0x1   :  { %19 = vsyncpa [#allocation6], 0 }
   0x2   :  { %20 = vsyncpa [#allocation4], 0 }
   0x3   :  { %22 = vsyncpa [#allocation4 + $0x1], 0  ;;  %s7007_s25 = smov 0   ;;  %s7009_s26 = smov 0  }
   0x4   :  { %s7011_s27 = smov 0   ;;  %s7013_s28 = smov 0  }
   0x5 LB: > { %8899 = sst [smem:[#allocation12_spill]] %s6910_s25  ;;  %s7028_s29 = sadd.s32 4294967295, %s6922_s28   ;;  %s6922_s28 = sphi %s7013_s28, %s9022_s28   ;;  %s6918_s27 = sphi %s7011_s27, %s9024_s27   ;;  %s6914_s26 = sphi %s7009_s26, %s9026_s26   ;;  %s6910_s25 = sphi %s7007_s25, %s9025_s25  }
   0x6   : > { %8900 = sst [smem:[#allocation13_spill]] %s6918_s27  ;;  %s5115_s30 = sadd.s32 4294967294, %s6922_s28  }
   0x7   : > { %s7032_s14 = sadd.s32 1, %s6922_s28   ;;  %s313_s15 = sadd.s32 1, %s6918_s27 }
   0x8   : > { %8901 = sst [smem:[#allocation14_spill]] %s7032_s14  ;;  %s310_s16 = ssub.s32 %s6922_s28, %s7032_s14 }
   0x9   : > { %p323_p0 = scmp.ne.s32.totalorder %s6918_s27, %s6914_s26  ;;  %p311_p1 = scmp.eq.s32.totalorder %s310_s16, 0 }
   0xa   : > { %p324_p2 = scmp.eq.s32.totalorder %s7028_s29, 1  ;;  %p329_p3 = scmp.ne.s32.totalorder %s6914_s26, %s6910_s25 }
   0xb   : > { %p330_p4 = scmp.eq.s32.totalorder %s5115_s30, 1  ;;  %p5116_p7 = scmp.ge.s32.totalorder %s6922_s28, 1 }
   0xc   : > { %s7043_s17 = scalar_select %p311_p1, %s6918_s27, %s313_s15  }
   0xd   : > { %p7045_p5 = por %p324_p2, %p323_p0  ;;  %p7049_p6 = por %p330_p4, %p329_p3 }
   0xe   : > { %8902 = sst [smem:[#allocation15_spill]] %s7043_s17  ;;  %p337_p8 = scmp.lt.s32.totalorder %s6922_s28, 3 }
   0xf   : > { %s8904_s19 = scalar_select %p7049_p6, 1, 0 }
  0x10   : > { %p8862_p9 = scmp.eq.s32.totalorder %s7028_s29, 0  ;;  %p7056_p10 = pnand %p5116_p7, %p337_p8 }
  0x11   : > { %8905 = sst [smem:[#allocation16_spill]] %s8904_s19  ;;  %s6924_s21 = smov [#allocation5]  }
  0x12   : > { %s383_s22 = sshll.u32 %s6924_s21, 4  ;;  %p6239_p11 = pneg %p7056_p10  ;;  %s384_s22 = int_to_ptr.vmem [resolvable:$true] %s383_s22 }
  0x13   : > { %s6925_s24 = smov [#allocation2]   ;;  %s6787_s15 = scalar_lea.vmem %s384_s22, 4096 }
  0x14   : > { %p7064_p12 = pnand %p8862_p9, %p6239_p11  ;;  %s349_s30 = sshll.u32 %s6925_s24, 4  ;;  %s350_s30 = int_to_ptr.vmem [resolvable:$true] %s349_s30 }
  0x15   : > { %p6788_p0 = scmp.ne.s32.totalorder %s384_s22, %s6787_s15  ;;  %p6795_p3 = scmp.lt.s32.totalorder %s384_s22, %s384_s22 }
  0x16   : > { %p6778_p13 = pneg %p7064_p12  ;;  %p6796_p4 = scmp.lt.s32.totalorder %s6787_s15, %s6787_s15 }
  0x18   : > { %p6790_p1 = pnand %p6788_p0, %p6778_p13  ;;  %p6797_p7 = por %p6796_p4, %p6795_p3 }
  0x1a   : > { %p6791_p2 = pneg %p6790_p1 }
  0x1c   : > { %p6798_p8 = pnand %p6797_p7, %p6791_p2 }
  0x1e   : > { %6801 = shalt.err (!%p6798_p8)
}
  0x1f   : > { %s6926_s16 = smov 256   ;;  %s6927_s21 = smov 16  }
  0x20   : > { %6245 = dma.hbm_to_vmem [thread:$0]  (!%p7064_p12), %s8856_s9, 4096, %s384_s22, [#allocation6], %s6926_s16, %s6926_s16, %s6927_s21  }
  0x21   : > { %s6813_s27 = scalar_lea.vmem %s350_s30, 2048  ;;  %p6821_p9 = scmp.lt.s32.totalorder %s350_s30, %s350_s30 }
  0x22   : > { %p6814_p11 = scmp.ne.s32.totalorder %s350_s30, %s6813_s27  ;;  %p6822_p6 = scmp.lt.s32.totalorder %s6813_s27, %s6813_s27 }
  0x24   : > { %p6816_p0 = pnand %p6814_p11, %p6778_p13  ;;  %p6823_p3 = por %p6822_p6, %p6821_p9 }
  0x26   : > { %p6817_p1 = pneg %p6816_p0 }
  0x28   : > { %p6824_p2 = pnand %p6823_p3, %p6817_p1 }
  0x2a   : > { %6827 = shalt.err (!%p6824_p2)
}
  0x2b   : > { %s6928_s15 = smov 128   ;;  %s6929_s14 = smov 8  }
  0x2c   : > { %6242 = dma.hbm_to_vmem [thread:$0]  (!%p7064_p12), %s8848_s1, 2048, %s350_s30, [#allocation3], %s6928_s15, %s6928_s15, %s6929_s14  }
  0x2d   : > { %s6930_s17 = smov [#allocation7]  }
  0x2e   : > { %s399_s22 = sshll.u32 %s6930_s17, 4  ;;  %s400_s22 = int_to_ptr.vmem [resolvable:$true] %s399_s22 }
  0x2f   : > { %s6839_s16 = scalar_lea.vmem %s400_s22, 4096  ;;  %p6847_p9 = scmp.lt.s32.totalorder %s400_s22, %s400_s22 }
  0x30   : > { %p6840_p4 = scmp.ne.s32.totalorder %s400_s22, %s6839_s16  ;;  %p6848_p8 = scmp.lt.s32.totalorder %s6839_s16, %s6839_s16 }
  0x32   : > { %p6842_p7 = pnand %p6840_p4, %p6778_p13  ;;  %p6849_p11 = por %p6848_p8, %p6847_p9 }
  0x34   : > { %p6843_p6 = pneg %p6842_p7 }
  0x36   : > { %p6850_p0 = pnand %p6849_p11, %p6843_p6 }
  0x38   : > { %6853 = shalt.err (!%p6850_p0)
}
  0x39   : > { %s6931_s27 = smov 64   ;;  %s6932_s21 = smov 4  }
  0x3a   : > { %6248 = dma.hbm_to_vmem [thread:$0]  (!%p7064_p12), %s8858_s11, 4096, %s400_s22, [#allocation6], %s6931_s27, %s6931_s27, %s6932_s21  }
  0x3b   : > { %426 = sbr.rel (%p7056_p10) target bundleno = 4443 (0x115b), region = 72 }
  0x40   : > { %p8908_p1 = scmp.eq.s32.totalorder %s7028_s29, 0 }
  0x42   : > { %6897 = dma.done.wait (%p8908_p1), [#allocation3], 2048   ;;  %p8909_p13 = pmov %p8908_p1 }
  0x43   : > { %p8910_p3 = pmov %p8908_p1 }
  0x44   : > { %6899 = vsyncadd (%p8909_p13), [#allocation3], 4294965248 }
  0x45   : > { %6901 = dma.done.wait (%p8910_p3), [#allocation6], 8192   ;;  %p8911_p2 = pmov %p8908_p1 }
  0x46   : > { %p478_p4 = scmp.lt.s32.totalorder %s7028_s29, 1  ;;  %v6304_v51 = vld [vmem:[%s8849_s2 + $0x38] sm:$0xff]   ;;  %v6305_v60 = vld [vmem:[%s8849_s2 + $0x30] sm:$0xff]   ;;  %vm940_vm0 = vcmask 261120   ;;  %s5368_s15 = sshll.u32 %s7028_s29, 11 }
  0x47   : > { %6903 = vsyncadd (%p8911_p2), [#allocation6], 4294959104  ;;  %5729 = vmatprep.subr.bf16.mxu0 %v6304_v51  ;;  %s8799_s16 = scalar_lea.hbm %s8860_s13, %s5368_s15  ;;  %s6934_s21 = smov [#allocation8]  }
  0x48   : > { %s479_s19 = scalar_select %p478_p4, %s7028_s29, 1  ;;  %5730 = vmatpush3.bf16.msra.mxu0 %v6304_v51 }
  0x49   : > { %5731 = vmatprep.subr.bf16.mxu0 %v6305_v60  ;;  %s6858_s25 = sshll.u32 %s6934_s21, 4  ;;  %s6859_s25 = int_to_ptr.vmem [resolvable:$false] %s6858_s25 }
  0x4a   : > { %s5367_s23 = sshll.u32 %s479_s19, 7  ;;  %s6860_s14 = scalar_lea.vmem %s6859_s25, 4096 }
  0x4b   : > { %s7109_s24 = scalar_lea.vmem %s8847_s0, %s5367_s23  ;;  %s475_s23 = sand.u32 1, %s6914_s26  }
  0x4c   : > { %v484_v0 = vld [vmem:[%s7109_s24] sm:$0xff]  ;;  %v486_v1 = vld [vmem:[%s7109_s24 + $0x10] sm:$0xff]  ;;  %v485_v2 = vld [vmem:[%s7109_s24 + $0x8] sm:$0xff]  ;;  %5732 = vmatpush3.bf16.msra.mxu0 %v6305_v60  ;;  %s5125_s30 = sshll.u32 %s475_s23, 7  ;;  %s8807_s27 = scalar_lea.sflag [#allocation4], %s475_s23 }
  0x4d   : > { %518 = vadd.xlane.f32.xlu0 %v484_v0  ;;  %522 = vadd.xlane.f32.xlu1 %v486_v1  ;;  %v487_v3 = vld [vmem:[%s7109_s24 + $0x18] sm:$0xff]  ;;  %v488_v4 = vld [vmem:[%s7109_s24 + $0x20] sm:$0xff]  ;;  %v489_v5 = vld [vmem:[%s7109_s24 + $0x28] sm:$0xff]  ;;  %s8749_s20 = scalar_lea.vmem [#allocation8], %s5125_s30 }
  0x4e   : > { %v490_v6 = vld [vmem:[%s7109_s24 + $0x30] sm:$0xff]  ;;  %v491_v7 = vld [vmem:[%s7109_s24 + $0x38] sm:$0xff]  ;;  %v492_v8 = vld [vmem:[%s7109_s24 + $0x40] sm:$0xff]  ;;  %s5022_s17 = sshll.u32 %s8749_s20, 4  ;;  %s8801_s17 = int_to_ptr.vmem [resolvable:$true] %s5022_s17 }
  0x4f   : > { %v493_v9 = vld [vmem:[%s7109_s24 + $0x48] sm:$0xff]  ;;  %v7122_v10 = vld [vmem:[%s7109_s24 + $0x50] sm:$0xff]  ;;  %v7125_v11 = vld [vmem:[%s7109_s24 + $0x58] sm:$0xff]  ;;  %s6854_s29 = scalar_lea.vmem %s8801_s17, 2048  ;;  %p6861_p6 = scmp.lt.s32.totalorder %s8801_s17, %s6859_s25 }
  0x50   : > { %v7128_v12 = vld [vmem:[%s7109_s24 + $0x60] sm:$0xff]  ;;  %v7131_v13 = vld [vmem:[%s7109_s24 + $0x68] sm:$0xff]  ;;  %v7136_v14 = vld [vmem:[%s7109_s24 + $0x70] sm:$0xff]  ;;  %p6855_p10 = scmp.ne.s32.totalorder %s8801_s17, %s6854_s29  ;;  %p6862_p9 = scmp.lt.s32.totalorder %s6860_s14, %s6854_s29 }
  0x51   : > { %520 = vadd.xlane.f32.xlu0 %v485_v2  ;;  %524 = vadd.xlane.f32.xlu1 %v487_v3  ;;  %v7139_v15 = vld [vmem:[%s7109_s24 + $0x78] sm:$0xff] }
  0x52   : > { %p6856_p12 = pnand %p6855_p10, %p7045_p5  ;;  %p6863_p8 = por %p6862_p9, %p6861_p6 }
  0x54   : > { %p6857_p7 = pneg %p6856_p12 }
  0x55   : > { %526 = vadd.xlane.f32.xlu0 %v488_v4  ;;  %528 = vadd.xlane.f32.xlu1 %v489_v5 }
  0x56   : > { %p6864_p11 = pnand %p6863_p8, %p6857_p7 }
  0x59   : > { %530 = vadd.xlane.f32.xlu0 %v490_v6  ;;  %532 = vadd.xlane.f32.xlu1 %v491_v7 }
  0x5d   : > { %534 = vadd.xlane.f32.xlu0 %v492_v8  ;;  %536 = vadd.xlane.f32.xlu1 %v493_v9 }
  0x61   : > { %538 = vadd.xlane.f32.xlu0 %v7122_v10  ;;  %540 = vadd.xlane.f32.xlu1 %v7125_v11 }
  0x65   : > { %542 = vadd.xlane.f32.xlu0 %v7128_v12  ;;  %544 = vadd.xlane.f32.xlu1 %v7131_v13 }
  0x69   : > { %546 = vadd.xlane.f32.xlu0 %v7136_v14  ;;  %548 = vadd.xlane.f32.xlu1 %v7139_v15 }
  0xd6   : > { %v519_v16 = vpop.xlane.xlu0 %518  ;;  %v523_v17 = vpop.xlane.xlu1 %522 }
  0xd7   : > { %v551_v18 = vmul.f32 0.0078125, %v519_v16  ;;  %v553_v19 = vmul.f32 0.0078125, %v523_v17 }
  0xd9   : > { %v7145_v20 = vsub.f32 %v484_v0, %v551_v18  ;;  %v7147_v21 = vsub.f32 %v486_v1, %v553_v19  ;;  %v6307_v18 = vld [vmem:[%s8849_s2 + $0x20] sm:$0xff]  }
  0xda   : > { %v521_v22 = vpop.xlane.xlu0 %520  ;;  %v525_v23 = vpop.xlane.xlu1 %524 }
  0xdb   : > { %v552_v24 = vmul.f32 0.0078125, %v521_v22  ;;  %v583_v25 = vmul.f32 %v7145_v20, %v7145_v20  ;;  %v554_v26 = vmul.f32 0.0078125, %v525_v23  ;;  %v585_v27 = vmul.f32 %v7147_v21, %v7147_v21  ;;  %v6308_v23 = vld [vmem:[%s8849_s2 + $0x18] sm:$0xff]  }
  0xdd   : > { %599 = vadd.xlane.f32.xlu0 %v583_v25  ;;  %v7153_v28 = vsub.f32 %v485_v2, %v552_v24  ;;  %v7155_v29 = vsub.f32 %v487_v3, %v554_v26  ;;  %v6311_v25 = vld [vmem:[%s8849_s2] sm:$0xff]  }
  0xde   : > { %v527_v30 = vpop.xlane.xlu0 %526  ;;  %v529_v31 = vpop.xlane.xlu1 %528 }
  0xdf   : > { %v555_v32 = vmul.f32 0.0078125, %v527_v30  ;;  %v584_v33 = vmul.f32 %v7153_v28, %v7153_v28  ;;  %v556_v34 = vmul.f32 0.0078125, %v529_v31  ;;  %v586_v35 = vmul.f32 %v7155_v29, %v7155_v29 }
  0xe1   : > { %603 = vadd.xlane.f32.xlu0 %v585_v27  ;;  %601 = vadd.xlane.f32.xlu1 %v584_v33  ;;  %v7161_v36 = vsub.f32 %v488_v4, %v555_v32  ;;  %v7163_v37 = vsub.f32 %v489_v5, %v556_v34  ;;  %v6306_v5 = vld [vmem:[%s8849_s2 + $0x28] sm:$0xff]  }
  0xe2   : > { %v531_v38 = vpop.xlane.xlu0 %530  ;;  %v533_v39 = vpop.xlane.xlu1 %532  ;;  %5733 = vmatprep.subr.bf16.mxu0 %v6306_v5 }
  0xe3   : > { %v557_v40 = vmul.f32 0.0078125, %v531_v38  ;;  %v587_v41 = vmul.f32 %v7161_v36, %v7161_v36  ;;  %v558_v42 = vmul.f32 0.0078125, %v533_v39  ;;  %v588_v43 = vmul.f32 %v7163_v37, %v7163_v37  ;;  %5734 = vmatpush3.bf16.msra.mxu0 %v6306_v5 }
  0xe4   : > { %5735 = vmatprep.subr.bf16.mxu0 %v6307_v18 }
  0xe5   : > { %605 = vadd.xlane.f32.xlu1 %v586_v35  ;;  %607 = vadd.xlane.f32.xlu0 %v587_v41  ;;  %v7169_v44 = vsub.f32 %v490_v6, %v557_v40  ;;  %v7171_v45 = vsub.f32 %v491_v7, %v558_v42 }
  0xe6   : > { %v535_v46 = vpop.xlane.xlu0 %534  ;;  %v537_v47 = vpop.xlane.xlu1 %536 }
  0xe7   : > { %v559_v48 = vmul.f32 0.0078125, %v535_v46  ;;  %v589_v49 = vmul.f32 %v7169_v44, %v7169_v44  ;;  %v560_v50 = vmul.f32 0.0078125, %v537_v47  ;;  %v590_v52 = vmul.f32 %v7171_v45, %v7171_v45  ;;  %5736 = vmatpush3.bf16.msra.mxu0 %v6307_v18 }
  0xe8   : > { %5737 = vmatprep.subr.bf16.mxu0 %v6308_v23 }
  0xe9   : > { %609 = vadd.xlane.f32.xlu1 %v588_v43  ;;  %611 = vadd.xlane.f32.xlu0 %v589_v49  ;;  %v7180_v53 = vsub.f32 %v492_v8, %v559_v48  ;;  %v7182_v54 = vsub.f32 %v493_v9, %v560_v50 }
  0xea   : > { %v539_v55 = vpop.xlane.xlu0 %538  ;;  %v541_v56 = vpop.xlane.xlu1 %540 }
  0xeb   : > { %v561_v57 = vmul.f32 0.0078125, %v539_v55  ;;  %v591_v58 = vmul.f32 %v7180_v53, %v7180_v53  ;;  %v562_v59 = vmul.f32 0.0078125, %v541_v56  ;;  %v592_v61 = vmul.f32 %v7182_v54, %v7182_v54  ;;  %5738 = vmatpush3.bf16.msra.mxu0 %v6308_v23 }
  0xed   : > { %613 = vadd.xlane.f32.xlu1 %v590_v52  ;;  %615 = vadd.xlane.f32.xlu0 %v591_v58  ;;  %v7192_v62 = vsub.f32 %v7122_v10, %v561_v57  ;;  %v7195_v63 = vsub.f32 %v7125_v11, %v562_v59 }
  0xee   : > { %v543_v0 = vpop.xlane.xlu0 %542  ;;  %v545_v1 = vpop.xlane.xlu1 %544 }
  0xef   : > { %v563_v2 = vmul.f32 0.0078125, %v543_v0  ;;  %v593_v3 = vmul.f32 %v7192_v62, %v7192_v62  ;;  %v564_v4 = vmul.f32 0.0078125, %v545_v1  ;;  %v594_v6 = vmul.f32 %v7195_v63, %v7195_v63  ;;  %v7242_v0 = vld [vmem:[%s8852_s5] ss:$0 sm:$0xff] }
  0xf1   : > { %617 = vadd.xlane.f32.xlu1 %v592_v61  ;;  %619 = vadd.xlane.f32.xlu0 %v593_v3  ;;  %v7205_v7 = vsub.f32 %v7128_v12, %v563_v2  ;;  %v7208_v8 = vsub.f32 %v7131_v13, %v564_v4 }
  0xf2   : > { %v547_v9 = vpop.xlane.xlu0 %546  ;;  %v549_v10 = vpop.xlane.xlu1 %548 }
  0xf3   : > { %v565_v11 = vmul.f32 0.0078125, %v547_v9  ;;  %v595_v16 = vmul.f32 %v7205_v7, %v7205_v7  ;;  %v566_v17 = vmul.f32 0.0078125, %v549_v10  ;;  %v596_v12 = vmul.f32 %v7208_v8, %v7208_v8 }
  0xf5   : > { %621 = vadd.xlane.f32.xlu1 %v594_v6  ;;  %623 = vadd.xlane.f32.xlu0 %v595_v16  ;;  %v7218_v13 = vsub.f32 %v7136_v14, %v565_v11  ;;  %v7221_v19 = vsub.f32 %v7139_v15, %v566_v17  ;;  %v6309_v14 = vld [vmem:[%s8849_s2 + $0x10] sm:$0xff]   ;;  %v6310_v15 = vld [vmem:[%s8849_s2 + $0x8] sm:$0xff]   ;;  %v7249_v17 = vld [vmem:[%s8853_s6] ss:$0 sm:$0xff] }
  0xf6   : > { %5739 = vmatprep.subr.bf16.mxu0 %v6309_v14 }
  0xf7   : > { %v597_v22 = vmul.f32 %v7218_v13, %v7218_v13  ;;  %v598_v24 = vmul.f32 %v7221_v19, %v7221_v19  ;;  %5740 = vmatpush3.bf16.msra.mxu0 %v6309_v14 }
  0xf8   : > { %5741 = vmatprep.subr.bf16.mxu0 %v6310_v15 }
  0xf9   : > { %625 = vadd.xlane.f32.xlu1 %v596_v12  ;;  %627 = vadd.xlane.f32.xlu0 %v597_v22 }
  0xfb   : > { %5742 = vmatpush3.bf16.msra.mxu0 %v6310_v15 }
  0xfc   : > { %5743 = vmatprep.subr.bf16.mxu0 %v6311_v25 }
  0xfd   : > { %629 = vadd.xlane.f32.xlu1 %v598_v24 }
  0xff   : > { %5744 = vmatpush3.bf16.msra.mxu0 %v6311_v25 }
 0x166   : > { %v600_v26 = vpop.xlane.xlu0 %599 }
 0x167   : > { %v631_v27 = vmul.f32 0.0078125, %v600_v26 }
 0x169   : > { %v647_v30 = vadd.f32 1e-05, %v631_v27 }
 0x16a   : > { %v602_v31 = vpop.xlane.xlu1 %601  ;;  %v604_v32 = vpop.xlane.xlu0 %603 }
 0x16b   : > { %6424 = vrsqrt.f32 %v647_v30  ;;  %v632_v33 = vmul.f32 0.0078125, %v602_v31  ;;  %v633_v34 = vmul.f32 0.0078125, %v604_v32 }
 0x16d   : > { %v648_v35 = vadd.f32 1e-05, %v632_v33  ;;  %v649_v38 = vadd.f32 1e-05, %v633_v34 }
 0x16e   : > { %v606_v39 = vpop.xlane.xlu1 %605  ;;  %v608_v40 = vpop.xlane.xlu0 %607 }
 0x16f   : > { %6426 = vrsqrt.f32 %v648_v35  ;;  %v634_v41 = vmul.f32 0.0078125, %v606_v39  ;;  %v635_v42 = vmul.f32 0.0078125, %v608_v40 }
 0x170   : > { %6428 = vrsqrt.f32 %v649_v38 }
 0x171   : > { %v650_v43 = vadd.f32 1e-05, %v634_v41  ;;  %v651_v46 = vadd.f32 1e-05, %v635_v42 }
 0x172   : > { %v610_v47 = vpop.xlane.xlu1 %609  ;;  %v612_v48 = vpop.xlane.xlu0 %611 }
 0x173   : > { %6430 = vrsqrt.f32 %v650_v43  ;;  %v636_v49 = vmul.f32 0.0078125, %v610_v47  ;;  %v637_v50 = vmul.f32 0.0078125, %v612_v48 }
 0x174   : > { %6432 = vrsqrt.f32 %v651_v46 }
 0x175   : > { %v652_v51 = vadd.f32 1e-05, %v636_v49  ;;  %v653_v52 = vadd.f32 1e-05, %v637_v50 }
 0x176   : > { %v614_v55 = vpop.xlane.xlu1 %613  ;;  %v616_v56 = vpop.xlane.xlu0 %615 }
 0x177   : > { %6434 = vrsqrt.f32 %v652_v51  ;;  %v638_v57 = vmul.f32 0.0078125, %v614_v55  ;;  %v639_v58 = vmul.f32 0.0078125, %v616_v56 }
 0x178   : > { %v6425_v59 = vpop.eup %6424  ;;  %6436 = vrsqrt.f32 %v653_v52 }
 0x179   : > { %v654_v60 = vadd.f32 1e-05, %v638_v57  ;;  %v655_v61 = vadd.f32 1e-05, %v639_v58  ;;  %v679_v1 = vmul.f32 %v6425_v59, %v7145_v20 }
 0x17a   : > { %v618_v2 = vpop.xlane.xlu1 %617  ;;  %v620_v3 = vpop.xlane.xlu0 %619 }
 0x17b   : > { %6438 = vrsqrt.f32 %v654_v60  ;;  %v640_v4 = vmul.f32 0.0078125, %v618_v2  ;;  %v641_v5 = vmul.f32 0.0078125, %v620_v3  ;;  %v701_v9 = vmul.f32 %v7242_v0, %v679_v1 }
 0x17c   : > { %v6427_v6 = vpop.eup %6426  ;;  %6440 = vrsqrt.f32 %v655_v61 }
 0x17d   : > { %v6429_v10 = vpop.eup %6428  ;;  %v656_v11 = vadd.f32 1e-05, %v640_v4  ;;  %v657_v16 = vadd.f32 1e-05, %v641_v5  ;;  %v680_v18 = vmul.f32 %v6427_v6, %v7153_v28  ;;  %v723_v25 = vadd.f32 %v7249_v17, %v701_v9 }
 0x17e   : > { %v622_v20 = vpop.xlane.xlu1 %621  ;;  %v624_v12 = vpop.xlane.xlu0 %623  ;;  %v681_v22 = vmul.f32 %v6429_v10, %v7147_v21 }
 0x17f   : > { %6442 = vrsqrt.f32 %v656_v11  ;;  %v642_v23 = vmul.f32 0.0078125, %v622_v20  ;;  %v643_v24 = vmul.f32 0.0078125, %v624_v12  ;;  %v702_v14 = vmul.f32 %v7242_v0, %v680_v18 }
 0x180   : > { %v6431_v15 = vpop.eup %6430  ;;  %6444 = vrsqrt.f32 %v657_v16  ;;  %v703_v21 = vmul.f32 %v7242_v0, %v681_v22 }
 0x181   : > { %v6433_v26 = vpop.eup %6432  ;;  %v658_v27 = vadd.f32 1e-05, %v642_v23  ;;  %v659_v30 = vadd.f32 1e-05, %v643_v24  ;;  %v724_v31 = vadd.f32 %v7249_v17, %v702_v14  ;;  %v682_v28 = vmul.f32 %v6431_v15, %v7155_v29 }
 0x182   : > { %v626_v32 = vpop.xlane.xlu1 %625  ;;  %v628_v33 = vpop.xlane.xlu0 %627  ;;  %v683_v34 = vmul.f32 %v6433_v26, %v7161_v36  ;;  %v725_v36 = vadd.f32 %v7249_v17, %v703_v21 }
 0x183   : > { %6446 = vrsqrt.f32 %v658_v27  ;;  %v644_v35 = vmul.f32 0.0078125, %v626_v32  ;;  %v645_v38 = vmul.f32 0.0078125, %v628_v33  ;;  %v7259_v39 = vpack.c.bf16 %v724_v31, %v723_v25 }
 0x184   : > { %v6435_v40 = vpop.eup %6434  ;;  %6448 = vrsqrt.f32 %v659_v30  ;;  %v704_v41 = vmul.f32 %v7242_v0, %v682_v28  ;;  %v705_v42 = vmul.f32 %v7242_v0, %v683_v34 }
 0x185   : > { %8912 = vst [vmem:[#allocation17_spill] sm:$0xff] %v7259_v39  ;;  %v6437_v43 = vpop.eup %6436  ;;  %v660_v46 = vadd.f32 1e-05, %v644_v35  ;;  %v661_v29 = vadd.f32 1e-05, %v645_v38  ;;  %5745 = vmatprep.mubr.bf16.mxu0 %v7259_v39  ;;  %v684_v47 = vmul.f32 %v6435_v40, %v7163_v37 }
 0x186   : > { %v630_v48 = vpop.xlane.xlu1 %629  ;;  %v726_v49 = vadd.f32 %v7249_v17, %v704_v41  ;;  %v685_v50 = vmul.f32 %v6437_v43, %v7169_v44  ;;  %v727_v57 = vadd.f32 %v7249_v17, %v705_v42 }
 0x187   : > { %6450 = vrsqrt.f32 %v660_v46  ;;  %v646_v51 = vmul.f32 0.0078125, %v630_v48  ;;  %v706_v52 = vmul.f32 %v7242_v0, %v684_v47 }
 0x188   : > { %v6439_v55 = vpop.eup %6438  ;;  %6452 = vrsqrt.f32 %v661_v29  ;;  %v7269_v56 = vpack.c.bf16 %v726_v49, %v725_v36  ;;  %v707_v61 = vmul.f32 %v7242_v0, %v685_v50 }
 0x189   : > { %v6441_v58 = vpop.eup %6440  ;;  %v662_v59 = vadd.f32 1e-05, %v646_v51  ;;  %v728_v37 = vadd.f32 %v7249_v17, %v706_v52  ;;  %v686_v60 = vmul.f32 %v6439_v55, %v7171_v45 }
 0x18a   : > { %8913 = vst [vmem:[#allocation18_spill] sm:$0xff] %v7269_v56  ;;  %5746 = vmatmul.mubr.bf16.vlgmr.msra.gmra.mxu0 %v7269_v56  ;;  %v687_v44 = vmul.f32 %v6441_v58, %v7180_v53  ;;  %v729_v5 = vadd.f32 %v7249_v17, %v707_v61 }
 0x18b   : > { %6454 = vrsqrt.f32 %v662_v59  ;;  %v7277_v1 = vpack.c.bf16 %v728_v37, %v727_v57  ;;  %v708_v2 = vmul.f32 %v7242_v0, %v686_v60 }
 0x18c   : > { %v6443_v3 = vpop.eup %6442  ;;  %v709_v9 = vmul.f32 %v7242_v0, %v687_v44 }
 0x18d   : > { %8914 = vst [vmem:[#allocation19_spill] sm:$0xff] %v7277_v1  ;;  %v6445_v4 = vpop.eup %6444  ;;  %5749 = vmatprep.mubr.bf16.mxu0 %v7277_v1  ;;  %v730_v6 = vadd.f32 %v7249_v17, %v708_v2  ;;  %v688_v45 = vmul.f32 %v6443_v3, %v7182_v54 }
 0x18e   : > { %v689_v10 = vmul.f32 %v6445_v4, %v7192_v62  ;;  %v731_v20 = vadd.f32 %v7249_v17, %v709_v9 }
 0x18f   : > { %v7286_v53 = vpack.c.bf16 %v730_v6, %v729_v5  ;;  %v710_v11 = vmul.f32 %v7242_v0, %v688_v45 }
 0x190   : > { %v6447_v16 = vpop.eup %6446  ;;  %v711_v23 = vmul.f32 %v7242_v0, %v689_v10 }
 0x191   : > { %8915 = vst [vmem:[#allocation20_spill] sm:$0xff] %v7286_v53  ;;  %v6449_v18 = vpop.eup %6448  ;;  %v732_v12 = vadd.f32 %v7249_v17, %v710_v11  ;;  %v690_v22 = vmul.f32 %v6447_v16, %v7195_v63 }
 0x192   : > { %5750 = vmatmul.mubr.bf16.gmra.mxu0 %v7286_v53  ;;  %v691_v54 = vmul.f32 %v6449_v18, %v7205_v7  ;;  %v733_v25 = vadd.f32 %v7249_v17, %v711_v23 }
 0x193   : > { %v7295_v24 = vpack.c.bf16 %v732_v12, %v731_v20  ;;  %v712_v62 = vmul.f32 %v7242_v0, %v690_v22 }
 0x194   : > { %v6451_v14 = vpop.eup %6450  ;;  %v713_v27 = vmul.f32 %v7242_v0, %v691_v54 }
 0x195   : > { %8916 = vst [vmem:[#allocation21_spill] sm:$0xff] %v7295_v24  ;;  %v6453_v15 = vpop.eup %6452  ;;  %5753 = vmatprep.mubr.bf16.mxu0 %v7295_v24  ;;  %v734_v26 = vadd.f32 %v7249_v17, %v712_v62  ;;  %v692_v63 = vmul.f32 %v6451_v14, %v7208_v8 }
 0x196   : > { %v693_v30 = vmul.f32 %v6453_v15, %v7218_v13  ;;  %v735_v32 = vadd.f32 %v7249_v17, %v713_v27 }
 0x197   : > { %v7304_v31 = vpack.c.bf16 %v734_v26, %v733_v25  ;;  %v714_v7 = vmul.f32 %v7242_v0, %v692_v63 }
 0x198   : > { %v6455_v28 = vpop.eup %6454  ;;  %v715_v34 = vmul.f32 %v7242_v0, %v693_v30 }
 0x199   : > { %8917 = vst [vmem:[#allocation22_spill] sm:$0xff] %v7304_v31  ;;  %v736_v33 = vadd.f32 %v7249_v17, %v714_v7  ;;  %v694_v21 = vmul.f32 %v6455_v28, %v7221_v19 }
 0x19a   : > { %5754 = vmatmul.mubr.bf16.gmra.mxu0 %v7304_v31  ;;  %v737_v13 = vadd.f32 %v7249_v17, %v715_v34 }
 0x19b   : > { %v7312_v8 = vpack.c.bf16 %v736_v33, %v735_v32  ;;  %v716_v35 = vmul.f32 %v7242_v0, %v694_v21 }
 0x19d   : > { %8918 = vst [vmem:[#allocation23_spill] sm:$0xff] %v7312_v8  ;;  %5757 = vmatprep.mubr.bf16.mxu0 %v7312_v8  ;;  %v738_v38 = vadd.f32 %v7249_v17, %v716_v35 }
 0x19f   : > { %v7318_v40 = vpack.c.bf16 %v738_v38, %v737_v13 }
 0x1a1   : > { %8919 = vst [vmem:[#allocation24_spill] sm:$0xff] %v7318_v40 }
 0x1a2   : > { %5758 = vmatmul.mubr.bf16.gmra.mxu0 %v7318_v40 }
 0x24a   : > { %v5747_v41 = vpop.f32.mrf.mxu0 }
 0x24b   : > { %v7321_v43 = vmul.f32 0.088388346, %v5747_v41 }
 0x24c   : > { %v845_v19 = vpop.f32.mrf.mxu0 }
 0x24d   : > { %v916_v47 = vmul.f32 0.088388346, %v845_v19 }
 0x24e   : > { %v5748_v42 = vpop.f32.mrf.mxu0 }
 0x24f   : > { %v7323_v46 = vmul.f32 0.088388346, %v5748_v42  ;;  %v909_v14 = vpack.c.bf16 %v5748_v42, %v5747_v41 }
 0x250   : > { %v848_v29 = vpop.f32.mrf.mxu0 }
 0x251   : > { %v933_v0 = vpack.c.bf16 %v7323_v46, %v7321_v43  ;;  %v917_v48 = vmul.f32 0.088388346, %v848_v29  ;;  %v908_v15 = vpack.c.bf16 %v848_v29, %v845_v19  ;;  %v969_v27 = vsel %vm940_vm0, %v909_v14, 0  ;;  %v7397_v19 = vld [vmem:[#allocation2] sm:$0xff]  ;;  %v7402_v46 = vld [vmem:[#allocation2 + $0x10] sm:$0xff] }
 0x252   : > { %v5751_v36 = vpop.f32.mrf.mxu0 }
 0x253   : > { %v932_v49 = vpack.c.bf16 %v917_v48, %v916_v47  ;;  %v7330_v51 = vmul.f32 0.088388346, %v5751_v36  ;;  %v966_v30 = vsel %vm940_vm0, %v908_v15, 0  ;;  %v7404_v47 = vld [vmem:[#allocation2 + $0x8] sm:$0xff] }
 0x254   : > { %v7327_v17 = vpop.f32.mrf.mxu0 }
 0x255   : > { %5777 = vmatprep.mubr.msk.bf16.mxu1 %vm940_vm0, %v932_v49  ;;  %v920_v28 = vmul.f32 0.088388346, %v7327_v17  ;;  %v7413_v49 = vld [vmem:[#allocation2 + $0x18] sm:$0xff] }
 0x256   : > { %v5752_v50 = vpop.f32.mrf.mxu0 }
 0x257   : > { %v7332_v52 = vmul.f32 0.088388346, %v5752_v50  ;;  %v911_v23 = vpack.c.bf16 %v5752_v50, %v5751_v36  ;;  %v7415_v50 = vld [vmem:[#allocation2 + $0x20] sm:$0xff] }
 0x258   : > { %v7334_v55 = vpop.f32.mrf.mxu0 }
 0x259   : > { %v935_v57 = vpack.c.bf16 %v7332_v52, %v7330_v51  ;;  %v910_v54 = vpack.c.bf16 %v7334_v55, %v7327_v17  ;;  %v975_v26 = vsel %vm940_vm0, %v911_v23, 0  ;;  %v921_v7 = vmul.f32 0.088388346, %v7334_v55 }
 0x25a   : > { %v5755_v58 = vpop.f32.mrf.mxu0 }
 0x25b   : > { %v7340_v60 = vmul.f32 0.088388346, %v5755_v58  ;;  %v972_v63 = vsel %vm940_vm0, %v910_v54, 0  ;;  %v934_v32 = vpack.c.bf16 %v921_v7, %v920_v28  ;;  %v7496_v28 = vld [vmem:[%s8849_s2 + $0x78] sm:$0xff]  }
 0x25c   : > { %v7338_v59 = vpop.f32.mrf.mxu0 }
 0x25d   : > { %v924_v21 = vmul.f32 0.088388346, %v7338_v59 }
 0x25e   : > { %v5756_v37 = vpop.f32.mrf.mxu0 }
 0x25f   : > { %v7342_v61 = vmul.f32 0.088388346, %v5756_v37  ;;  %v913_v20 = vpack.c.bf16 %v5756_v37, %v5755_v58 }
 0x260   : > { %v880_v44 = vpop.f32.mrf.mxu0 }
 0x261   : > { %v937_v2 = vpack.c.bf16 %v7342_v61, %v7340_v60  ;;  %v912_v12 = vpack.c.bf16 %v880_v44, %v7338_v59  ;;  %v981_v62 = vsel %vm940_vm0, %v913_v20, 0  ;;  %v925_v33 = vmul.f32 0.088388346, %v880_v44  ;;  %v7427_v59 = vld [vmem:[#allocation2 + $0x28] sm:$0xff]  ;;  %v7437_v44 = vld [vmem:[#allocation2 + $0x38] sm:$0xff] }
 0x262   : > { %v5759_v3 = vpop.f32.mrf.mxu0 }
 0x263   : > { %v7348_v6 = vmul.f32 0.088388346, %v5759_v3  ;;  %v978_v25 = vsel %vm940_vm0, %v912_v12, 0  ;;  %v936_v34 = vpack.c.bf16 %v925_v33, %v924_v21 }
 0x264   : > { %v7346_v4 = vpop.f32.mrf.mxu0 }
 0x265   : > { %v928_v13 = vmul.f32 0.088388346, %v7346_v4 }
 0x266   : > { %v5760_v5 = vpop.f32.mrf.mxu0 }
 0x267   : > { %v915_v45 = vpack.c.bf16 %v5760_v5, %v5759_v3  ;;  %v7350_v9 = vmul.f32 0.088388346, %v5760_v5  ;;  %v7439_v3 = vld [vmem:[#allocation2 + $0x40] sm:$0xff] }
 0x268   : > { %v896_v10 = vpop.f32.mrf.mxu0 }
 0x269   : > { %v939_v11 = vpack.c.bf16 %v7350_v9, %v7348_v6  ;;  %v914_v16 = vpack.c.bf16 %v896_v10, %v7346_v4  ;;  %6193 = vmatprep.subr.msk.bf16.mxu1 %vm940_vm0, %v915_v45  ;;  %5793 = vmatprep.subr.bf16.mxu0 %v915_v45  ;;  %v987_v18 = vsel %vm940_vm0, %v915_v45, 0  ;;  %v929_v35 = vmul.f32 0.088388346, %v896_v10  ;;  %v7451_v10 = vld [vmem:[#allocation2 + $0x48] sm:$0xff] }
 0x26a   : > { %5762 = vmatpush3.bf16.xpose.msra.mxu1 %v987_v18  ;;  %5794 = vmatpush3.bf16.msra.mxu0 %v915_v45  ;;  %v7449_v45 = vld [vmem:[#allocation2 + $0x50] sm:$0xff] }
 0x26b   : > { %6194 = vmatprep.subr.msk.bf16.mxu1 %vm940_vm0, %v914_v16  ;;  %5795 = vmatprep.subr.bf16.mxu0 %v914_v16  ;;  %v984_v22 = vsel %vm940_vm0, %v914_v16, 0  ;;  %v938_v38 = vpack.c.bf16 %v929_v35, %v928_v13 }
 0x26e   : > { %5796 = vmatpush3.bf16.msra.mxu0 %v914_v16 }
 0x26f   : > { %5797 = vmatprep.subr.bf16.mxu0 %v913_v20 }
 0x272   : > { %5764 = vmatpush3.bf16.xpose.msra.mxu1 %v984_v22  ;;  %5798 = vmatpush3.bf16.msra.mxu0 %v913_v20  ;;  %v7463_v22 = vld [vmem:[#allocation2 + $0x60] sm:$0xff] }
 0x273   : > { %6195 = vmatprep.subr.msk.bf16.mxu1 %vm940_vm0, %v913_v20  ;;  %5799 = vmatprep.subr.bf16.mxu0 %v912_v12  ;;  %v7461_v20 = vld [vmem:[#allocation2 + $0x58] sm:$0xff] }
 0x276   : > { %5800 = vmatpush3.bf16.msra.mxu0 %v912_v12 }
 0x277   : > { %5801 = vmatprep.subr.bf16.mxu0 %v911_v23 }
 0x27a   : > { %5766 = vmatpush3.bf16.xpose.msra.mxu1 %v981_v62  ;;  %5802 = vmatpush3.bf16.msra.mxu0 %v911_v23 }
 0x27b   : > { %6196 = vmatprep.subr.msk.bf16.mxu1 %vm940_vm0, %v912_v12  ;;  %5803 = vmatprep.subr.bf16.mxu0 %v910_v54 }
 0x27e   : > { %5804 = vmatpush3.bf16.msra.mxu0 %v910_v54 }
 0x27f   : > { %5805 = vmatprep.subr.bf16.mxu0 %v909_v14 }
 0x282   : > { %5768 = vmatpush3.bf16.xpose.msra.mxu1 %v978_v25  ;;  %5806 = vmatpush3.bf16.msra.mxu0 %v909_v14  ;;  %v7475_v25 = vld [vmem:[#allocation2 + $0x68] sm:$0xff] }
 0x283   : > { %6197 = vmatprep.subr.msk.bf16.mxu1 %vm940_vm0, %v911_v23  ;;  %5807 = vmatprep.subr.bf16.mxu0 %v908_v15 }
 0x286   : > { %5808 = vmatpush3.bf16.msra.mxu0 %v908_v15 }
 0x287   : > { %5825 = vmatprep.subr.bf16.mxu0 %v7496_v28 }
 0x28a   : > { %5770 = vmatpush3.bf16.xpose.msra.mxu1 %v975_v26 }
 0x28b   : > { %6198 = vmatprep.subr.msk.bf16.mxu1 %vm940_vm0, %v910_v54 }
 0x292   : > { %5772 = vmatpush3.bf16.xpose.msra.mxu1 %v972_v63 }
 0x293   : > { %6199 = vmatprep.subr.msk.bf16.mxu1 %vm940_vm0, %v909_v14  ;;  %v7473_v14 = vld [vmem:[#allocation2 + $0x70] sm:$0xff] }
 0x29a   : > { %5774 = vmatpush3.bf16.xpose.msra.mxu1 %v969_v27 }
 0x29b   : > { %6200 = vmatprep.subr.msk.bf16.mxu1 %vm940_vm0, %v908_v15 }
 0x2a2   : > { %5776 = vmatpush3.bf16.xpose.msra.mxu1 %v966_v30  ;;  %v7485_v30 = vld [vmem:[#allocation2 + $0x78] sm:$0xff] }
 0x2a9   : > { %5778 = vmatmul.mubr.msk.bf16.vlgmr.msra.gmra.mxu1 %vm940_vm0, %v933_v0 }
 0x2aa   : > { %5781 = vmatprep.mubr.msk.bf16.mxu1 %vm940_vm0, %v934_v32 }
 0x2b1   : > { %5782 = vmatmul.mubr.msk.bf16.gmra.mxu1 %vm940_vm0, %v935_v57  ;;  %v7425_v57 = vld [vmem:[#allocation2 + $0x30] sm:$0xff] }
 0x2b2   : > { %5785 = vmatprep.mubr.msk.bf16.mxu1 %vm940_vm0, %v936_v34 }
 0x2b9   : > { %5786 = vmatmul.mubr.msk.bf16.gmra.mxu1 %vm940_vm0, %v937_v2 }
 0x2ba   : > { %5789 = vmatprep.mubr.msk.bf16.mxu1 %vm940_vm0, %v938_v38 }
 0x2c1   : > { %5790 = vmatmul.mubr.msk.bf16.gmra.mxu1 %vm940_vm0, %v939_v11 }
 0x369   : > { %v5779_v41 = vpop.f32.mrf.mxu1 }
 0x36a   : > { %v7408_v48 = vadd.f32 %v5779_v41, %v7402_v46 }
 0x36b   : > { %v1023_v42 = vpop.f32.mrf.mxu1 }
 0x36c   : > { %v7400_v43 = vadd.f32 %v1023_v42, %v7397_v19 }
 0x36d   : > { %v5780_v29 = vpop.f32.mrf.mxu1 }
 0x36e   : > { %1086 = vmax.xlane.f32.xlu0 %v7400_v43  ;;  %v7420_v52 = vadd.f32 %v5780_v29, %v7413_v49 }
 0x36f   : > { %v1026_v0 = vpop.f32.mrf.mxu1 }
 0x370   : > { %v7411_v36 = vadd.f32 %v1026_v0, %v7404_v47 }
 0x371   : > { %v5783_v17 = vpop.f32.mrf.mxu1 }
 0x372   : > { %1088 = vmax.xlane.f32.xlu1 %v7411_v36  ;;  %1090 = vmax.xlane.f32.xlu0 %v7408_v48  ;;  %v7432_v60 = vadd.f32 %v5783_v17, %v7425_v57 }
 0x373   : > { %v1039_v51 = vpop.f32.mrf.mxu1 }
 0x374   : > { %v7423_v55 = vadd.f32 %v1039_v51, %v7415_v50 }
 0x375   : > { %v5784_v58 = vpop.f32.mrf.mxu1 }
 0x376   : > { %1092 = vmax.xlane.f32.xlu1 %v7420_v52  ;;  %1094 = vmax.xlane.f32.xlu0 %v7423_v55  ;;  %v7444_v5 = vadd.f32 %v5784_v58, %v7437_v44 }
 0x377   : > { %v1042_v37 = vpop.f32.mrf.mxu1 }
 0x378   : > { %v7435_v61 = vadd.f32 %v1042_v37, %v7427_v59 }
 0x379   : > { %v5787_v2 = vpop.f32.mrf.mxu1 }
 0x37a   : > { %1096 = vmax.xlane.f32.xlu1 %v7435_v61  ;;  %1098 = vmax.xlane.f32.xlu0 %v7432_v60  ;;  %v7456_v16 = vadd.f32 %v5787_v2, %v7449_v45 }
 0x37b   : > { %v1055_v4 = vpop.f32.mrf.mxu1 }
 0x37c   : > { %v7447_v6 = vadd.f32 %v1055_v4, %v7439_v3 }
 0x37d   : > { %v5788_v9 = vpop.f32.mrf.mxu1 }
 0x37e   : > { %1100 = vmax.xlane.f32.xlu1 %v7444_v5  ;;  %1102 = vmax.xlane.f32.xlu0 %v7447_v6  ;;  %v7468_v54 = vadd.f32 %v5788_v9, %v7461_v20 }
 0x37f   : > { %v1058_v11 = vpop.f32.mrf.mxu1 }
 0x380   : > { %v7459_v18 = vadd.f32 %v1058_v11, %v7451_v10 }
 0x381   : > { %v5791_v12 = vpop.f32.mrf.mxu1 }
 0x382   : > { %1104 = vmax.xlane.f32.xlu1 %v7459_v18  ;;  %1106 = vmax.xlane.f32.xlu0 %v7456_v16  ;;  %v7480_v63 = vadd.f32 %v5791_v12, %v7473_v14 }
 0x383   : > { %v1071_v23 = vpop.f32.mrf.mxu1 }
 0x384   : > { %v7471_v62 = vadd.f32 %v1071_v23, %v7463_v22 }
 0x385   : > { %v5792_v15 = vpop.f32.mrf.mxu1 }
 0x386   : > { %1108 = vmax.xlane.f32.xlu1 %v7468_v54  ;;  %1110 = vmax.xlane.f32.xlu0 %v7471_v62  ;;  %v7490_v7 = vadd.f32 %v5792_v15, %v7485_v30 }
 0x387   : > { %v1074_v26 = vpop.f32.mrf.mxu1 }
 0x388   : > { %v7483_v27 = vadd.f32 %v1074_v26, %v7475_v25 }
 0x38a   : > { %1112 = vmax.xlane.f32.xlu1 %v7483_v27  ;;  %1114 = vmax.xlane.f32.xlu0 %v7480_v63 }
 0x38e   : > { %1116 = vmax.xlane.f32.xlu1 %v7490_v7 }
 0x3f7   : > { %v1087_v32 = vpop.xlane.xlu0 %1086 }
 0x3f8   : > { %v1118_v33 = vsub.f32 %v7400_v43, %v1087_v32 }
 0x3fa   : > { %v1134_v21 = vmul.f32 1.442695, %v1118_v33 }
 0x3fb   : > { %v1089_v34 = vpop.xlane.xlu1 %1088  ;;  %v1091_v35 = vpop.xlane.xlu0 %1090 }
 0x3fc   : > { %v1119_v13 = vsub.f32 %v7411_v36, %v1089_v34  ;;  %v1120_v38 = vsub.f32 %v7408_v48, %v1091_v35  ;;  %6456 = vpow2.f32 %v1134_v21 }
 0x3fe   : > { %v1136_v41 = vmul.f32 1.442695, %v1119_v13  ;;  %v1138_v42 = vmul.f32 1.442695, %v1120_v38 }
 0x3ff   : > { %v1093_v29 = vpop.xlane.xlu1 %1092  ;;  %v1095_v0 = vpop.xlane.xlu0 %1094 }
 0x400   : > { %6458 = vpow2.f32 %v1136_v41  ;;  %v1121_v17 = vsub.f32 %v7420_v52, %v1093_v29  ;;  %v1122_v51 = vsub.f32 %v7423_v55, %v1095_v0  ;;  %v6313_v0 = vld [vmem:[%s8849_s2 + $0x70] sm:$0xff]  }
 0x401   : > { %6460 = vpow2.f32 %v1138_v42 }
 0x402   : > { %v1140_v58 = vmul.f32 1.442695, %v1121_v17  ;;  %v1142_v43 = vmul.f32 1.442695, %v1122_v51 }
 0x403   : > { %v1097_v37 = vpop.xlane.xlu1 %1096  ;;  %v1099_v2 = vpop.xlane.xlu0 %1098 }
 0x404   : > { %6462 = vpow2.f32 %v1140_v58  ;;  %v1123_v36 = vsub.f32 %v7435_v61, %v1097_v37  ;;  %v1124_v48 = vsub.f32 %v7432_v60, %v1099_v2 }
 0x405   : > { %6464 = vpow2.f32 %v1142_v43 }
 0x406   : > { %v1144_v4 = vmul.f32 1.442695, %v1123_v36  ;;  %v1146_v9 = vmul.f32 1.442695, %v1124_v48  ;;  %v6314_v48 = vld [vmem:[%s8849_s2 + $0x68] sm:$0xff]  }
 0x407   : > { %v1101_v11 = vpop.xlane.xlu1 %1100  ;;  %v1103_v12 = vpop.xlane.xlu0 %1102 }
 0x408   : > { %6466 = vpow2.f32 %v1144_v4  ;;  %v1125_v52 = vsub.f32 %v7444_v5, %v1101_v11  ;;  %v1126_v55 = vsub.f32 %v7447_v6, %v1103_v12 }
 0x409   : > { %6468 = vpow2.f32 %v1146_v9  ;;  %v7508_v33 = vpop.eup %6456 }
 0x40a   : > { %v1148_v23 = vmul.f32 1.442695, %v1125_v52  ;;  %v1150_v15 = vmul.f32 1.442695, %v1126_v55  ;;  %v6315_v52 = vld [vmem:[%s8849_s2 + $0x60] sm:$0xff]  }
 0x40b   : > { %v1105_v26 = vpop.xlane.xlu1 %1104  ;;  %v1107_v32 = vpop.xlane.xlu0 %1106 }
 0x40c   : > { %6470 = vpow2.f32 %v1148_v23  ;;  %v1127_v60 = vsub.f32 %v7459_v18, %v1105_v26  ;;  %v1128_v61 = vsub.f32 %v7456_v16, %v1107_v32 }
 0x40d   : > { %v7512_v21 = vpop.eup %6458  ;;  %6472 = vpow2.f32 %v1150_v15  ;;  %v6316_v15 = vld [vmem:[%s8849_s2 + $0x58] sm:$0xff]  }
 0x40e   : > { %v1152_v34 = vmul.f32 1.442695, %v1127_v60  ;;  %v1198_v5 = vpack.c.bf16 %v7512_v21, %v7508_v33  ;;  %v1154_v6 = vmul.f32 1.442695, %v1128_v61  ;;  %v7516_v38 = vpop.eup %6460  ;;  %v6317_v61 = vld [vmem:[%s8849_s2 + $0x50] sm:$0xff]  }
 0x40f   : > { %v1109_v35 = vpop.xlane.xlu1 %1108  ;;  %v1111_v13 = vpop.xlane.xlu0 %1110 }
 0x410   : > { %6474 = vpow2.f32 %v1152_v34  ;;  %v1129_v41 = vsub.f32 %v7468_v54, %v1109_v35  ;;  %v1130_v42 = vsub.f32 %v7471_v62, %v1111_v13  ;;  %5809 = vmatprep.mubr.bf16.mxu0 %v1198_v5  ;;  %v6318_v35 = vld [vmem:[%s8849_s2 + $0x48] sm:$0xff]  }
 0x411   : > { %v7520_v18 = vpop.eup %6462  ;;  %6476 = vpow2.f32 %v1154_v6 }
 0x412   : > { %v1156_v16 = vmul.f32 1.442695, %v1129_v41  ;;  %v1199_v29 = vpack.c.bf16 %v7520_v18, %v7516_v38  ;;  %v1158_v17 = vmul.f32 1.442695, %v1130_v42  ;;  %v7527_v43 = vpop.eup %6464 }
 0x413   : > { %v1113_v51 = vpop.xlane.xlu1 %1112  ;;  %v1115_v58 = vpop.xlane.xlu0 %1114 }
 0x414   : > { %6478 = vpow2.f32 %v1156_v16  ;;  %v1131_v54 = vsub.f32 %v7483_v27, %v1113_v51  ;;  %v1132_v62 = vsub.f32 %v7480_v63, %v1115_v58  ;;  %5810 = vmatmul.mubr.bf16.vlgmr.msra.gmra.mxu0 %v1199_v29  ;;  %v6319_v16 = vld [vmem:[%s8849_s2 + $0x40] sm:$0xff]  }
 0x415   : > { %v7531_v37 = vpop.eup %6466  ;;  %5826 = vmatpush3.bf16.msra.mxu0 %v7496_v28  ;;  %6480 = vpow2.f32 %v1158_v17 }
 0x416   : > { %v1160_v2 = vmul.f32 1.442695, %v1131_v54  ;;  %5827 = vmatprep.subr.bf16.mxu0 %v6313_v0  ;;  %v1200_v36 = vpack.c.bf16 %v7531_v37, %v7527_v43  ;;  %v1162_v4 = vmul.f32 1.442695, %v1132_v62  ;;  %v7539_v27 = vpop.eup %6468 }
 0x417   : > { %v1117_v9 = vpop.xlane.xlu1 %1116 }
 0x418   : > { %6482 = vpow2.f32 %v1160_v2  ;;  %v1133_v63 = vsub.f32 %v7490_v7, %v1117_v9  ;;  %5813 = vmatprep.mubr.bf16.mxu0 %v1200_v36 }
 0x419   : > { %v7542_v11 = vpop.eup %6470  ;;  %5828 = vmatpush3.bf16.msra.mxu0 %v6313_v0  ;;  %6484 = vpow2.f32 %v1162_v4 }
 0x41a   : > { %v1164_v28 = vmul.f32 1.442695, %v1133_v63  ;;  %5829 = vmatprep.subr.bf16.mxu0 %v6314_v48  ;;  %v1201_v12 = vpack.c.bf16 %v7542_v11, %v7539_v27  ;;  %v7549_v55 = vpop.eup %6472 }
 0x41c   : > { %6486 = vpow2.f32 %v1164_v28  ;;  %5814 = vmatmul.mubr.bf16.gmra.mxu0 %v1201_v12 }
 0x41d   : > { %v7551_v23 = vpop.eup %6474  ;;  %5830 = vmatpush3.bf16.msra.mxu0 %v6314_v48 }
 0x41e   : > { %5831 = vmatprep.subr.bf16.mxu0 %v6315_v52  ;;  %v1202_v7 = vpack.c.bf16 %v7551_v23, %v7549_v55  ;;  %v7558_v26 = vpop.eup %6476 }
 0x420   : > { %5817 = vmatprep.mubr.bf16.mxu0 %v1202_v7 }
 0x421   : > { %v7560_v32 = vpop.eup %6478  ;;  %5832 = vmatpush3.bf16.msra.mxu0 %v6315_v52 }
 0x422   : > { %5833 = vmatprep.subr.bf16.mxu0 %v6316_v15  ;;  %v1203_v60 = vpack.c.bf16 %v7560_v32, %v7558_v26  ;;  %v7567_v34 = vpop.eup %6480 }
 0x424   : > { %5818 = vmatmul.mubr.bf16.gmra.mxu0 %v1203_v60 }
 0x425   : > { %v7569_v5 = vpop.eup %6482  ;;  %5834 = vmatpush3.bf16.msra.mxu0 %v6316_v15 }
 0x426   : > { %5835 = vmatprep.subr.bf16.mxu0 %v6317_v61  ;;  %v1204_v6 = vpack.c.bf16 %v7569_v5, %v7567_v34  ;;  %v7576_v13 = vpop.eup %6484 }
 0x428   : > { %5821 = vmatprep.mubr.bf16.mxu0 %v1204_v6 }
 0x429   : > { %v7578_v41 = vpop.eup %6486  ;;  %5836 = vmatpush3.bf16.msra.mxu0 %v6317_v61 }
 0x42a   : > { %5837 = vmatprep.subr.bf16.mxu0 %v6318_v35  ;;  %v1205_v42 = vpack.c.bf16 %v7578_v41, %v7576_v13 }
 0x42c   : > { %5822 = vmatmul.mubr.bf16.gmra.mxu0 %v1205_v42 }
 0x42d   : > { %5838 = vmatpush3.bf16.msra.mxu0 %v6318_v35  ;;  %5841 = vmatprep.mubr.bf16.mxu0 %v7259_v39 }
 0x42e   : > { %5839 = vmatprep.subr.bf16.mxu0 %v6319_v16 }
 0x431   : > { %5840 = vmatpush3.bf16.msra.mxu0 %v6319_v16 }
 0x434   : > { %5842 = vmatmul.mubr.bf16.vlgmr.msra.gmra.mxu0 %v7269_v56 }
 0x435   : > { %5845 = vmatprep.mubr.bf16.mxu0 %v7277_v1 }
 0x43c   : > { %5846 = vmatmul.mubr.bf16.gmra.mxu0 %v7286_v53 }
 0x43d   : > { %5849 = vmatprep.mubr.bf16.mxu0 %v7295_v24 }
 0x444   : > { %5850 = vmatmul.mubr.bf16.gmra.mxu0 %v7304_v31 }
 0x445   : > { %5853 = vmatprep.mubr.bf16.mxu0 %v7312_v8 }
 0x44c   : > { %5854 = vmatmul.mubr.bf16.gmra.mxu0 %v7318_v40 }
 0x4d4   : > { %v7593_v29 = vpop.f32.mrf.mxu0 }
 0x4d6   : > { %v7595_v0 = vpop.f32.mrf.mxu0 }
 0x4d8   : > { %v7597_v17 = vpop.f32.mrf.mxu0 }
 0x4d9   : > { %8920 = vst [vmem:[#allocation25_spill] sm:$0xff] %v7597_v17 }
 0x4da   : > { %v7599_v51 = vpop.f32.mrf.mxu0 }
 0x4dc   : > { %v7601_v58 = vpop.f32.mrf.mxu0 }
 0x4dd   : > { %8921 = vst [vmem:[#allocation26_spill] sm:$0xff] %v7601_v58 }
 0x4de   : > { %v7603_v54 = vpop.f32.mrf.mxu0 }
 0x4df   : > { %8922 = vst [vmem:[#allocation27_spill] sm:$0xff] %v7603_v54 }
 0x4e0   : > { %v7605_v62 = vpop.f32.mrf.mxu0 }
 0x4e1   : > { %8923 = vst [vmem:[#allocation28_spill] sm:$0xff] %v7605_v62 }
 0x4e2   : > { %v7607_v2 = vpop.f32.mrf.mxu0 }
 0x4e3   : > { %8924 = vst [vmem:[#allocation29_spill] sm:$0xff] %v7607_v2 }
 0x4e4   : > { %v7609_v36 = vpop.f32.mrf.mxu0 }
 0x4e5   : > { %8925 = vst [vmem:[#allocation30_spill] sm:$0xff] %v7609_v36 }
 0x4e6   : > { %v7611_v48 = vpop.f32.mrf.mxu0 }
 0x4e7   : > { %8926 = vst [vmem:[#allocation31_spill] sm:$0xff] %v7611_v48 }
 0x4e8   : > { %v7613_v4 = vpop.f32.mrf.mxu0 }
 0x4e9   : > { %8927 = vst [vmem:[#allocation32_spill] sm:$0xff] %v7613_v4 }
 0x4ea   : > { %v7615_v9 = vpop.f32.mrf.mxu0 }
 0x4eb   : > { %8928 = vst [vmem:[#allocation33_spill] sm:$0xff] %v7615_v9 }
 0x4ec   : > { %v7617_v63 = vpop.f32.mrf.mxu0 }
 0x4ed   : > { %8929 = vst [vmem:[#allocation34_spill] sm:$0xff] %v7617_v63 }
 0x4ee   : > { %v7619_v28 = vpop.f32.mrf.mxu0 }
 0x4ef   : > { %8930 = vst [vmem:[#allocation35_spill] sm:$0xff] %v7619_v28 }
 0x4f0   : > { %v7621_v12 = vpop.f32.mrf.mxu0 }
 0x4f1   : > { %8931 = vst [vmem:[#allocation36_spill] sm:$0xff] %v7621_v12 }
 0x4f2   : > { %v7623_v52 = vpop.f32.mrf.mxu0 }
 0x4f3   : > { %8932 = vst [vmem:[#allocation37_spill] sm:$0xff] %v7623_v52 }
 0x4f4   : > { %v5843_v7 = vpop.f32.mrf.mxu0 }
 0x4f5   : > { %v7625_v61 = vmul.f32 0.088388346, %v5843_v7 }
 0x4f6   : > { %v1446_v15 = vpop.f32.mrf.mxu0 }
 0x4f7   : > { %v1517_v42 = vmul.f32 0.088388346, %v1446_v15 }
 0x4f8   : > { %v5844_v60 = vpop.f32.mrf.mxu0 }
 0x4f9   : > { %v7627_v6 = vmul.f32 0.088388346, %v5844_v60 }
 0x4fa   : > { %v1449_v35 = vpop.f32.mrf.mxu0 }
 0x4fb   : > { %v1518_v40 = vmul.f32 0.088388346, %v1449_v35 }
 0x4fc   : > { %v5847_v8 = vpop.f32.mrf.mxu0 }
 0x4fd   : > { %v1533_v31 = vpack.c.bf16 %v1518_v40, %v1517_v42  ;;  %v7634_v1 = vmul.f32 0.088388346, %v5847_v8 }
 0x4fe   : > { %v7631_v24 = vpop.f32.mrf.mxu0 }
 0x4ff   : > { %5873 = vmatprep.mubr.msk.bf16.mxu1 %vm940_vm0, %v1533_v31 }
 0x500   : > { %v5848_v53 = vpop.f32.mrf.mxu0 }
 0x501   : > { %v7636_v56 = vmul.f32 0.088388346, %v5848_v53  ;;  %v1512_v2 = vpack.c.bf16 %v5848_v53, %v5847_v8 }
 0x502   : > { %v7638_v39 = vpop.f32.mrf.mxu0 }
 0x503   : > { %v1575_v53 = vsel %vm940_vm0, %v1512_v2, 0 }
 0x504   : > { %v5851_v63 = vpop.f32.mrf.mxu0 }
 0x505   : > { %v7644_v28 = vmul.f32 0.088388346, %v5851_v63 }
 0x506   : > { %v7642_v52 = vpop.f32.mrf.mxu0 }
 0x508   : > { %v5852_v16 = vpop.f32.mrf.mxu0 }
 0x509   : > { %v7646_v40 = vmul.f32 0.088388346, %v5852_v16  ;;  %v1514_v17 = vpack.c.bf16 %v5852_v16, %v5851_v63  ;;  %v1510_v63 = vpack.c.bf16 %v5844_v60, %v5843_v7 }
 0x50a   : > { %v1481_v42 = vpop.f32.mrf.mxu0 }
 0x50c   : > { %v5855_v4 = vpop.f32.mrf.mxu0 }
 0x50d   : > { %v7652_v48 = vmul.f32 0.088388346, %v5855_v4 }
 0x50e   : > { %v7650_v36 = vpop.f32.mrf.mxu0 }
 0x510   : > { %v5856_v9 = vpop.f32.mrf.mxu0 }
 0x511   : > { %v1516_v62 = vpack.c.bf16 %v5856_v9, %v5855_v4  ;;  %v7654_v12 = vmul.f32 0.088388346, %v5856_v9  ;;  %v1513_v4 = vpack.c.bf16 %v1481_v42, %v7642_v52 }
 0x512   : > { %v1497_v58 = vpop.f32.mrf.mxu0 }
 0x513   : > { %v1515_v54 = vpack.c.bf16 %v1497_v58, %v7650_v36  ;;  %6201 = vmatprep.subr.msk.bf16.mxu1 %vm940_vm0, %v1516_v62  ;;  %5889 = vmatprep.subr.bf16.mxu0 %v1516_v62  ;;  %v1587_v31 = vsel %vm940_vm0, %v1516_v62, 0  ;;  %v1578_v16 = vsel %vm940_vm0, %v1513_v4, 0 }
 0x514   : > { %5858 = vmatpush3.bf16.xpose.msra.mxu1 %v1587_v31  ;;  %5890 = vmatpush3.bf16.msra.mxu0 %v1516_v62  ;;  %v1511_v62 = vpack.c.bf16 %v7638_v39, %v7631_v24  ;;  %v1581_v31 = vsel %vm940_vm0, %v1514_v17, 0 }
 0x515   : > { %6202 = vmatprep.subr.msk.bf16.mxu1 %vm940_vm0, %v1515_v54  ;;  %5891 = vmatprep.subr.bf16.mxu0 %v1515_v54  ;;  %v1584_v9 = vsel %vm940_vm0, %v1515_v54, 0 }
 0x516   : > { %v1572_v8 = vsel %vm940_vm0, %v1511_v62, 0 }
 0x518   : > { %5892 = vmatpush3.bf16.msra.mxu0 %v1515_v54  ;;  %v1509_v54 = vpack.c.bf16 %v1449_v35, %v1446_v15  ;;  %v1522_v15 = vmul.f32 0.088388346, %v7638_v39  ;;  %v8933_v35 = vpack.c.bf16 %v7627_v6, %v7625_v61  ;;  %v1530_v39 = vmul.f32 0.088388346, %v1497_v58 }
 0x519   : > { %5893 = vmatprep.subr.bf16.mxu0 %v1514_v17  ;;  %v8935_v61 = vpack.c.bf16 %v7646_v40, %v7644_v28 }
 0x51a   : > { %v1566_v7 = vsel %vm940_vm0, %v1509_v54, 0 }
 0x51c   : > { %5860 = vmatpush3.bf16.xpose.msra.mxu1 %v1584_v9  ;;  %5894 = vmatpush3.bf16.msra.mxu0 %v1514_v17  ;;  %v1525_v9 = vmul.f32 0.088388346, %v7642_v52  ;;  %v8936_v52 = vpack.c.bf16 %v7654_v12, %v7652_v48 }
 0x51d   : > { %6203 = vmatprep.subr.msk.bf16.mxu1 %vm940_vm0, %v1514_v17  ;;  %5895 = vmatprep.subr.bf16.mxu0 %v1513_v4  ;;  %v1569_v17 = vsel %vm940_vm0, %v1510_v63, 0 }
 0x520   : > { %5896 = vmatpush3.bf16.msra.mxu0 %v1513_v4 }
 0x521   : > { %5897 = vmatprep.subr.bf16.mxu0 %v1512_v2 }
 0x524   : > { %5862 = vmatpush3.bf16.xpose.msra.mxu1 %v1581_v31  ;;  %5898 = vmatpush3.bf16.msra.mxu0 %v1512_v2  ;;  %v8934_v31 = vpack.c.bf16 %v7636_v56, %v7634_v1 }
 0x525   : > { %6204 = vmatprep.subr.msk.bf16.mxu1 %vm940_vm0, %v1513_v4  ;;  %5899 = vmatprep.subr.bf16.mxu0 %v1511_v62  ;;  %v1526_v4 = vmul.f32 0.088388346, %v1481_v42 }
 0x528   : > { %5900 = vmatpush3.bf16.msra.mxu0 %v1511_v62 }
 0x529   : > { %5901 = vmatprep.subr.bf16.mxu0 %v1510_v63 }
 0x52c   : > { %5864 = vmatpush3.bf16.xpose.msra.mxu1 %v1578_v16  ;;  %5902 = vmatpush3.bf16.msra.mxu0 %v1510_v63 }
 0x52d   : > { %6205 = vmatprep.subr.msk.bf16.mxu1 %vm940_vm0, %v1512_v2  ;;  %5903 = vmatprep.subr.bf16.mxu0 %v1509_v54  ;;  %v1521_v2 = vmul.f32 0.088388346, %v7631_v24  ;;  %v1529_v24 = vmul.f32 0.088388346, %v7650_v36 }
 0x52f   : > { %v1535_v60 = vpack.c.bf16 %v1522_v15, %v1521_v2 }
 0x530   : > { %5904 = vmatpush3.bf16.msra.mxu0 %v1509_v54 }
 0x534   : > { %5866 = vmatpush3.bf16.xpose.msra.mxu1 %v1575_v53 }
 0x535   : > { %6206 = vmatprep.subr.msk.bf16.mxu1 %vm940_vm0, %v1511_v62  ;;  %v1537_v62 = vpack.c.bf16 %v1526_v4, %v1525_v9 }
 0x53c   : > { %5868 = vmatpush3.bf16.xpose.msra.mxu1 %v1572_v8 }
 0x53d   : > { %6207 = vmatprep.subr.msk.bf16.mxu1 %vm940_vm0, %v1510_v63  ;;  %v1539_v63 = vpack.c.bf16 %v1530_v39, %v1529_v24 }
 0x544   : > { %5870 = vmatpush3.bf16.xpose.msra.mxu1 %v1569_v17 }
 0x545   : > { %6208 = vmatprep.subr.msk.bf16.mxu1 %vm940_vm0, %v1509_v54 }
 0x54c   : > { %5872 = vmatpush3.bf16.xpose.msra.mxu1 %v1566_v7 }
 0x553   : > { %5874 = vmatmul.mubr.msk.bf16.vlgmr.msra.gmra.mxu1 %vm940_vm0, %v8933_v35 }
 0x554   : > { %5877 = vmatprep.mubr.msk.bf16.mxu1 %vm940_vm0, %v1535_v60 }
 0x55b   : > { %5878 = vmatmul.mubr.msk.bf16.gmra.mxu1 %vm940_vm0, %v8934_v31 }
 0x55c   : > { %5881 = vmatprep.mubr.msk.bf16.mxu1 %vm940_vm0, %v1537_v62 }
 0x563   : > { %5882 = vmatmul.mubr.msk.bf16.gmra.mxu1 %vm940_vm0, %v8935_v61 }
 0x564   : > { %5885 = vmatprep.mubr.msk.bf16.mxu1 %vm940_vm0, %v1539_v63 }
 0x56b   : > { %5886 = vmatmul.mubr.msk.bf16.gmra.mxu1 %vm940_vm0, %v8936_v52 }
 0x613   : > { %v5875_v56 = vpop.f32.mrf.mxu1 }
 0x614   : > { %v1632_v42 = vadd.f32 %v5875_v56, %v7402_v46 }
 0x615   : > { %v1623_v1 = vpop.f32.mrf.mxu1 }
 0x616   : > { %v1624_v6 = vadd.f32 %v1623_v1, %v7397_v19 }
 0x617   : > { %v5876_v58 = vpop.f32.mrf.mxu1 }
 0x618   : > { %1686 = vmax.xlane.f32.xlu0 %v1624_v6  ;;  %v1635_v16 = vadd.f32 %v5876_v58, %v7413_v49 }
 0x619   : > { %v1626_v36 = vpop.f32.mrf.mxu1 }
 0x61a   : > { %v1627_v28 = vadd.f32 %v1626_v36, %v7404_v47 }
 0x61b   : > { %v5879_v40 = vpop.f32.mrf.mxu1 }
 0x61c   : > { %1688 = vmax.xlane.f32.xlu1 %v1627_v28  ;;  %1690 = vmax.xlane.f32.xlu0 %v1632_v42  ;;  %v1648_v19 = vadd.f32 %v5879_v40, %v7425_v57 }
 0x61d   : > { %v1639_v54 = vpop.f32.mrf.mxu1 }
 0x61e   : > { %v1640_v48 = vadd.f32 %v1639_v54, %v7415_v50 }
 0x61f   : > { %v5880_v12 = vpop.f32.mrf.mxu1 }
 0x620   : > { %1692 = vmax.xlane.f32.xlu1 %v1635_v16  ;;  %1694 = vmax.xlane.f32.xlu0 %v1640_v48  ;;  %v1651_v47 = vadd.f32 %v5880_v12, %v7437_v44 }
 0x621   : > { %v1642_v53 = vpop.f32.mrf.mxu1 }
 0x622   : > { %v1643_v8 = vadd.f32 %v1642_v53, %v7427_v59 }
 0x623   : > { %v5883_v17 = vpop.f32.mrf.mxu1 }
 0x624   : > { %1696 = vmax.xlane.f32.xlu1 %v1643_v8  ;;  %1698 = vmax.xlane.f32.xlu0 %v1648_v19  ;;  %v7711_v50 = vadd.f32 %v5883_v17, %v7449_v45 }
 0x625   : > { %v1655_v46 = vpop.f32.mrf.mxu1 }
 0x626   : > { %v1656_v7 = vadd.f32 %v1655_v46, %v7439_v3 }
 0x627   : > { %v5884_v15 = vpop.f32.mrf.mxu1 }
 0x628   : > { %1700 = vmax.xlane.f32.xlu1 %v1651_v47  ;;  %1702 = vmax.xlane.f32.xlu0 %v1656_v7  ;;  %v7716_v60 = vadd.f32 %v5884_v15, %v7461_v20 }
 0x629   : > { %v1658_v49 = vpop.f32.mrf.mxu1 }
 0x62a   : > { %v1659_v2 = vadd.f32 %v1658_v49, %v7451_v10 }
 0x62b   : > { %v5887_v57 = vpop.f32.mrf.mxu1 }
 0x62c   : > { %1704 = vmax.xlane.f32.xlu1 %v1659_v2  ;;  %1706 = vmax.xlane.f32.xlu0 %v7711_v50  ;;  %v7724_v35 = vadd.f32 %v5887_v57, %v7473_v14 }
 0x62d   : > { %v1671_v59 = vpop.f32.mrf.mxu1 }
 0x62e   : > { %v7719_v44 = vadd.f32 %v1671_v59, %v7463_v22 }
 0x62f   : > { %v5888_v3 = vpop.f32.mrf.mxu1 }
 0x630   : > { %1708 = vmax.xlane.f32.xlu1 %v7716_v60  ;;  %1710 = vmax.xlane.f32.xlu0 %v7719_v44  ;;  %v7732_v20 = vadd.f32 %v5888_v3, %v7485_v30 }
 0x631   : > { %v1674_v45 = vpop.f32.mrf.mxu1 }
 0x632   : > { %v7727_v10 = vadd.f32 %v1674_v45, %v7475_v25 }
 0x634   : > { %1712 = vmax.xlane.f32.xlu1 %v7727_v10  ;;  %1714 = vmax.xlane.f32.xlu0 %v7724_v35 }
 0x638   : > { %1716 = vmax.xlane.f32.xlu1 %v7732_v20 }
 0x6a1   : > { %v1687_v22 = vpop.xlane.xlu0 %1686 }
 0x6a2   : > { %v1718_v4 = vsub.f32 %v1624_v6, %v1687_v22 }
 0x6a4   : > { %v1734_v9 = vmul.f32 1.442695, %v1718_v4 }
 0x6a5   : > { %v1689_v62 = vpop.xlane.xlu1 %1688  ;;  %v1691_v31 = vpop.xlane.xlu0 %1690 }
 0x6a6   : > { %6488 = vpow2.f32 %v1734_v9  ;;  %v1719_v14 = vsub.f32 %v1627_v28, %v1689_v62  ;;  %v1720_v39 = vsub.f32 %v1632_v42, %v1691_v31 }
 0x6a8   : > { %v1736_v24 = vmul.f32 1.442695, %v1719_v14  ;;  %v1738_v25 = vmul.f32 1.442695, %v1720_v39 }
 0x6a9   : > { %v1693_v63 = vpop.xlane.xlu1 %1692  ;;  %v1695_v61 = vpop.xlane.xlu0 %1694 }
 0x6aa   : > { %6490 = vpow2.f32 %v1736_v24  ;;  %v1721_v52 = vsub.f32 %v1635_v16, %v1693_v63  ;;  %v1722_v56 = vsub.f32 %v1640_v48, %v1695_v61 }
 0x6ab   : > { %6492 = vpow2.f32 %v1738_v25 }
 0x6ac   : > { %v1740_v30 = vmul.f32 1.442695, %v1721_v52  ;;  %v1742_v1 = vmul.f32 1.442695, %v1722_v56 }
 0x6ad   : > { %v1697_v58 = vpop.xlane.xlu1 %1696  ;;  %v1699_v36 = vpop.xlane.xlu0 %1698 }
 0x6ae   : > { %6494 = vpow2.f32 %v1740_v30  ;;  %v1723_v6 = vsub.f32 %v1643_v8, %v1697_v58  ;;  %v1724_v40 = vsub.f32 %v1648_v19, %v1699_v36 }
 0x6af   : > { %6496 = vpow2.f32 %v1742_v1 }
 0x6b0   : > { %v1744_v54 = vmul.f32 1.442695, %v1723_v6  ;;  %v1746_v12 = vmul.f32 1.442695, %v1724_v40 }
 0x6b1   : > { %v1701_v28 = vpop.xlane.xlu1 %1700  ;;  %v1703_v42 = vpop.xlane.xlu0 %1702 }
 0x6b2   : > { %6498 = vpow2.f32 %v1744_v54  ;;  %v1725_v53 = vsub.f32 %v1651_v47, %v1701_v28  ;;  %v1726_v17 = vsub.f32 %v1656_v7, %v1703_v42 }
 0x6b3   : > { %v6489_v46 = vpop.eup %6488  ;;  %6500 = vpow2.f32 %v1746_v12 }
 0x6b4   : > { %v1748_v16 = vmul.f32 1.442695, %v1725_v53  ;;  %v1750_v48 = vmul.f32 1.442695, %v1726_v17  ;;  %1766 = vadd.xlane.f32.xlu0 %v6489_v46 }
 0x6b5   : > { %v1705_v15 = vpop.xlane.xlu1 %1704  ;;  %v1707_v49 = vpop.xlane.xlu0 %1706 }
 0x6b6   : > { %6502 = vpow2.f32 %v1748_v16  ;;  %v1727_v57 = vsub.f32 %v1659_v2, %v1705_v15  ;;  %v1728_v8 = vsub.f32 %v7711_v50, %v1707_v49 }
 0x6b7   : > { %v6491_v19 = vpop.eup %6490  ;;  %6504 = vpow2.f32 %v1750_v48 }
 0x6b8   : > { %v6493_v59 = vpop.eup %6492  ;;  %v1752_v3 = vmul.f32 1.442695, %v1727_v57  ;;  %v1754_v45 = vmul.f32 1.442695, %v1728_v8  ;;  %1768 = vadd.xlane.f32.xlu1 %v6491_v19  ;;  %v1798_v22 = vpack.c.bf16 %v6491_v19, %v6489_v46 }
 0x6b9   : > { %1770 = vadd.xlane.f32.xlu0 %v6493_v59  ;;  %v1709_v47 = vpop.xlane.xlu1 %1708  ;;  %v1711_v7 = vpop.xlane.xlu0 %1710 }
 0x6ba   : > { %6506 = vpow2.f32 %v1752_v3  ;;  %v1729_v4 = vsub.f32 %v7716_v60, %v1709_v47  ;;  %v1730_v9 = vsub.f32 %v7719_v44, %v1711_v7  ;;  %5905 = vmatprep.mubr.bf16.mxu0 %v1798_v22 }
 0x6bb   : > { %v6495_v62 = vpop.eup %6494  ;;  %6508 = vpow2.f32 %v1754_v45 }
 0x6bc   : > { %v6497_v2 = vpop.eup %6496  ;;  %v1756_v50 = vmul.f32 1.442695, %v1729_v4  ;;  %v1758_v31 = vmul.f32 1.442695, %v1730_v9  ;;  %1772 = vadd.xlane.f32.xlu1 %v6495_v62  ;;  %v1799_v14 = vpack.c.bf16 %v6495_v62, %v6493_v59 }
 0x6bd   : > { %1774 = vadd.xlane.f32.xlu0 %v6497_v2  ;;  %v1713_v39 = vpop.xlane.xlu1 %1712  ;;  %v1715_v24 = vpop.xlane.xlu0 %1714 }
 0x6be   : > { %6510 = vpow2.f32 %v1756_v50  ;;  %v1731_v25 = vsub.f32 %v7727_v10, %v1713_v39  ;;  %v1732_v63 = vsub.f32 %v7724_v35, %v1715_v24  ;;  %5906 = vmatmul.mubr.bf16.vlgmr.msra.gmra.mxu0 %v1799_v14 }
 0x6bf   : > { %v6499_v60 = vpop.eup %6498  ;;  %6512 = vpow2.f32 %v1758_v31 }
 0x6c0   : > { %v6501_v44 = vpop.eup %6500  ;;  %v1760_v61 = vmul.f32 1.442695, %v1731_v25  ;;  %v1762_v52 = vmul.f32 1.442695, %v1732_v63  ;;  %1776 = vadd.xlane.f32.xlu1 %v6499_v60  ;;  %v1800_v56 = vpack.c.bf16 %v6499_v60, %v6497_v2 }
 0x6c1   : > { %1778 = vadd.xlane.f32.xlu0 %v6501_v44  ;;  %v1717_v30 = vpop.xlane.xlu1 %1716 }
 0x6c2   : > { %6514 = vpow2.f32 %v1760_v61  ;;  %v1733_v1 = vsub.f32 %v7732_v20, %v1717_v30  ;;  %5909 = vmatprep.mubr.bf16.mxu0 %v1800_v56 }
 0x6c3   : > { %v6503_v58 = vpop.eup %6502  ;;  %6516 = vpow2.f32 %v1762_v52 }
 0x6c4   : > { %v6505_v36 = vpop.eup %6504  ;;  %v1764_v10 = vmul.f32 1.442695, %v1733_v1  ;;  %1780 = vadd.xlane.f32.xlu1 %v6503_v58  ;;  %v1801_v35 = vpack.c.bf16 %v6503_v58, %v6501_v44  ;;  %v8937_v44 = vld [vmem:[#allocation25_spill] sm:$0xff]  ;;  %v8938_v1 = vld [vmem:[#allocation27_spill] sm:$0xff] }
 0x6c5   : > { %1782 = vadd.xlane.f32.xlu0 %v6505_v36 }
 0x6c6   : > { %6518 = vpow2.f32 %v1764_v10  ;;  %5910 = vmatmul.mubr.bf16.gmra.mxu0 %v1801_v35 }
 0x6c7   : > { %v6507_v6 = vpop.eup %6506 }
 0x6c8   : > { %v6509_v40 = vpop.eup %6508  ;;  %1784 = vadd.xlane.f32.xlu1 %v6507_v6  ;;  %v1802_v54 = vpack.c.bf16 %v6507_v6, %v6505_v36  ;;  %v8939_v36 = vld [vmem:[#allocation29_spill] sm:$0xff] }
 0x6c9   : > { %1786 = vadd.xlane.f32.xlu0 %v6509_v40 }
 0x6ca   : > { %5913 = vmatprep.mubr.bf16.mxu0 %v1802_v54 }
 0x6cb   : > { %v6511_v12 = vpop.eup %6510 }
 0x6cc   : > { %v6513_v28 = vpop.eup %6512  ;;  %1788 = vadd.xlane.f32.xlu1 %v6511_v12  ;;  %v1803_v20 = vpack.c.bf16 %v6511_v12, %v6509_v40  ;;  %v8940_v12 = vld [vmem:[#allocation26_spill] sm:$0xff] }
 0x6cd   : > { %1790 = vadd.xlane.f32.xlu0 %v6513_v28 }
 0x6ce   : > { %5914 = vmatmul.mubr.bf16.gmra.mxu0 %v1803_v20  ;;  %v8941_v20 = vld [vmem:[#allocation28_spill] sm:$0xff] }
 0x6cf   : > { %v6515_v42 = vpop.eup %6514 }
 0x6d0   : > { %v6517_v53 = vpop.eup %6516  ;;  %1792 = vadd.xlane.f32.xlu1 %v6515_v42  ;;  %v1804_v17 = vpack.c.bf16 %v6515_v42, %v6513_v28 }
 0x6d1   : > { %1794 = vadd.xlane.f32.xlu0 %v6517_v53 }
 0x6d2   : > { %5917 = vmatprep.mubr.bf16.mxu0 %v1804_v17 }
 0x6d3   : > { %v6519_v46 = vpop.eup %6518 }
 0x6d4   : > { %1796 = vadd.xlane.f32.xlu1 %v6519_v46  ;;  %v1805_v16 = vpack.c.bf16 %v6519_v46, %v6517_v53 }
 0x6d5   : > { %1166 = vadd.xlane.f32.xlu0 %v7508_v33  ;;  %v6321_v33 = vld [vmem:[%s8850_s3 + $0x8] sm:$0xff]  }
 0x6d6   : > { %5918 = vmatmul.mubr.bf16.gmra.mxu0 %v1805_v16  ;;  %5941 = vmatprep.subr.bf16.mxu1 %v6321_v33 }
 0x6d7   : > { %5942 = vmatpush3.bf16.msra.mxu1 %v6321_v33 }
 0x6d8   : > { %1168 = vadd.xlane.f32.xlu1 %v7512_v21  ;;  %v6322_v21 = vld [vmem:[%s8850_s3] sm:$0xff]  }
 0x6d9   : > { %1170 = vadd.xlane.f32.xlu0 %v7516_v38  ;;  %v6320_v38 = vld [vmem:[%s8850_s3 + $0x18] sm:$0xff]   ;;  %5943 = vmatprep.subr.bf16.mxu1 %v6322_v21 }
 0x6da   : > { %5921 = vmatprep.subr.bf16.mxu0 %v6320_v38 }
 0x6db   : > { %5944 = vmatpush3.bf16.msra.mxu1 %v6322_v21  ;;  %5922 = vmatpush3.bf16.msra.mxu0 %v6320_v38 }
 0x6dc   : > { %1172 = vadd.xlane.f32.xlu1 %v7520_v18  ;;  %v6323_v18 = vld [vmem:[%s8850_s3 + $0x10] sm:$0xff]  }
 0x6dd   : > { %1174 = vadd.xlane.f32.xlu0 %v7527_v43  ;;  %5923 = vmatprep.subr.bf16.mxu0 %v6323_v18  ;;  %v7772_v43 = vld [vmem:[%s8849_s2 + $0xb8] sm:$0xff]  }
 0x6df   : > { %5924 = vmatpush3.bf16.msra.mxu0 %v6323_v18 }
 0x6e0   : > { %1176 = vadd.xlane.f32.xlu1 %v7531_v37  ;;  %5961 = vmatprep.subr.bf16.mxu0 %v7772_v43 }
 0x6e1   : > { %1178 = vadd.xlane.f32.xlu0 %v7539_v27 }
 0x6e4   : > { %1180 = vadd.xlane.f32.xlu1 %v7542_v11 }
 0x6e5   : > { %1182 = vadd.xlane.f32.xlu0 %v7549_v55 }
 0x6e8   : > { %1184 = vadd.xlane.f32.xlu1 %v7551_v23 }
 0x6e9   : > { %1186 = vadd.xlane.f32.xlu0 %v7558_v26 }
 0x6ec   : > { %1188 = vadd.xlane.f32.xlu1 %v7560_v32 }
 0x6ed   : > { %1190 = vadd.xlane.f32.xlu0 %v7567_v34 }
 0x6f0   : > { %1192 = vadd.xlane.f32.xlu1 %v7569_v5 }
 0x6f1   : > { %1194 = vadd.xlane.f32.xlu0 %v7576_v13 }
 0x6f4   : > { %1196 = vadd.xlane.f32.xlu1 %v7578_v41 }
 0x73d   : > { %v1767_v37 = vpop.xlane.xlu0 %1766 }
 0x741   : > { %v1769_v27 = vpop.xlane.xlu1 %1768 }
 0x742   : > { %v1771_v11 = vpop.xlane.xlu0 %1770 }
 0x745   : > { %v1773_v55 = vpop.xlane.xlu1 %1772 }
 0x746   : > { %v7775_v23 = vpop.xlane.xlu0 %1774 }
 0x749   : > { %v7777_v26 = vpop.xlane.xlu1 %1776 }
 0x74a   : > { %v7779_v32 = vpop.xlane.xlu0 %1778 }
 0x74d   : > { %v7781_v34 = vpop.xlane.xlu1 %1780 }
 0x74e   : > { %v7783_v5 = vpop.xlane.xlu0 %1782 }
 0x751   : > { %v7785_v13 = vpop.xlane.xlu1 %1784 }
 0x752   : > { %v7787_v41 = vpop.xlane.xlu0 %1786 }
 0x755   : > { %v7789_v48 = vpop.xlane.xlu1 %1788 }
 0x756   : > { %v7791_v15 = vpop.xlane.xlu0 %1790 }
 0x759   : > { %v7793_v49 = vpop.xlane.xlu1 %1792 }
 0x75a   : > { %v7795_v57 = vpop.xlane.xlu0 %1794 }
 0x75d   : > { %v7797_v8 = vpop.xlane.xlu1 %1796 }
 0x75e   : > { %v1167_v19 = vpop.xlane.xlu0 %1166 }
 0x75f   : > { %6520 = vrcp.f32 %v1167_v19 }
 0x761   : > { %v1169_v59 = vpop.xlane.xlu1 %1168 }
 0x762   : > { %6522 = vrcp.f32 %v1169_v59  ;;  %v1171_v3 = vpop.xlane.xlu0 %1170 }
 0x763   : > { %6524 = vrcp.f32 %v1171_v3 }
 0x765   : > { %v1173_v45 = vpop.xlane.xlu1 %1172 }
 0x766   : > { %6526 = vrcp.f32 %v1173_v45  ;;  %v1175_v22 = vpop.xlane.xlu0 %1174 }
 0x767   : > { %6528 = vrcp.f32 %v1175_v22 }
 0x769   : > { %v1177_v47 = vpop.xlane.xlu1 %1176 }
 0x76a   : > { %6530 = vrcp.f32 %v1177_v47  ;;  %v1179_v7 = vpop.xlane.xlu0 %1178 }
 0x76b   : > { %6532 = vrcp.f32 %v1179_v7 }
 0x76c   : > { %v6521_v4 = vpop.eup %6520 }
 0x76d   : > { %v1181_v9 = vpop.xlane.xlu1 %1180  ;;  %v1319_v50 = vmul.f32 %v6521_v4, %v7595_v0 }
 0x76e   : > { %6534 = vrcp.f32 %v1181_v9  ;;  %v1183_v62 = vpop.xlane.xlu0 %1182 }
 0x76f   : > { %v6523_v2 = vpop.eup %6522  ;;  %6536 = vrcp.f32 %v1183_v62 }
 0x770   : > { %v1320_v31 = vmul.f32 %v6523_v2, %v7599_v51  ;;  %v6525_v14 = vpop.eup %6524  ;;  %6538 = vrcp.f32 %v1767_v37  ;;  %v8942_v37 = vld [vmem:[#allocation31_spill] sm:$0xff] }
 0x771   : > { %v1185_v39 = vpop.xlane.xlu1 %1184  ;;  %v1321_v60 = vmul.f32 %v6525_v14, %v7593_v29 }
 0x772   : > { %6540 = vrcp.f32 %v1185_v39  ;;  %v1187_v24 = vpop.xlane.xlu0 %1186  ;;  %v1335_v25 = vpack.c.bf16 %v1320_v31, %v1319_v50 }
 0x773   : > { %v6527_v63 = vpop.eup %6526  ;;  %6542 = vrcp.f32 %v1769_v27 }
 0x774   : > { %v1322_v61 = vmul.f32 %v6527_v63, %v8937_v44  ;;  %6544 = vrcp.f32 %v1187_v24  ;;  %5945 = vmatprep.mubr.msk.bf16.mxu1 %vm940_vm0, %v1335_v25  ;;  %v6529_v52 = vpop.eup %6528  ;;  %v8946_v44 = vld [vmem:[#allocation35_spill] sm:$0xff] }
 0x775   : > { %6546 = vrcp.f32 %v1773_v55  ;;  %v1189_v0 = vpop.xlane.xlu1 %1188  ;;  %v1323_v58 = vmul.f32 %v6529_v52, %v8938_v1 }
 0x776   : > { %6548 = vrcp.f32 %v1189_v0  ;;  %v1191_v51 = vpop.xlane.xlu0 %1190  ;;  %v1336_v56 = vpack.c.bf16 %v1322_v61, %v1321_v60  ;;  %v8947_v61 = vld [vmem:[#allocation37_spill] sm:$0xff] }
 0x777   : > { %v6531_v30 = vpop.eup %6530  ;;  %6550 = vrcp.f32 %v1771_v11  ;;  %v8943_v11 = vld [vmem:[#allocation33_spill] sm:$0xff] }
 0x778   : > { %6552 = vrcp.f32 %v1191_v51  ;;  %5946 = vmatmul.mubr.msk.bf16.vlgmr.msra.gmra.mxu1 %vm940_vm0, %v1336_v56  ;;  %v1324_v29 = vmul.f32 %v6531_v30, %v8939_v36  ;;  %v6533_v10 = vpop.eup %6532  ;;  %v8948_v36 = vld [vmem:[#allocation34_spill] sm:$0xff] }
 0x779   : > { %v1193_v35 = vpop.xlane.xlu1 %1192  ;;  %v1325_v28 = vmul.f32 %v6533_v10, %v8940_v12  ;;  %v8949_v10 = vld [vmem:[#allocation36_spill] sm:$0xff] }
 0x77a   : > { %6554 = vrcp.f32 %v1193_v35  ;;  %v1195_v6 = vpop.xlane.xlu0 %1194  ;;  %v1337_v40 = vpack.c.bf16 %v1324_v29, %v1323_v58 }
 0x77b   : > { %v6535_v54 = vpop.eup %6534  ;;  %6556 = vrcp.f32 %v7775_v23 }
 0x77c   : > { %6558 = vrcp.f32 %v1195_v6  ;;  %5949 = vmatprep.mubr.msk.bf16.mxu1 %vm940_vm0, %v1337_v40  ;;  %v1326_v42 = vmul.f32 %v6535_v54, %v8941_v20  ;;  %v6537_v53 = vpop.eup %6536  ;;  %v6326_v6 = vld [vmem:[%s8849_s2 + $0xa8] sm:$0xff]  }
 0x77d   : > { %6560 = vrcp.f32 %v7781_v34  ;;  %v1197_v17 = vpop.xlane.xlu1 %1196  ;;  %v6539_v46 = vpop.eup %6538  ;;  %v1327_v27 = vmul.f32 %v6537_v53, %v8942_v37 }
 0x77e   : > { %6562 = vrcp.f32 %v1197_v17  ;;  %v5907_v16 = vpop.f32.mrf.mxu0  ;;  %v1338_v33 = vpack.c.bf16 %v1326_v42, %v1325_v28 }
 0x77f   : > { %v6541_v21 = vpop.eup %6540  ;;  %6564 = vrcp.f32 %v7777_v26  ;;  %v8944_v26 = vld [vmem:[#allocation30_spill] sm:$0xff] }
 0x780   : > { %v6543_v38 = vpop.eup %6542  ;;  %6566 = vrcp.f32 %v7779_v32  ;;  %v1840_v18 = vpop.f32.mrf.mxu0  ;;  %5950 = vmatmul.mubr.msk.bf16.gmra.mxu1 %vm940_vm0, %v1338_v33  ;;  %v1328_v55 = vmul.f32 %v6541_v21, %v8943_v11  ;;  %v8945_v32 = vld [vmem:[#allocation32_spill] sm:$0xff] }
 0x781   : > { %v6545_v23 = vpop.eup %6544  ;;  %6568 = vrcp.f32 %v7783_v5  ;;  %v1919_v62 = vmul.f32 %v6539_v46, %v1840_v18  ;;  %v6328_v21 = vld [vmem:[%s8849_s2 + $0x98] sm:$0xff]  }
 0x782   : > { %v6547_v34 = vpop.eup %6546  ;;  %v5908_v19 = vpop.f32.mrf.mxu0  ;;  %v1339_v59 = vpack.c.bf16 %v1328_v55, %v1327_v27  ;;  %v1329_v7 = vmul.f32 %v6545_v23, %v8944_v26  ;;  %6570 = vrcp.f32 %v7789_v48  ;;  %v6325_v48 = vld [vmem:[%s8849_s2 + $0xb0] sm:$0xff]  }
 0x783   : > { %v6549_v3 = vpop.eup %6548  ;;  %v1922_v22 = vmul.f32 %v6547_v34, %v5908_v19  ;;  %6572 = vrcp.f32 %v7785_v13  ;;  %v6329_v19 = vld [vmem:[%s8849_s2 + $0x90] sm:$0xff]  }
 0x784   : > { %v6551_v45 = vpop.eup %6550  ;;  %v1843_v47 = vpop.f32.mrf.mxu0  ;;  %5953 = vmatprep.mubr.msk.bf16.mxu1 %vm940_vm0, %v1339_v59  ;;  %v1330_v4 = vmul.f32 %v6549_v3, %v8945_v32  ;;  %6574 = vrcp.f32 %v7787_v41 }
 0x785   : > { %v6553_v9 = vpop.eup %6552  ;;  %v1920_v2 = vmul.f32 %v6543_v38, %v1843_v47  ;;  %v1921_v50 = vmul.f32 %v6551_v45, %v5907_v16  ;;  %6576 = vrcp.f32 %v7791_v15  ;;  %v6327_v15 = vld [vmem:[%s8849_s2 + $0xa0] sm:$0xff]  }
 0x786   : > { %v5911_v31 = vpop.f32.mrf.mxu0  ;;  %v1340_v14 = vpack.c.bf16 %v1330_v4, %v1329_v7  ;;  %v1331_v5 = vmul.f32 %v6553_v9, %v8946_v44  ;;  %6578 = vrcp.f32 %v7797_v8  ;;  %v6330_v7 = vld [vmem:[%s8849_s2 + $0x88] sm:$0xff]   ;;  %v8956_v44 = vld [vmem:[#allocation23_spill] sm:$0xff] }
 0x787   : > { %v6555_v39 = vpop.eup %6554  ;;  %v1935_v24 = vpack.c.bf16 %v1920_v2, %v1919_v62  ;;  %v1936_v63 = vpack.c.bf16 %v1922_v22, %v1921_v50  ;;  %6580 = vrcp.f32 %v7793_v49 }
 0x788   : > { %v6557_v25 = vpop.eup %6556  ;;  %v1856_v60 = vpop.f32.mrf.mxu0  ;;  %5954 = vmatmul.mubr.msk.bf16.gmra.mxu1 %vm940_vm0, %v1340_v14  ;;  %v1332_v52 = vmul.f32 %v6555_v39, %v8947_v61  ;;  %6582 = vrcp.f32 %v7795_v57  ;;  %v8950_v14 = vld [vmem:[#allocation17_spill] sm:$0xff]  ;;  %v8951_v39 = vld [vmem:[#allocation18_spill] sm:$0xff] }
 0x789   : > { %v6559_v0 = vpop.eup %6558  ;;  %5925 = vmatprep.mubr.msk.bf16.mxu0 %vm940_vm0, %v1935_v24  ;;  %v1923_v54 = vmul.f32 %v6557_v25, %v1856_v60  ;;  %v8952_v24 = vld [vmem:[#allocation19_spill] sm:$0xff]  ;;  %v8953_v25 = vld [vmem:[#allocation20_spill] sm:$0xff]  ;;  %v8955_v60 = vld [vmem:[#allocation22_spill] sm:$0xff] }
 0x78a   : > { %v6561_v13 = vpop.eup %6560  ;;  %v5912_v51 = vpop.f32.mrf.mxu0  ;;  %5926 = vmatmul.mubr.msk.bf16.vlgmr.msra.gmra.mxu0 %vm940_vm0, %v1936_v63  ;;  %v1341_v41 = vpack.c.bf16 %v1332_v52, %v1331_v5  ;;  %v1333_v29 = vmul.f32 %v6559_v0, %v8948_v36  ;;  %v8954_v63 = vld [vmem:[#allocation21_spill] sm:$0xff]  ;;  %v8957_v5 = vld [vmem:[#allocation24_spill] sm:$0xff] }
 0x78b   : > { %v6563_v56 = vpop.eup %6562  ;;  %5962 = vmatpush3.bf16.msra.mxu0 %v7772_v43  ;;  %v1926_v1 = vmul.f32 %v6561_v13, %v5912_v51 }
 0x78c   : > { %v6565_v30 = vpop.eup %6564  ;;  %v1859_v58 = vpop.f32.mrf.mxu0  ;;  %5957 = vmatprep.mubr.msk.bf16.mxu1 %vm940_vm0, %v1341_v41  ;;  %5963 = vmatprep.subr.bf16.mxu0 %v6325_v48  ;;  %v1334_v35 = vmul.f32 %v6563_v56, %v8949_v10 }
 0x78d   : > { %v6567_v40 = vpop.eup %6566  ;;  %v1924_v12 = vmul.f32 %v6565_v30, %v1859_v58 }
 0x78e   : > { %v1925_v43 = vmul.f32 %v6567_v40, %v5911_v31  ;;  %v5915_v28 = vpop.f32.mrf.mxu0  ;;  %v1342_v20 = vpack.c.bf16 %v1334_v35, %v1333_v29  ;;  %v6569_v8 = vpop.eup %6568  ;;  %v6331_v31 = vld [vmem:[%s8849_s2 + $0x80] sm:$0xff]  }
 0x78f   : > { %v1937_v42 = vpack.c.bf16 %v1924_v12, %v1923_v54  ;;  %5964 = vmatpush3.bf16.msra.mxu0 %v6325_v48  ;;  %v6571_v49 = vpop.eup %6570 }
 0x790   : > { %v1938_v53 = vpack.c.bf16 %v1926_v1, %v1925_v43  ;;  %v1872_v17 = vpop.f32.mrf.mxu0  ;;  %5958 = vmatmul.mubr.msk.bf16.gmra.mxu1 %vm940_vm0, %v1342_v20  ;;  %5965 = vmatprep.subr.bf16.mxu0 %v6326_v6  ;;  %v6573_v16 = vpop.eup %6572 }
 0x791   : > { %5929 = vmatprep.mubr.msk.bf16.mxu0 %vm940_vm0, %v1937_v42  ;;  %v6575_v38 = vpop.eup %6574  ;;  %v1927_v18 = vmul.f32 %v6569_v8, %v1872_v17 }
 0x792   : > { %v5916_v46 = vpop.f32.mrf.mxu0  ;;  %5930 = vmatmul.mubr.msk.bf16.gmra.mxu0 %vm940_vm0, %v1938_v53  ;;  %v1929_v27 = vmul.f32 %v6575_v38, %v5915_v28  ;;  %v6577_v59 = vpop.eup %6576 }
 0x793   : > { %5966 = vmatpush3.bf16.msra.mxu0 %v6326_v6  ;;  %v1930_v33 = vmul.f32 %v6571_v49, %v5916_v46  ;;  %v6579_v45 = vpop.eup %6578 }
 0x794   : > { %v1875_v57 = vpop.f32.mrf.mxu0  ;;  %5967 = vmatprep.subr.bf16.mxu0 %v6327_v15  ;;  %v6581_v22 = vpop.eup %6580 }
 0x795   : > { %v1928_v37 = vmul.f32 %v6573_v16, %v1875_v57  ;;  %v1940_v23 = vpack.c.bf16 %v1930_v33, %v1929_v27  ;;  %v6583_v32 = vpop.eup %6582 }
 0x796   : > { %v5919_v11 = vpop.f32.mrf.mxu0 }
 0x797   : > { %v1939_v55 = vpack.c.bf16 %v1928_v37, %v1927_v18  ;;  %5968 = vmatpush3.bf16.msra.mxu0 %v6327_v15  ;;  %v1933_v62 = vmul.f32 %v6583_v32, %v5919_v11 }
 0x798   : > { %v1888_v34 = vpop.f32.mrf.mxu0  ;;  %5969 = vmatprep.subr.bf16.mxu0 %v6328_v21 }
 0x799   : > { %5933 = vmatprep.mubr.msk.bf16.mxu0 %vm940_vm0, %v1939_v55  ;;  %v1931_v4 = vmul.f32 %v6577_v59, %v1888_v34 }
 0x79a   : > { %v5920_v3 = vpop.f32.mrf.mxu0  ;;  %5934 = vmatmul.mubr.msk.bf16.gmra.mxu0 %vm940_vm0, %v1940_v23 }
 0x79b   : > { %5970 = vmatpush3.bf16.msra.mxu0 %v6328_v21  ;;  %v1934_v47 = vmul.f32 %v6579_v45, %v5920_v3 }
 0x79c   : > { %v1891_v26 = vpop.f32.mrf.mxu0  ;;  %5971 = vmatprep.subr.bf16.mxu0 %v6329_v19 }
 0x79d   : > { %v1932_v9 = vmul.f32 %v6581_v22, %v1891_v26  ;;  %v1942_v50 = vpack.c.bf16 %v1934_v47, %v1933_v62 }
 0x79f   : > { %v1941_v2 = vpack.c.bf16 %v1932_v9, %v1931_v4  ;;  %5972 = vmatpush3.bf16.msra.mxu0 %v6329_v19 }
 0x7a0   : > { %5973 = vmatprep.subr.bf16.mxu0 %v6330_v7 }
 0x7a1   : > { %5937 = vmatprep.mubr.msk.bf16.mxu0 %vm940_vm0, %v1941_v2 }
 0x7a2   : > { %5938 = vmatmul.mubr.msk.bf16.gmra.mxu0 %vm940_vm0, %v1942_v50 }
 0x7a3   : > { %5974 = vmatpush3.bf16.msra.mxu0 %v6330_v7  ;;  %5977 = vmatprep.mubr.bf16.mxu0 %v8950_v14 }
 0x7a4   : > { %5975 = vmatprep.subr.bf16.mxu0 %v6331_v31 }
 0x7a7   : > { %5976 = vmatpush3.bf16.msra.mxu0 %v6331_v31 }
 0x7aa   : > { %5978 = vmatmul.mubr.bf16.vlgmr.msra.gmra.mxu0 %v8951_v39 }
 0x7ab   : > { %5981 = vmatprep.mubr.bf16.mxu0 %v8952_v24 }
 0x7b2   : > { %5982 = vmatmul.mubr.bf16.gmra.mxu0 %v8953_v25 }
 0x7b3   : > { %5985 = vmatprep.mubr.bf16.mxu0 %v8954_v63 }
 0x7ba   : > { %5986 = vmatmul.mubr.bf16.gmra.mxu0 %v8955_v60 }
 0x7bb   : > { %5989 = vmatprep.mubr.bf16.mxu0 %v8956_v44 }
 0x7c2   : > { %5990 = vmatmul.mubr.bf16.gmra.mxu0 %v8957_v5 }
 0x838   : > { %v5947_v61 = vpop.f32.mrf.mxu1 }
 0x83a   : > { %v2151_v52 = vpop.f32.mrf.mxu1 }
 0x83c   : > { %v5948_v48 = vpop.f32.mrf.mxu1 }
 0x83e   : > { %v7873_v0 = vpop.f32.mrf.mxu1 }
 0x83f   : > { %8958 = vst [vmem:[#allocation25_spill] sm:$0xff] %v7873_v0 }
 0x840   : > { %v5951_v13 = vpop.f32.mrf.mxu1 }
 0x842   : > { %v2167_v51 = vpop.f32.mrf.mxu1 }
 0x844   : > { %v5952_v41 = vpop.f32.mrf.mxu1 }
 0x846   : > { %v7875_v56 = vpop.f32.mrf.mxu1 }
 0x847   : > { %8959 = vst [vmem:[#allocation27_spill] sm:$0xff] %v7875_v56 }
 0x848   : > { %v5955_v29 = vpop.f32.mrf.mxu1 }
 0x84a   : > { %v5927_v30 = vpop.f32.mrf.mxu0  ;;  %v2183_v40 = vpop.f32.mrf.mxu1 }
 0x84b   : > { %v7877_v1 = vadd.f32 %v5947_v61, %v5927_v30 }
 0x84c   : > { %v2018_v58 = vpop.f32.mrf.mxu0  ;;  %v5956_v20 = vpop.f32.mrf.mxu1 }
 0x84d   : > { %v7879_v36 = vadd.f32 %v2151_v52, %v2018_v58 }
 0x84e   : > { %v5928_v10 = vpop.f32.mrf.mxu0  ;;  %v7893_v15 = vpop.f32.mrf.mxu1 }
 0x84f   : > { %v7881_v35 = vadd.f32 %v5948_v48, %v5928_v10  ;;  %8962 = vst [vmem:[#allocation28_spill] sm:$0xff] %v7893_v15 }
 0x850   : > { %v7883_v6 = vpop.f32.mrf.mxu0  ;;  %v5959_v33 = vpop.f32.mrf.mxu1 }
 0x851   : > { %8960 = vst [vmem:[#allocation29_spill] sm:$0xff] %v7883_v6 }
 0x852   : > { %v5931_v54 = vpop.f32.mrf.mxu0  ;;  %v2199_v18 = vpop.f32.mrf.mxu1 }
 0x853   : > { %v7885_v12 = vadd.f32 %v5951_v13, %v5931_v54 }
 0x854   : > { %v2034_v43 = vpop.f32.mrf.mxu0  ;;  %v5960_v23 = vpop.f32.mrf.mxu1 }
 0x855   : > { %v7887_v28 = vadd.f32 %v2167_v51, %v2034_v43 }
 0x856   : > { %v5932_v42 = vpop.f32.mrf.mxu0 }
 0x857   : > { %v7889_v53 = vadd.f32 %v5952_v41, %v5932_v42 }
 0x858   : > { %v7891_v17 = vpop.f32.mrf.mxu0 }
 0x859   : > { %8961 = vst [vmem:[#allocation26_spill] sm:$0xff] %v7891_v17 }
 0x85a   : > { %v5935_v8 = vpop.f32.mrf.mxu0 }
 0x85b   : > { %v7895_v46 = vadd.f32 %v5955_v29, %v5935_v8 }
 0x85c   : > { %v2050_v49 = vpop.f32.mrf.mxu0 }
 0x85d   : > { %v7897_v16 = vadd.f32 %v2183_v40, %v2050_v49 }
 0x85e   : > { %v5936_v57 = vpop.f32.mrf.mxu0 }
 0x85f   : > { %v7899_v21 = vadd.f32 %v5956_v20, %v5936_v57 }
 0x860   : > { %v7901_v38 = vpop.f32.mrf.mxu0 }
 0x861   : > { %8963 = vst [vmem:[#allocation31_spill] sm:$0xff] %v7901_v38 }
 0x862   : > { %v5939_v37 = vpop.f32.mrf.mxu0 }
 0x863   : > { %v7903_v27 = vadd.f32 %v5959_v33, %v5939_v37 }
 0x864   : > { %v2066_v11 = vpop.f32.mrf.mxu0 }
 0x865   : > { %8964 = vst [vmem:[#allocation33_spill] sm:$0xff] %v7903_v27  ;;  %v7905_v55 = vadd.f32 %v2199_v18, %v2066_v11 }
 0x866   : > { %v5940_v34 = vpop.f32.mrf.mxu0 }
 0x867   : > { %8965 = vst [vmem:[#allocation30_spill] sm:$0xff] %v7905_v55  ;;  %v7907_v19 = vadd.f32 %v5960_v23, %v5940_v34 }
 0x868   : > { %v7909_v59 = vpop.f32.mrf.mxu0 }
 0x869   : > { %8966 = vst [vmem:[#allocation32_spill] sm:$0xff] %v7907_v19  ;;  %8967 = vst [vmem:[#allocation35_spill] sm:$0xff] %v7909_v59 }
 0x86a   : > { %v5979_v3 = vpop.f32.mrf.mxu0 }
 0x86b   : > { %v7911_v47 = vmul.f32 0.088388346, %v5979_v3 }
 0x86c   : > { %v2313_v45 = vpop.f32.mrf.mxu0 }
 0x86d   : > { %v2384_v32 = vmul.f32 0.088388346, %v2313_v45 }
 0x86e   : > { %v5980_v22 = vpop.f32.mrf.mxu0 }
 0x86f   : > { %v7913_v26 = vmul.f32 0.088388346, %v5980_v22 }
 0x870   : > { %v2316_v7 = vpop.f32.mrf.mxu0 }
 0x871   : > { %v2401_v4 = vpack.c.bf16 %v7913_v26, %v7911_v47  ;;  %v2385_v9 = vmul.f32 0.088388346, %v2316_v7  ;;  %v6335_v47 = vld [vmem:[%s8849_s2 + $0xe0] sm:$0xff]  }
 0x872   : > { %v5983_v62 = vpop.f32.mrf.mxu0 }
 0x873   : > { %v2400_v2 = vpack.c.bf16 %v2385_v9, %v2384_v32  ;;  %v7920_v61 = vmul.f32 0.088388346, %v5983_v62 }
 0x874   : > { %v7917_v50 = vpop.f32.mrf.mxu0 }
 0x875   : > { %6009 = vmatprep.mubr.msk.bf16.mxu1 %vm940_vm0, %v2400_v2 }
 0x876   : > { %v5984_v31 = vpop.f32.mrf.mxu0 }
 0x877   : > { %v7922_v52 = vmul.f32 0.088388346, %v5984_v31  ;;  %v2379_v32 = vpack.c.bf16 %v5984_v31, %v5983_v62 }
 0x878   : > { %v7924_v48 = vpop.f32.mrf.mxu0 }
 0x879   : > { %v2403_v13 = vpack.c.bf16 %v7922_v52, %v7920_v61  ;;  %v2378_v9 = vpack.c.bf16 %v7924_v48, %v7917_v50  ;;  %v2442_v62 = vsel %vm940_vm0, %v2379_v32, 0  ;;  %v6337_v61 = vld [vmem:[%s8849_s2 + $0xd0] sm:$0xff]  }
 0x87a   : > { %v5987_v51 = vpop.f32.mrf.mxu0 }
 0x87b   : > { %v7930_v58 = vmul.f32 0.088388346, %v5987_v51  ;;  %v2439_v31 = vsel %vm940_vm0, %v2378_v9, 0 }
 0x87c   : > { %v7928_v41 = vpop.f32.mrf.mxu0 }
 0x87e   : > { %v5988_v30 = vpop.f32.mrf.mxu0 }
 0x87f   : > { %v7932_v29 = vmul.f32 0.088388346, %v5988_v30  ;;  %v2381_v11 = vpack.c.bf16 %v5988_v30, %v5987_v51  ;;  %v2377_v51 = vpack.c.bf16 %v5980_v22, %v5979_v3  ;;  %v2376_v30 = vpack.c.bf16 %v2316_v7, %v2313_v45  ;;  %v6332_v45 = vld [vmem:[%s8849_s2 + $0xf8] sm:$0xff]  }
 0x880   : > { %v7934_v10 = vpop.f32.mrf.mxu0  ;;  %v2389_v7 = vmul.f32 0.088388346, %v7924_v48  ;;  %v6334_v48 = vld [vmem:[%s8849_s2 + $0xe8] sm:$0xff]  }
 0x881   : > { %v2405_v40 = vpack.c.bf16 %v7932_v29, %v7930_v58  ;;  %v2380_v23 = vpack.c.bf16 %v7934_v10, %v7928_v41  ;;  %v2448_v2 = vsel %vm940_vm0, %v2381_v11, 0  ;;  %v2436_v3 = vsel %vm940_vm0, %v2377_v51, 0  ;;  %v8027_v58 = vpop.f32.mrf.mxu1 }
 0x882   : > { %v5991_v54 = vpop.f32.mrf.mxu0  ;;  %v2433_v22 = vsel %vm940_vm0, %v2376_v30, 0  ;;  %8968 = vst [vmem:[#allocation37_spill] sm:$0xff] %v8027_v58 }
 0x883   : > { %v7940_v42 = vmul.f32 0.088388346, %v5991_v54 }
 0x884   : > { %v7938_v43 = vpop.f32.mrf.mxu0 }
 0x886   : > { %v5992_v20 = vpop.f32.mrf.mxu0 }
 0x887   : > { %v2383_v8 = vpack.c.bf16 %v5992_v20, %v5991_v54  ;;  %v7942_v49 = vmul.f32 0.088388346, %v5992_v20  ;;  %v2445_v54 = vsel %vm940_vm0, %v2380_v23, 0  ;;  %v2388_v20 = vmul.f32 0.088388346, %v7917_v50 }
 0x888   : > { %v7944_v33 = vpop.f32.mrf.mxu0  ;;  %v2393_v50 = vmul.f32 0.088388346, %v7934_v10  ;;  %v2396_v10 = vmul.f32 0.088388346, %v7938_v43 }
 0x889   : > { %v2407_v57 = vpack.c.bf16 %v7942_v49, %v7940_v42  ;;  %v2382_v18 = vpack.c.bf16 %v7944_v33, %v7938_v43  ;;  %6209 = vmatprep.subr.msk.bf16.mxu1 %vm940_vm0, %v2383_v8  ;;  %6025 = vmatprep.subr.bf16.mxu0 %v2383_v8  ;;  %v2454_v37 = vsel %vm940_vm0, %v2383_v8, 0  ;;  %v6339_v43 = vld [vmem:[%s8849_s2 + $0xc0] sm:$0xff]  }
 0x88a   : > { %5994 = vmatpush3.bf16.xpose.msra.mxu1 %v2454_v37  ;;  %6026 = vmatpush3.bf16.msra.mxu0 %v2383_v8  ;;  %v6333_v8 = vld [vmem:[%s8849_s2 + $0xf0] sm:$0xff]   ;;  %v2392_v37 = vmul.f32 0.088388346, %v7928_v41  ;;  %v2397_v41 = vmul.f32 0.088388346, %v7944_v33  ;;  %v8047_v33 = vld [vmem:[#allocation2 + $0x18] sm:$0xff] }
 0x88b   : > { %6210 = vmatprep.subr.msk.bf16.mxu1 %vm940_vm0, %v2382_v18  ;;  %6027 = vmatprep.subr.bf16.mxu0 %v2382_v18  ;;  %v2451_v34 = vsel %vm940_vm0, %v2382_v18, 0  ;;  %8972 = vst [vmem:[#allocation18_spill] sm:$0xff] %v8047_v33 }
 0x88c   : > { %v2404_v26 = vpack.c.bf16 %v2393_v50, %v2392_v37  ;;  %v2406_v52 = vpack.c.bf16 %v2397_v41, %v2396_v10  ;;  %v8100_v41 = vld [vmem:[#allocation2 + $0x60] sm:$0xff] }
 0x88d   : > { %8981 = vst [vmem:[#allocation40_spill] sm:$0xff] %v8100_v41 }
 0x88e   : > { %6028 = vmatpush3.bf16.msra.mxu0 %v2382_v18  ;;  %v2402_v18 = vpack.c.bf16 %v2389_v7, %v2388_v20 }
 0x88f   : > { %6029 = vmatprep.subr.bf16.mxu0 %v2381_v11 }
 0x892   : > { %5996 = vmatpush3.bf16.xpose.msra.mxu1 %v2451_v34  ;;  %6030 = vmatpush3.bf16.msra.mxu0 %v2381_v11 }
 0x893   : > { %6211 = vmatprep.subr.msk.bf16.mxu1 %vm940_vm0, %v2381_v11  ;;  %6031 = vmatprep.subr.bf16.mxu0 %v2380_v23  ;;  %v8052_v11 = vld [vmem:[#allocation2 + $0x20] sm:$0xff] }
 0x894   : > { %8973 = vst [vmem:[#allocation19_spill] sm:$0xff] %v8052_v11 }
 0x896   : > { %6032 = vmatpush3.bf16.msra.mxu0 %v2380_v23 }
 0x897   : > { %6033 = vmatprep.subr.bf16.mxu0 %v2379_v32 }
 0x89a   : > { %5998 = vmatpush3.bf16.xpose.msra.mxu1 %v2448_v2  ;;  %6034 = vmatpush3.bf16.msra.mxu0 %v2379_v32 }
 0x89b   : > { %6212 = vmatprep.subr.msk.bf16.mxu1 %vm940_vm0, %v2380_v23  ;;  %6035 = vmatprep.subr.bf16.mxu0 %v2378_v9 }
 0x89e   : > { %6036 = vmatpush3.bf16.msra.mxu0 %v2378_v9 }
 0x89f   : > { %6037 = vmatprep.subr.bf16.mxu0 %v2377_v51 }
 0x8a2   : > { %6000 = vmatpush3.bf16.xpose.msra.mxu1 %v2445_v54  ;;  %6038 = vmatpush3.bf16.msra.mxu0 %v2377_v51 }
 0x8a3   : > { %6213 = vmatprep.subr.msk.bf16.mxu1 %vm940_vm0, %v2379_v32  ;;  %6039 = vmatprep.subr.bf16.mxu0 %v2376_v30 }
 0x8a6   : > { %6040 = vmatpush3.bf16.msra.mxu0 %v2376_v30 }
 0x8aa   : > { %6002 = vmatpush3.bf16.xpose.msra.mxu1 %v2442_v62 }
 0x8ab   : > { %6214 = vmatprep.subr.msk.bf16.mxu1 %vm940_vm0, %v2378_v9  ;;  %v8059_v9 = vld [vmem:[#allocation2 + $0x30] sm:$0xff] }
 0x8ac   : > { %8974 = vst [vmem:[#allocation20_spill] sm:$0xff] %v8059_v9 }
 0x8b2   : > { %6004 = vmatpush3.bf16.xpose.msra.mxu1 %v2439_v31  ;;  %v8071_v31 = vld [vmem:[#allocation2 + $0x38] sm:$0xff] }
 0x8b3   : > { %6215 = vmatprep.subr.msk.bf16.mxu1 %vm940_vm0, %v2377_v51  ;;  %v8064_v51 = vld [vmem:[#allocation2 + $0x28] sm:$0xff]  ;;  %8976 = vst [vmem:[#allocation22_spill] sm:$0xff] %v8071_v31 }
 0x8b4   : > { %8975 = vst [vmem:[#allocation21_spill] sm:$0xff] %v8064_v51 }
 0x8ba   : > { %6006 = vmatpush3.bf16.xpose.msra.mxu1 %v2436_v3 }
 0x8bb   : > { %6216 = vmatprep.subr.msk.bf16.mxu1 %vm940_vm0, %v2376_v30 }
 0x8c2   : > { %6008 = vmatpush3.bf16.xpose.msra.mxu1 %v2433_v22 }
 0x8c3   : > { %6077 = vmatprep.subr.bf16.mxu1 %v6332_v45 }
 0x8c9   : > { %6010 = vmatmul.mubr.msk.bf16.vlgmr.msra.gmra.mxu1 %vm940_vm0, %v2401_v4  ;;  %v6336_v4 = vld [vmem:[%s8849_s2 + $0xd8] sm:$0xff]  }
 0x8ca   : > { %6013 = vmatprep.mubr.msk.bf16.mxu1 %vm940_vm0, %v2402_v18  ;;  %6078 = vmatpush3.bf16.msra.mxu1 %v6332_v45  ;;  %v8076_v45 = vld [vmem:[#allocation2 + $0x40] sm:$0xff] }
 0x8cb   : > { %6079 = vmatprep.subr.bf16.mxu1 %v6333_v8  ;;  %8977 = vst [vmem:[#allocation23_spill] sm:$0xff] %v8076_v45 }
 0x8ce   : > { %6080 = vmatpush3.bf16.msra.mxu1 %v6333_v8  ;;  %v8083_v8 = vld [vmem:[#allocation2 + $0x50] sm:$0xff] }
 0x8cf   : > { %6081 = vmatprep.subr.bf16.mxu1 %v6334_v48  ;;  %8978 = vst [vmem:[#allocation24_spill] sm:$0xff] %v8083_v8 }
 0x8d1   : > { %6014 = vmatmul.mubr.msk.bf16.gmra.mxu1 %vm940_vm0, %v2403_v13  ;;  %v6338_v13 = vld [vmem:[%s8849_s2 + $0xc8] sm:$0xff]  }
 0x8d2   : > { %6017 = vmatprep.mubr.msk.bf16.mxu1 %vm940_vm0, %v2404_v26  ;;  %6082 = vmatpush3.bf16.msra.mxu1 %v6334_v48  ;;  %v8088_v48 = vld [vmem:[#allocation2 + $0x48] sm:$0xff]  ;;  %v8095_v26 = vld [vmem:[#allocation2 + $0x58] sm:$0xff] }
 0x8d3   : > { %6083 = vmatprep.subr.bf16.mxu1 %v6335_v47  ;;  %8979 = vst [vmem:[#allocation38_spill] sm:$0xff] %v8088_v48  ;;  %8980 = vst [vmem:[#allocation39_spill] sm:$0xff] %v8095_v26 }
 0x8d6   : > { %6084 = vmatpush3.bf16.msra.mxu1 %v6335_v47 }
 0x8d7   : > { %6085 = vmatprep.subr.bf16.mxu1 %v6336_v4 }
 0x8d9   : > { %6018 = vmatmul.mubr.msk.bf16.gmra.mxu1 %vm940_vm0, %v2405_v40  ;;  %v8029_v40 = vld [vmem:[#allocation2] sm:$0xff] }
 0x8da   : > { %6021 = vmatprep.mubr.msk.bf16.mxu1 %vm940_vm0, %v2406_v52  ;;  %6086 = vmatpush3.bf16.msra.mxu1 %v6336_v4  ;;  %8969 = vst [vmem:[#allocation34_spill] sm:$0xff] %v8029_v40 }
 0x8db   : > { %6087 = vmatprep.subr.bf16.mxu1 %v6337_v61 }
 0x8de   : > { %6088 = vmatpush3.bf16.msra.mxu1 %v6337_v61 }
 0x8df   : > { %6089 = vmatprep.subr.bf16.mxu1 %v6338_v13 }
 0x8e1   : > { %6022 = vmatmul.mubr.msk.bf16.gmra.mxu1 %vm940_vm0, %v2407_v57 }
 0x8e2   : > { %6090 = vmatpush3.bf16.msra.mxu1 %v6338_v13  ;;  %6093 = vmatprep.mubr.bf16.mxu1 %v8950_v14  ;;  %v8107_v13 = vld [vmem:[#allocation2 + $0x70] sm:$0xff] }
 0x8e3   : > { %6091 = vmatprep.subr.bf16.mxu1 %v6339_v43  ;;  %8982 = vst [vmem:[#allocation41_spill] sm:$0xff] %v8107_v13 }
 0x8e6   : > { %6092 = vmatpush3.bf16.msra.mxu1 %v6339_v43 }
 0x8e9   : > { %6094 = vmatmul.mubr.bf16.vlgmr.msra.gmra.mxu1 %v8951_v39 }
 0x8ea   : > { %6097 = vmatprep.mubr.bf16.mxu1 %v8952_v24 }
 0x8f1   : > { %6098 = vmatmul.mubr.bf16.gmra.mxu1 %v8953_v25 }
 0x8f2   : > { %6101 = vmatprep.mubr.bf16.mxu1 %v8954_v63  ;;  %v8035_v63 = vld [vmem:[#allocation2 + $0x10] sm:$0xff] }
 0x8f3   : > { %8970 = vst [vmem:[#allocation36_spill] sm:$0xff] %v8035_v63 }
 0x8f9   : > { %6102 = vmatmul.mubr.bf16.gmra.mxu1 %v8955_v60 }
 0x8fa   : > { %6105 = vmatprep.mubr.bf16.mxu1 %v8956_v44  ;;  %v8040_v44 = vld [vmem:[#allocation2 + $0x8] sm:$0xff] }
 0x8fb   : > { %8971 = vst [vmem:[#allocation17_spill] sm:$0xff] %v8040_v44 }
 0x901   : > { %6106 = vmatmul.mubr.bf16.gmra.mxu1 %v8957_v5 }
 0x989   : > { %v6011_v29 = vpop.f32.mrf.mxu1 }
 0x98a   : > { %v8038_v60 = vadd.f32 %v8035_v63, %v6011_v29  ;;  %v8112_v29 = vld [vmem:[#allocation2 + $0x68] sm:$0xff] }
 0x98b   : > { %v2490_v14 = vpop.f32.mrf.mxu1  ;;  %8983 = vst [vmem:[#allocation42_spill] sm:$0xff] %v8112_v29 }
 0x98c   : > { %v8032_v39 = vadd.f32 %v8029_v40, %v2490_v14 }
 0x98d   : > { %v6012_v24 = vpop.f32.mrf.mxu1 }
 0x98e   : > { %2553 = vmax.xlane.f32.xlu0 %v8032_v39  ;;  %v8050_v57 = vadd.f32 %v8047_v33, %v6012_v24 }
 0x98f   : > { %v2493_v25 = vpop.f32.mrf.mxu1 }
 0x990   : > { %v8043_v5 = vadd.f32 %v8040_v44, %v2493_v25 }
 0x991   : > { %v6015_v42 = vpop.f32.mrf.mxu1 }
 0x992   : > { %2555 = vmax.xlane.f32.xlu1 %v8043_v5  ;;  %2557 = vmax.xlane.f32.xlu0 %v8038_v60  ;;  %v8062_v2 = vadd.f32 %v8059_v9, %v6015_v42  ;;  %v8119_v42 = vld [vmem:[#allocation2 + $0x78] sm:$0xff] }
 0x993   : > { %v2506_v49 = vpop.f32.mrf.mxu1  ;;  %8984 = vst [vmem:[#allocation43_spill] sm:$0xff] %v8119_v42 }
 0x994   : > { %v8055_v23 = vadd.f32 %v8052_v11, %v2506_v49 }
 0x995   : > { %v6016_v34 = vpop.f32.mrf.mxu1 }
 0x996   : > { %2559 = vmax.xlane.f32.xlu1 %v8050_v57  ;;  %2561 = vmax.xlane.f32.xlu0 %v8055_v23  ;;  %v8074_v3 = vadd.f32 %v8071_v31, %v6016_v34 }
 0x997   : > { %v2509_v32 = vpop.f32.mrf.mxu1 }
 0x998   : > { %v8067_v30 = vadd.f32 %v8064_v51, %v2509_v32 }
 0x999   : > { %v6019_v54 = vpop.f32.mrf.mxu1 }
 0x99a   : > { %2563 = vmax.xlane.f32.xlu1 %v8067_v30  ;;  %2565 = vmax.xlane.f32.xlu0 %v8062_v2  ;;  %v8086_v18 = vadd.f32 %v8083_v8, %v6019_v54 }
 0x99b   : > { %v2522_v62 = vpop.f32.mrf.mxu1 }
 0x99c   : > { %v8079_v22 = vadd.f32 %v8076_v45, %v2522_v62 }
 0x99d   : > { %v6020_v7 = vpop.f32.mrf.mxu1 }
 0x99e   : > { %2567 = vmax.xlane.f32.xlu1 %v8074_v3  ;;  %2569 = vmax.xlane.f32.xlu0 %v8079_v22  ;;  %v8098_v4 = vadd.f32 %v8095_v26, %v6020_v7 }
 0x99f   : > { %v2525_v20 = vpop.f32.mrf.mxu1 }
 0x9a0   : > { %v8091_v50 = vadd.f32 %v8088_v48, %v2525_v20 }
 0x9a1   : > { %v6023_v37 = vpop.f32.mrf.mxu1 }
 0x9a2   : > { %2571 = vmax.xlane.f32.xlu1 %v8091_v50  ;;  %2573 = vmax.xlane.f32.xlu0 %v8086_v18  ;;  %v8110_v43 = vadd.f32 %v8107_v13, %v6023_v37 }
 0x9a3   : > { %v2538_v47 = vpop.f32.mrf.mxu1 }
 0x9a4   : > { %v8103_v10 = vadd.f32 %v8100_v41, %v2538_v47 }
 0x9a5   : > { %v6024_v61 = vpop.f32.mrf.mxu1 }
 0x9a6   : > { %2575 = vmax.xlane.f32.xlu1 %v8098_v4  ;;  %2577 = vmax.xlane.f32.xlu0 %v8103_v10  ;;  %v8122_v49 = vadd.f32 %v8119_v42, %v6024_v61 }
 0x9a7   : > { %v2541_v52 = vpop.f32.mrf.mxu1 }
 0x9a8   : > { %v8115_v14 = vadd.f32 %v8112_v29, %v2541_v52  ;;  %v8140_v52 = vld [vmem:[%s8850_s3 + $0x28] sm:$0xff]  }
 0x9a9   : > { %v6095_v24 = vpop.f32.mrf.mxu1  ;;  %6057 = vmatprep.subr.bf16.mxu0 %v8140_v52 }
 0x9aa   : > { %2579 = vmax.xlane.f32.xlu1 %v8115_v14  ;;  %2581 = vmax.xlane.f32.xlu0 %v8110_v43  ;;  %v8124_v32 = vmul.f32 0.088388346, %v6095_v24 }
 0x9ab   : > { %v3063_v25 = vpop.f32.mrf.mxu1 }
 0x9ac   : > { %v8129_v7 = vmul.f32 0.088388346, %v3063_v25 }
 0x9ad   : > { %v6096_v34 = vpop.f32.mrf.mxu1 }
 0x9ae   : > { %v8126_v54 = vmul.f32 0.088388346, %v6096_v34  ;;  %2583 = vmax.xlane.f32.xlu1 %v8122_v49 }
 0x9af   : > { %v3066_v62 = vpop.f32.mrf.mxu1 }
 0x9b0   : > { %v8133_v37 = vmul.f32 0.088388346, %v3066_v62 }
 0x9b1   : > { %v6099_v47 = vpop.f32.mrf.mxu1 }
 0x9b2   : > { %v8143_v15 = vmul.f32 0.088388346, %v6099_v47 }
 0x9b3   : > { %v3079_v58 = vpop.f32.mrf.mxu1 }
 0x9b4   : > { %v8147_v56 = vmul.f32 0.088388346, %v3079_v58 }
 0x9b5   : > { %v6100_v59 = vpop.f32.mrf.mxu1 }
 0x9b6   : > { %v8145_v38 = vmul.f32 0.088388346, %v6100_v59 }
 0x9b7   : > { %v3082_v20 = vpop.f32.mrf.mxu1 }
 0x9b8   : > { %v8151_v61 = vmul.f32 0.088388346, %v3082_v20  ;;  %v8198_v8 = vpack.c.bf16 %v3082_v20, %v3079_v58 }
 0x9b9   : > { %v6103_v0 = vpop.f32.mrf.mxu1 }
 0x9ba   : > { %v8155_v13 = vmul.f32 0.088388346, %v6103_v0 }
 0x9bb   : > { %v3095_v42 = vpop.f32.mrf.mxu1 }
 0x9bc   : > { %v8159_v48 = vmul.f32 0.088388346, %v3095_v42 }
 0x9bd   : > { %v6104_v29 = vpop.f32.mrf.mxu1 }
 0x9be   : > { %v8157_v41 = vmul.f32 0.088388346, %v6104_v29  ;;  %v8186_v31 = vpack.c.bf16 %v6104_v29, %v6103_v0  ;;  %v8202_v0 = vpack.c.bf16 %v6096_v34, %v6095_v24 }
 0x9bf   : > { %v3098_v26 = vpop.f32.mrf.mxu1 }
 0x9c0   : > { %v8163_v45 = vmul.f32 0.088388346, %v3098_v26 }
 0x9c1   : > { %v6107_v17 = vpop.f32.mrf.mxu1 }
 0x9c2   : > { %v8169_v9 = vmul.f32 0.088388346, %v6107_v17 }
 0x9c3   : > { %v8167_v51 = vpop.f32.mrf.mxu1 }
 0x9c5   : > { %v6108_v6 = vpop.f32.mrf.mxu1 }
 0x9c6   : > { %v8171_v11 = vpack.c.bf16 %v6108_v6, %v6107_v17  ;;  %v8173_v33 = vmul.f32 0.088388346, %v6108_v6  ;;  %v8190_v6 = vpack.c.bf16 %v3098_v26, %v3095_v42  ;;  %v8194_v17 = vpack.c.bf16 %v6100_v59, %v6099_v47 }
 0x9c7   : > { %v8175_v44 = vpop.f32.mrf.mxu1  ;;  %v8206_v26 = vpack.c.bf16 %v3066_v62, %v3063_v25 }
 0x9c8   : > { %v8181_v63 = vpack.c.bf16 %v8175_v44, %v8167_v51  ;;  %6141 = vmatprep.subr.bf16.mxu1 %v8171_v11 }
 0x9c9   : > { %6142 = vmatpush3.bf16.msra.mxu1 %v8171_v11 }
 0x9ca   : > { %6143 = vmatprep.subr.bf16.mxu1 %v8181_v63 }
 0x9cd   : > { %6144 = vmatpush3.bf16.msra.mxu1 %v8181_v63 }
 0x9ce   : > { %6145 = vmatprep.subr.bf16.mxu1 %v8186_v31 }
 0x9d1   : > { %6146 = vmatpush3.bf16.msra.mxu1 %v8186_v31 }
 0x9d2   : > { %6147 = vmatprep.subr.bf16.mxu1 %v8190_v6 }
 0x9d5   : > { %6148 = vmatpush3.bf16.msra.mxu1 %v8190_v6 }
 0x9d6   : > { %6149 = vmatprep.subr.bf16.mxu1 %v8194_v17 }
 0x9d9   : > { %6150 = vmatpush3.bf16.msra.mxu1 %v8194_v17 }
 0x9da   : > { %6151 = vmatprep.subr.bf16.mxu1 %v8198_v8 }
 0x9dd   : > { %6152 = vmatpush3.bf16.msra.mxu1 %v8198_v8 }
 0x9de   : > { %6153 = vmatprep.subr.bf16.mxu1 %v8202_v0 }
 0x9e1   : > { %6154 = vmatpush3.bf16.msra.mxu1 %v8202_v0 }
 0x9e2   : > { %6155 = vmatprep.subr.bf16.mxu1 %v8206_v26 }
 0x9e5   : > { %6156 = vmatpush3.bf16.msra.mxu1 %v8206_v26 }
 0xa17   : > { %v2554_v59 = vpop.xlane.xlu0 %2553 }
 0xa18   : > { %v2585_v58 = vsub.f32 %v8032_v39, %v2554_v59 }
 0xa1a   : > { %v2601_v29 = vmul.f32 1.442695, %v2585_v58 }
 0xa1b   : > { %v2556_v42 = vpop.xlane.xlu1 %2555  ;;  %v2558_v20 = vpop.xlane.xlu0 %2557 }
 0xa1c   : > { %6584 = vpow2.f32 %v2601_v29  ;;  %v2586_v24 = vsub.f32 %v8043_v5, %v2556_v42  ;;  %v2587_v34 = vsub.f32 %v8038_v60, %v2558_v20 }
 0xa1e   : > { %v2603_v47 = vmul.f32 1.442695, %v2586_v24  ;;  %v2605_v25 = vmul.f32 1.442695, %v2587_v34 }
 0xa1f   : > { %v2560_v62 = vpop.xlane.xlu1 %2559  ;;  %v2562_v40 = vpop.xlane.xlu0 %2561 }
 0xa20   : > { %6586 = vpow2.f32 %v2603_v47  ;;  %v2588_v19 = vsub.f32 %v8050_v57, %v2560_v62  ;;  %v2589_v55 = vsub.f32 %v8055_v23, %v2562_v40 }
 0xa21   : > { %6588 = vpow2.f32 %v2605_v25 }
 0xa22   : > { %v2607_v27 = vmul.f32 1.442695, %v2588_v19  ;;  %v2609_v39 = vmul.f32 1.442695, %v2589_v55 }
 0xa23   : > { %v2564_v59 = vpop.xlane.xlu1 %2563  ;;  %v2566_v58 = vpop.xlane.xlu0 %2565 }
 0xa24   : > { %6590 = vpow2.f32 %v2607_v27  ;;  %v2590_v29 = vsub.f32 %v8067_v30, %v2564_v59  ;;  %v2591_v5 = vsub.f32 %v8062_v2, %v2566_v58 }
 0xa25   : > { %6592 = vpow2.f32 %v2609_v39 }
 0xa26   : > { %v2611_v60 = vmul.f32 1.442695, %v2590_v29  ;;  %v2613_v42 = vmul.f32 1.442695, %v2591_v5 }
 0xa27   : > { %v2568_v20 = vpop.xlane.xlu1 %2567  ;;  %v2570_v24 = vpop.xlane.xlu0 %2569 }
 0xa28   : > { %6594 = vpow2.f32 %v2611_v60  ;;  %v2592_v57 = vsub.f32 %v8074_v3, %v2568_v20  ;;  %v2593_v40 = vsub.f32 %v8079_v22, %v2570_v24  ;;  %v6341_v20 = vld [vmem:[%s8850_s3 + $0x20] sm:$0xff]  }
 0xa29   : > { %v6585_v23 = vpop.eup %6584  ;;  %6596 = vpow2.f32 %v2613_v42 }
 0xa2a   : > { %v2615_v55 = vmul.f32 1.442695, %v2592_v57  ;;  %v2617_v19 = vmul.f32 1.442695, %v2593_v40  ;;  %2633 = vadd.xlane.f32.xlu0 %v6585_v23 }
 0xa2b   : > { %v2572_v27 = vpop.xlane.xlu1 %2571  ;;  %v2574_v34 = vpop.xlane.xlu0 %2573 }
 0xa2c   : > { %6598 = vpow2.f32 %v2615_v55  ;;  %v2594_v2 = vsub.f32 %v8091_v50, %v2572_v27  ;;  %v2595_v30 = vsub.f32 %v8086_v18, %v2574_v34 }
 0xa2d   : > { %v6587_v47 = vpop.eup %6586  ;;  %6600 = vpow2.f32 %v2617_v19 }
 0xa2e   : > { %v6589_v25 = vpop.eup %6588  ;;  %v2619_v62 = vmul.f32 1.442695, %v2594_v2  ;;  %v2621_v39 = vmul.f32 1.442695, %v2595_v30  ;;  %2635 = vadd.xlane.f32.xlu1 %v6587_v47  ;;  %v2665_v3 = vpack.c.bf16 %v6587_v47, %v6585_v23 }
 0xa2f   : > { %2637 = vadd.xlane.f32.xlu0 %v6589_v25  ;;  %v2576_v22 = vpop.xlane.xlu1 %2575  ;;  %v2578_v59 = vpop.xlane.xlu0 %2577 }
 0xa30   : > { %6602 = vpow2.f32 %v2619_v62  ;;  %v2596_v58 = vsub.f32 %v8098_v4, %v2576_v22  ;;  %v2597_v29 = vsub.f32 %v8103_v10, %v2578_v59  ;;  %6041 = vmatprep.mubr.bf16.mxu0 %v2665_v3 }
 0xa31   : > { %v6591_v5 = vpop.eup %6590  ;;  %6604 = vpow2.f32 %v2621_v39 }
 0xa32   : > { %v6593_v50 = vpop.eup %6592  ;;  %v2623_v18 = vmul.f32 1.442695, %v2596_v58  ;;  %v2625_v60 = vmul.f32 1.442695, %v2597_v29  ;;  %2639 = vadd.xlane.f32.xlu1 %v6591_v5  ;;  %v2666_v42 = vpack.c.bf16 %v6591_v5, %v6589_v25 }
 0xa33   : > { %2641 = vadd.xlane.f32.xlu0 %v6593_v50  ;;  %v2580_v24 = vpop.xlane.xlu1 %2579  ;;  %v2582_v57 = vpop.xlane.xlu0 %2581 }
 0xa34   : > { %6606 = vpow2.f32 %v2623_v18  ;;  %v2598_v4 = vsub.f32 %v8115_v14, %v2580_v24  ;;  %v2599_v10 = vsub.f32 %v8110_v43, %v2582_v57  ;;  %6042 = vmatmul.mubr.bf16.vlgmr.msra.gmra.mxu0 %v2666_v42 }
 0xa35   : > { %v6595_v40 = vpop.eup %6594  ;;  %6608 = vpow2.f32 %v2625_v60  ;;  %6058 = vmatpush3.bf16.msra.mxu0 %v8140_v52 }
 0xa36   : > { %v6597_v23 = vpop.eup %6596  ;;  %v2627_v55 = vmul.f32 1.442695, %v2598_v4  ;;  %v2629_v19 = vmul.f32 1.442695, %v2599_v10  ;;  %2643 = vadd.xlane.f32.xlu1 %v6595_v40  ;;  %6059 = vmatprep.subr.bf16.mxu0 %v6341_v20  ;;  %v2667_v27 = vpack.c.bf16 %v6595_v40, %v6593_v50 }
 0xa37   : > { %2645 = vadd.xlane.f32.xlu0 %v6597_v23  ;;  %v2584_v34 = vpop.xlane.xlu1 %2583 }
 0xa38   : > { %6610 = vpow2.f32 %v2627_v55  ;;  %v2600_v2 = vsub.f32 %v8122_v49, %v2584_v34  ;;  %6045 = vmatprep.mubr.bf16.mxu0 %v2667_v27 }
 0xa39   : > { %v6599_v14 = vpop.eup %6598  ;;  %6612 = vpow2.f32 %v2629_v19  ;;  %6060 = vmatpush3.bf16.msra.mxu0 %v6341_v20 }
 0xa3a   : > { %v6601_v43 = vpop.eup %6600  ;;  %v2631_v30 = vmul.f32 1.442695, %v2600_v2  ;;  %6217 = vmatprep.subr.msk.bf16.mxu0 %vm940_vm0, %v8171_v11  ;;  %2647 = vadd.xlane.f32.xlu1 %v6599_v14  ;;  %v2668_v52 = vpack.c.bf16 %v6599_v14, %v6597_v23 }
 0xa3b   : > { %2649 = vadd.xlane.f32.xlu0 %v6601_v43 }
 0xa3c   : > { %6614 = vpow2.f32 %v2631_v30  ;;  %6046 = vmatmul.mubr.bf16.gmra.mxu0 %v2668_v52 }
 0xa3d   : > { %v6603_v47 = vpop.eup %6602 }
 0xa3e   : > { %v6605_v25 = vpop.eup %6604  ;;  %2651 = vadd.xlane.f32.xlu1 %v6603_v47  ;;  %v2669_v62 = vpack.c.bf16 %v6603_v47, %v6601_v43 }
 0xa3f   : > { %2653 = vadd.xlane.f32.xlu0 %v6605_v25 }
 0xa40   : > { %6049 = vmatprep.mubr.bf16.mxu0 %v2669_v62 }
 0xa41   : > { %v6607_v49 = vpop.eup %6606 }
 0xa42   : > { %v6609_v39 = vpop.eup %6608  ;;  %2655 = vadd.xlane.f32.xlu1 %v6607_v49  ;;  %v2670_v3 = vpack.c.bf16 %v6607_v49, %v6605_v25 }
 0xa43   : > { %2657 = vadd.xlane.f32.xlu0 %v6609_v39 }
 0xa44   : > { %6050 = vmatmul.mubr.bf16.gmra.mxu0 %v2670_v3 }
 0xa45   : > { %v6611_v22 = vpop.eup %6610 }
 0xa46   : > { %v6613_v59 = vpop.eup %6612  ;;  %2659 = vadd.xlane.f32.xlu1 %v6611_v22  ;;  %v2671_v58 = vpack.c.bf16 %v6611_v22, %v6609_v39 }
 0xa47   : > { %2661 = vadd.xlane.f32.xlu0 %v6613_v59 }
 0xa48   : > { %6053 = vmatprep.mubr.bf16.mxu0 %v2671_v58 }
 0xa49   : > { %v6615_v29 = vpop.eup %6614 }
 0xa4a   : > { %2663 = vadd.xlane.f32.xlu1 %v6615_v29  ;;  %v2672_v5 = vpack.c.bf16 %v6615_v29, %v6613_v59 }
 0xa4c   : > { %6054 = vmatmul.mubr.bf16.gmra.mxu0 %v2672_v5 }
 0xab3   : > { %v2634_v18 = vpop.xlane.xlu0 %2633 }
 0xab4   : > { %6616 = vrcp.f32 %v2634_v18  ;;  %v3204_v18 = vsel %vm940_vm0, %v8171_v11, 0 }
 0xab7   : > { %v2636_v50 = vpop.xlane.xlu1 %2635 }
 0xab8   : > { %v2638_v42 = vpop.xlane.xlu0 %2637 }
 0xabb   : > { %v2640_v60 = vpop.xlane.xlu1 %2639 }
 0xabc   : > { %v2642_v24 = vpop.xlane.xlu0 %2641  ;;  %6618 = vrcp.f32 %v2640_v60 }
 0xabd   : > { %6620 = vrcp.f32 %v2636_v50 }
 0xabe   : > { %6622 = vrcp.f32 %v2638_v42 }
 0xabf   : > { %v2644_v20 = vpop.xlane.xlu1 %2643  ;;  %6624 = vrcp.f32 %v2642_v24 }
 0xac0   : > { %v2646_v4 = vpop.xlane.xlu0 %2645 }
 0xac1   : > { %v6617_v34 = vpop.eup %6616 }
 0xac3   : > { %v2648_v57 = vpop.xlane.xlu1 %2647 }
 0xac4   : > { %v2650_v40 = vpop.xlane.xlu0 %2649  ;;  %6626 = vrcp.f32 %v2648_v57 }
 0xac5   : > { %6628 = vrcp.f32 %v2644_v20 }
 0xac6   : > { %6630 = vrcp.f32 %v2646_v4 }
 0xac7   : > { %v2652_v10 = vpop.xlane.xlu1 %2651  ;;  %6632 = vrcp.f32 %v2650_v40 }
 0xac8   : > { %v2654_v27 = vpop.xlane.xlu0 %2653 }
 0xac9   : > { %v6619_v14 = vpop.eup %6618 }
 0xaca   : > { %v6621_v43 = vpop.eup %6620 }
 0xacb   : > { %v2656_v55 = vpop.xlane.xlu1 %2655  ;;  %v6623_v47 = vpop.eup %6622 }
 0xacc   : > { %6634 = vrcp.f32 %v2656_v55  ;;  %v2658_v22 = vpop.xlane.xlu0 %2657  ;;  %v6625_v5 = vpop.eup %6624 }
 0xacd   : > { %6636 = vrcp.f32 %v2652_v10 }
 0xace   : > { %6638 = vrcp.f32 %v2654_v27 }
 0xacf   : > { %v2660_v25 = vpop.xlane.xlu1 %2659  ;;  %6640 = vrcp.f32 %v2658_v22 }
 0xad0   : > { %v2662_v10 = vpop.xlane.xlu0 %2661 }
 0xad1   : > { %v6627_v60 = vpop.eup %6626 }
 0xad2   : > { %v6629_v20 = vpop.eup %6628 }
 0xad3   : > { %v2664_v42 = vpop.xlane.xlu1 %2663  ;;  %v6631_v4 = vpop.eup %6630 }
 0xad4   : > { %6642 = vrcp.f32 %v2664_v42 }
 0xad5   : > { %6644 = vrcp.f32 %v2660_v25 }
 0xad6   : > { %6646 = vrcp.f32 %v2662_v10 }
 0xaf4   : > { %v6043_v23 = vpop.f32.mrf.mxu0 }
 0xaf5   : > { %v2788_v39 = vmul.f32 %v6623_v47, %v6043_v23 }
 0xaf6   : > { %v2707_v19 = vpop.f32.mrf.mxu0 }
 0xaf7   : > { %v2786_v62 = vmul.f32 %v6617_v34, %v2707_v19 }
 0xaf8   : > { %v6044_v2 = vpop.f32.mrf.mxu0 }
 0xaf9   : > { %v2789_v30 = vmul.f32 %v6619_v14, %v6044_v2  ;;  %v6633_v2 = vpop.eup %6632 }
 0xafa   : > { %v2710_v52 = vpop.f32.mrf.mxu0 }
 0xafb   : > { %v2787_v49 = vmul.f32 %v6621_v43, %v2710_v52  ;;  %v2803_v58 = vpack.c.bf16 %v2789_v30, %v2788_v39  ;;  %v3201_v43 = vsel %vm940_vm0, %v8181_v63, 0  ;;  %v6635_v30 = vpop.eup %6634 }
 0xafc   : > { %v6047_v3 = vpop.f32.mrf.mxu0  ;;  %v6637_v52 = vpop.eup %6636 }
 0xafd   : > { %v2802_v59 = vpack.c.bf16 %v2787_v49, %v2786_v62  ;;  %v2792_v55 = vmul.f32 %v6631_v4, %v6047_v3  ;;  %v6639_v62 = vpop.eup %6638 }
 0xafe   : > { %v2723_v29 = vpop.f32.mrf.mxu0 }
 0xaff   : > { %6061 = vmatprep.mubr.msk.bf16.mxu0 %vm940_vm0, %v2802_v59  ;;  %v2790_v40 = vmul.f32 %v6625_v5, %v2723_v29  ;;  %v6641_v5 = vpop.eup %6640 }
 0xb00   : > { %v6048_v50 = vpop.f32.mrf.mxu0  ;;  %6062 = vmatmul.mubr.msk.bf16.vlgmr.msra.gmra.mxu0 %vm940_vm0, %v2803_v58 }
 0xb01   : > { %6110 = vmatpush3.bf16.xpose.msra.mxu0 %v3204_v18  ;;  %v2793_v24 = vmul.f32 %v6627_v60, %v6048_v50  ;;  %v3198_v50 = vsel %vm940_vm0, %v8186_v31, 0  ;;  %v6643_v18 = vpop.eup %6642 }
 0xb02   : > { %6218 = vmatprep.subr.msk.bf16.mxu0 %vm940_vm0, %v8181_v63  ;;  %v2726_v57 = vpop.f32.mrf.mxu0  ;;  %v6645_v60 = vpop.eup %6644 }
 0xb03   : > { %v2791_v23 = vmul.f32 %v6629_v20, %v2726_v57  ;;  %v2805_v11 = vpack.c.bf16 %v2793_v24, %v2792_v55  ;;  %v6647_v24 = vpop.eup %6646  ;;  %v8985_v55 = vpack.c.bf16 %v8133_v37, %v8129_v7  ;;  %v3186_v7 = vsel %vm940_vm0, %v8202_v0, 0 }
 0xb04   : > { %v6051_v19 = vpop.f32.mrf.mxu0  ;;  %v3183_v37 = vsel %vm940_vm0, %v8206_v26, 0 }
 0xb05   : > { %v2804_v27 = vpack.c.bf16 %v2791_v23, %v2790_v40  ;;  %v2796_v3 = vmul.f32 %v6639_v62, %v6051_v19  ;;  %v3192_v19 = vsel %vm940_vm0, %v8194_v17, 0  ;;  %v8993_v62 = vld [vmem:[#allocation30_spill] sm:$0xff] }
 0xb06   : > { %v2739_v34 = vpop.f32.mrf.mxu0 }
 0xb07   : > { %6065 = vmatprep.mubr.msk.bf16.mxu0 %vm940_vm0, %v2804_v27  ;;  %v2794_v49 = vmul.f32 %v6633_v2, %v2739_v34  ;;  %v3189_v27 = vsel %vm940_vm0, %v8198_v8, 0 }
 0xb08   : > { %v6052_v14 = vpop.f32.mrf.mxu0  ;;  %6066 = vmatmul.mubr.msk.bf16.gmra.mxu0 %vm940_vm0, %v2805_v11 }
 0xb09   : > { %6112 = vmatpush3.bf16.xpose.msra.mxu0 %v3201_v43  ;;  %v2797_v47 = vmul.f32 %v6635_v30, %v6052_v14 }
 0xb0a   : > { %6219 = vmatprep.subr.msk.bf16.mxu0 %vm940_vm0, %v8186_v31  ;;  %v2742_v25 = vpop.f32.mrf.mxu0  ;;  %v3195_v31 = vsel %vm940_vm0, %v8190_v6, 0 }
 0xb0b   : > { %v2795_v39 = vmul.f32 %v6637_v52, %v2742_v25  ;;  %v2807_v58 = vpack.c.bf16 %v2797_v47, %v2796_v3  ;;  %v8992_v47 = vld [vmem:[#allocation33_spill] sm:$0xff] }
 0xb0c   : > { %v6055_v22 = vpop.f32.mrf.mxu0 }
 0xb0d   : > { %v2806_v59 = vpack.c.bf16 %v2795_v39, %v2794_v49  ;;  %v2800_v10 = vmul.f32 %v6647_v24, %v6055_v22  ;;  %v8994_v39 = vld [vmem:[#allocation32_spill] sm:$0xff]  ;;  %v8998_v24 = vld [vmem:[#allocation18_spill] sm:$0xff] }
 0xb0e   : > { %v2755_v29 = vpop.f32.mrf.mxu0 }
 0xb0f   : > { %6069 = vmatprep.mubr.msk.bf16.mxu0 %vm940_vm0, %v2806_v59  ;;  %v2798_v57 = vmul.f32 %v6641_v5, %v2755_v29 }
 0xb10   : > { %v6056_v63 = vpop.f32.mrf.mxu0  ;;  %6070 = vmatmul.mubr.msk.bf16.gmra.mxu0 %vm940_vm0, %v2807_v58 }
 0xb11   : > { %6114 = vmatpush3.bf16.xpose.msra.mxu0 %v3198_v50  ;;  %v2801_v42 = vmul.f32 %v6643_v18, %v6056_v63  ;;  %v8996_v63 = vld [vmem:[#allocation36_spill] sm:$0xff]  ;;  %v8997_v18 = vld [vmem:[#allocation17_spill] sm:$0xff] }
 0xb12   : > { %6220 = vmatprep.subr.msk.bf16.mxu0 %vm940_vm0, %v8190_v6  ;;  %v2758_v20 = vpop.f32.mrf.mxu0  ;;  %v8986_v6 = vpack.c.bf16 %v8126_v54, %v8124_v32  ;;  %v3146_v32 = vmul.f32 0.088388346, %v8167_v51 }
 0xb13   : > { %v2799_v4 = vmul.f32 %v6645_v60, %v2758_v20  ;;  %v2809_v23 = vpack.c.bf16 %v2801_v42, %v2800_v10 }
 0xb15   : > { %v2808_v40 = vpack.c.bf16 %v2799_v4, %v2798_v57  ;;  %v8999_v4 = vld [vmem:[#allocation19_spill] sm:$0xff] }
 0xb17   : > { %6073 = vmatprep.mubr.msk.bf16.mxu0 %vm940_vm0, %v2808_v40 }
 0xb18   : > { %6074 = vmatmul.mubr.msk.bf16.gmra.mxu0 %vm940_vm0, %v2809_v23 }
 0xb19   : > { %6116 = vmatpush3.bf16.xpose.msra.mxu0 %v3195_v31  ;;  %6125 = vmatprep.mubr.msk.bf16.mxu0 %vm940_vm0, %v8985_v55  ;;  %v9000_v31 = vld [vmem:[#allocation20_spill] sm:$0xff] }
 0xb1a   : > { %6221 = vmatprep.subr.msk.bf16.mxu0 %vm940_vm0, %v8194_v17  ;;  %v8988_v17 = vpack.c.bf16 %v8145_v38, %v8143_v15  ;;  %v8991_v15 = vpack.c.bf16 %v8173_v33, %v8169_v9 }
 0xb21   : > { %6118 = vmatpush3.bf16.xpose.msra.mxu0 %v3192_v19  ;;  %v9001_v19 = vld [vmem:[#allocation21_spill] sm:$0xff] }
 0xb22   : > { %6222 = vmatprep.subr.msk.bf16.mxu0 %vm940_vm0, %v8198_v8  ;;  %v8987_v8 = vpack.c.bf16 %v8151_v61, %v8147_v56  ;;  %v8990_v56 = vpack.c.bf16 %v8157_v41, %v8155_v13 }
 0xb29   : > { %6120 = vmatpush3.bf16.xpose.msra.mxu0 %v3189_v27 }
 0xb2a   : > { %6223 = vmatprep.subr.msk.bf16.mxu0 %vm940_vm0, %v8202_v0  ;;  %v8989_v0 = vpack.c.bf16 %v8163_v45, %v8159_v48 }
 0xb31   : > { %6122 = vmatpush3.bf16.xpose.msra.mxu0 %v3186_v7 }
 0xb32   : > { %6224 = vmatprep.subr.msk.bf16.mxu0 %vm940_vm0, %v8206_v26  ;;  %v3147_v26 = vmul.f32 0.088388346, %v8175_v44 }
 0xb34   : > { %v3156_v54 = vpack.c.bf16 %v3147_v26, %v3146_v32 }
 0xb39   : > { %6124 = vmatpush3.bf16.xpose.msra.mxu0 %v3183_v37 }
 0xb40   : > { %6126 = vmatmul.mubr.msk.bf16.vlgmr.msra.gmra.mxu0 %vm940_vm0, %v8986_v6  ;;  %v9002_v6 = vld [vmem:[#allocation22_spill] sm:$0xff] }
 0xb41   : > { %6129 = vmatprep.mubr.msk.bf16.mxu0 %vm940_vm0, %v8987_v8 }
 0xb48   : > { %6130 = vmatmul.mubr.msk.bf16.gmra.mxu0 %vm940_vm0, %v8988_v17  ;;  %v9003_v17 = vld [vmem:[#allocation23_spill] sm:$0xff] }
 0xb49   : > { %6133 = vmatprep.mubr.msk.bf16.mxu0 %vm940_vm0, %v8989_v0 }
 0xb50   : > { %6134 = vmatmul.mubr.msk.bf16.gmra.mxu0 %vm940_vm0, %v8990_v56 }
 0xb51   : > { %6137 = vmatprep.mubr.msk.bf16.mxu0 %vm940_vm0, %v3156_v54  ;;  %v9004_v54 = vld [vmem:[#allocation24_spill] sm:$0xff] }
 0xb58   : > { %6138 = vmatmul.mubr.msk.bf16.gmra.mxu0 %vm940_vm0, %v8991_v15  ;;  %v9005_v15 = vld [vmem:[#allocation38_spill] sm:$0xff] }
 0xbc0   : > { %v6063_v38 = vpop.f32.mrf.mxu0 }
 0xbc1   : > { %v8303_v45 = vadd.f32 %v6063_v38, %v7877_v1 }
 0xbc2   : > { %v2885_v44 = vpop.f32.mrf.mxu0 }
 0xbc3   : > { %v8306_v51 = vadd.f32 %v2885_v44, %v7879_v36 }
 0xbc4   : > { %v6064_v48 = vpop.f32.mrf.mxu0 }
 0xbc5   : > { %v8309_v41 = vadd.f32 %v6064_v48, %v7881_v35 }
 0xbc6   : > { %v8311_v13 = vpop.f32.mrf.mxu0 }
 0xbc8   : > { %v6067_v61 = vpop.f32.mrf.mxu0 }
 0xbc9   : > { %v8314_v11 = vadd.f32 %v6067_v61, %v7885_v12  ;;  %v9006_v61 = vld [vmem:[#allocation39_spill] sm:$0xff] }
 0xbca   : > { %v2901_v33 = vpop.f32.mrf.mxu0 }
 0xbcb   : > { %v8317_v9 = vadd.f32 %v2901_v33, %v7887_v28 }
 0xbcc   : > { %v6068_v1 = vpop.f32.mrf.mxu0 }
 0xbcd   : > { %v8320_v34 = vadd.f32 %v6068_v1, %v7889_v53  ;;  %v9007_v1 = vld [vmem:[#allocation40_spill] sm:$0xff] }
 0xbce   : > { %v8322_v36 = vpop.f32.mrf.mxu0 }
 0xbd0   : > { %v6071_v2 = vpop.f32.mrf.mxu0 }
 0xbd1   : > { %v8325_v35 = vadd.f32 %v6071_v2, %v7895_v46 }
 0xbd2   : > { %v2917_v14 = vpop.f32.mrf.mxu0 }
 0xbd3   : > { %v8328_v43 = vadd.f32 %v2917_v14, %v7897_v16 }
 0xbd4   : > { %v6072_v12 = vpop.f32.mrf.mxu0 }
 0xbd5   : > { %v8331_v30 = vadd.f32 %v6072_v12, %v7899_v21  ;;  %v8995_v21 = vld [vmem:[#allocation34_spill] sm:$0xff] }
 0xbd6   : > { %v8333_v28 = vpop.f32.mrf.mxu0 }
 0xbd8   : > { %v6075_v52 = vpop.f32.mrf.mxu0 }
 0xbd9   : > { %v8336_v53 = vadd.f32 %v6075_v52, %v8992_v47  ;;  %v9008_v52 = vld [vmem:[#allocation41_spill] sm:$0xff] }
 0xbda   : > { %v2933_v25 = vpop.f32.mrf.mxu0 }
 0xbdb   : > { %v8339_v49 = vadd.f32 %v2933_v25, %v8993_v62  ;;  %v9009_v25 = vld [vmem:[#allocation42_spill] sm:$0xff] }
 0xbdc   : > { %v6076_v46 = vpop.f32.mrf.mxu0 }
 0xbdd   : > { %v8342_v3 = vadd.f32 %v6076_v46, %v8994_v39  ;;  %v9010_v46 = vld [vmem:[#allocation43_spill] sm:$0xff] }
 0xbde   : > { %v8344_v16 = vpop.f32.mrf.mxu0 }
 0xc00   : > { %v6127_v22 = vpop.f32.mrf.mxu0 }
 0xc01   : > { %v3249_v50 = vadd.f32 %v8996_v63, %v6127_v22 }
 0xc02   : > { %v3240_v59 = vpop.f32.mrf.mxu0 }
 0xc03   : > { %v3241_v58 = vadd.f32 %v8995_v21, %v3240_v59 }
 0xc04   : > { %v6128_v29 = vpop.f32.mrf.mxu0 }
 0xc05   : > { %3303 = vmax.xlane.f32.xlu0 %v3241_v58  ;;  %v3252_v57 = vadd.f32 %v8998_v24, %v6128_v29 }
 0xc06   : > { %v3243_v5 = vpop.f32.mrf.mxu0 }
 0xc07   : > { %v3244_v60 = vadd.f32 %v8997_v18, %v3243_v5 }
 0xc08   : > { %v6131_v42 = vpop.f32.mrf.mxu0 }
 0xc09   : > { %3305 = vmax.xlane.f32.xlu1 %v3244_v60  ;;  %3307 = vmax.xlane.f32.xlu0 %v3249_v50  ;;  %v3265_v55 = vadd.f32 %v9000_v31, %v6131_v42 }
 0xc0a   : > { %v3256_v20 = vpop.f32.mrf.mxu0 }
 0xc0b   : > { %v3257_v10 = vadd.f32 %v8999_v4, %v3256_v20 }
 0xc0c   : > { %v6132_v40 = vpop.f32.mrf.mxu0 }
 0xc0d   : > { %3309 = vmax.xlane.f32.xlu1 %v3252_v57  ;;  %3311 = vmax.xlane.f32.xlu0 %v3257_v10  ;;  %v3268_v8 = vadd.f32 %v9002_v6, %v6132_v40 }
 0xc0e   : > { %v3259_v23 = vpop.f32.mrf.mxu0 }
 0xc0f   : > { %v3260_v27 = vadd.f32 %v9001_v19, %v3259_v23 }
 0xc10   : > { %v6135_v7 = vpop.f32.mrf.mxu0 }
 0xc11   : > { %3313 = vmax.xlane.f32.xlu1 %v3260_v27  ;;  %3315 = vmax.xlane.f32.xlu0 %v3265_v55  ;;  %v8356_v56 = vadd.f32 %v9004_v54, %v6135_v7 }
 0xc12   : > { %v3272_v37 = vpop.f32.mrf.mxu0 }
 0xc13   : > { %v3273_v0 = vadd.f32 %v9003_v17, %v3272_v37 }
 0xc14   : > { %v6136_v26 = vpop.f32.mrf.mxu0 }
 0xc15   : > { %3317 = vmax.xlane.f32.xlu1 %v3268_v8  ;;  %3319 = vmax.xlane.f32.xlu0 %v3273_v0  ;;  %v8361_v33 = vadd.f32 %v9006_v61, %v6136_v26 }
 0xc16   : > { %v3275_v32 = vpop.f32.mrf.mxu0 }
 0xc17   : > { %v3276_v38 = vadd.f32 %v9005_v15, %v3275_v32 }
 0xc18   : > { %v6139_v44 = vpop.f32.mrf.mxu0 }
 0xc19   : > { %3321 = vmax.xlane.f32.xlu1 %v3276_v38  ;;  %3323 = vmax.xlane.f32.xlu0 %v8356_v56  ;;  %v8369_v47 = vadd.f32 %v9008_v52, %v6139_v44 }
 0xc1a   : > { %v3288_v48 = vpop.f32.mrf.mxu0 }
 0xc1b   : > { %v8364_v2 = vadd.f32 %v9007_v1, %v3288_v48 }
 0xc1c   : > { %v6140_v14 = vpop.f32.mrf.mxu0 }
 0xc1d   : > { %3325 = vmax.xlane.f32.xlu1 %v8361_v33  ;;  %3327 = vmax.xlane.f32.xlu0 %v8364_v2  ;;  %v8377_v39 = vadd.f32 %v9010_v46, %v6140_v14 }
 0xc1e   : > { %v3291_v12 = vpop.f32.mrf.mxu0 }
 0xc1f   : > { %v8372_v62 = vadd.f32 %v9009_v25, %v3291_v12 }
 0xc21   : > { %3329 = vmax.xlane.f32.xlu1 %v8372_v62  ;;  %3331 = vmax.xlane.f32.xlu0 %v8369_v47 }
 0xc25   : > { %3333 = vmax.xlane.f32.xlu1 %v8377_v39 }
 0xc8e   : > { %v3304_v22 = vpop.xlane.xlu0 %3303 }
 0xc8f   : > { %v3335_v59 = vsub.f32 %v3241_v58, %v3304_v22 }
 0xc91   : > { %v3351_v21 = vmul.f32 1.442695, %v3335_v59 }
 0xc92   : > { %v3306_v29 = vpop.xlane.xlu1 %3305  ;;  %v3308_v5 = vpop.xlane.xlu0 %3307 }
 0xc93   : > { %6648 = vpow2.f32 %v3351_v21  ;;  %v3336_v63 = vsub.f32 %v3244_v60, %v3306_v29  ;;  %v3337_v18 = vsub.f32 %v3249_v50, %v3308_v5 }
 0xc95   : > { %v3353_v42 = vmul.f32 1.442695, %v3336_v63  ;;  %v3355_v20 = vmul.f32 1.442695, %v3337_v18 }
 0xc96   : > { %v3310_v24 = vpop.xlane.xlu1 %3309  ;;  %v3312_v4 = vpop.xlane.xlu0 %3311 }
 0xc97   : > { %6650 = vpow2.f32 %v3353_v42  ;;  %v3338_v40 = vsub.f32 %v3252_v57, %v3310_v24  ;;  %v3339_v23 = vsub.f32 %v3257_v10, %v3312_v4 }
 0xc98   : > { %6652 = vpow2.f32 %v3355_v20 }
 0xc99   : > { %v3357_v31 = vmul.f32 1.442695, %v3338_v40  ;;  %v3359_v19 = vmul.f32 1.442695, %v3339_v23 }
 0xc9a   : > { %v3314_v7 = vpop.xlane.xlu1 %3313  ;;  %v3316_v37 = vpop.xlane.xlu0 %3315 }
 0xc9b   : > { %6654 = vpow2.f32 %v3357_v31  ;;  %v3340_v58 = vsub.f32 %v3260_v27, %v3314_v7  ;;  %v3341_v6 = vsub.f32 %v3265_v55, %v3316_v37 }
 0xc9c   : > { %6656 = vpow2.f32 %v3359_v19 }
 0xc9d   : > { %v3361_v17 = vmul.f32 1.442695, %v3340_v58  ;;  %v3363_v26 = vmul.f32 1.442695, %v3341_v6 }
 0xc9e   : > { %v3318_v60 = vpop.xlane.xlu1 %3317  ;;  %v3320_v50 = vpop.xlane.xlu0 %3319 }
 0xc9f   : > { %6658 = vpow2.f32 %v3361_v17  ;;  %v3342_v32 = vsub.f32 %v3268_v8, %v3318_v60  ;;  %v3343_v54 = vsub.f32 %v3273_v0, %v3320_v50 }
 0xca0   : > { %v6649_v15 = vpop.eup %6648  ;;  %6660 = vpow2.f32 %v3363_v26 }
 0xca1   : > { %v3365_v57 = vmul.f32 1.442695, %v3342_v32  ;;  %v3367_v10 = vmul.f32 1.442695, %v3343_v54  ;;  %3383 = vadd.xlane.f32.xlu0 %v6649_v15  ;;  %v6342_v54 = vld [vmem:[%s8850_s3 + $0x38] sm:$0xff]  }
 0xca2   : > { %v3322_v44 = vpop.xlane.xlu1 %3321  ;;  %v3324_v48 = vpop.xlane.xlu0 %3323  ;;  %6173 = vmatprep.subr.bf16.mxu1 %v6342_v54 }
 0xca3   : > { %6662 = vpow2.f32 %v3365_v57  ;;  %v3344_v61 = vsub.f32 %v3276_v38, %v3322_v44  ;;  %v3345_v27 = vsub.f32 %v8356_v56, %v3324_v48 }
 0xca4   : > { %v6651_v55 = vpop.eup %6650  ;;  %6664 = vpow2.f32 %v3367_v10 }
 0xca5   : > { %v6653_v1 = vpop.eup %6652  ;;  %v3369_v14 = vmul.f32 1.442695, %v3344_v61  ;;  %v3371_v12 = vmul.f32 1.442695, %v3345_v27  ;;  %3385 = vadd.xlane.f32.xlu1 %v6651_v55  ;;  %v3415_v52 = vpack.c.bf16 %v6651_v55, %v6649_v15  ;;  %v6343_v15 = vld [vmem:[%s8850_s3 + $0x30] sm:$0xff]  }
 0xca6   : > { %3387 = vadd.xlane.f32.xlu0 %v6653_v1  ;;  %v3326_v8 = vpop.xlane.xlu1 %3325  ;;  %v3328_v0 = vpop.xlane.xlu0 %3327 }
 0xca7   : > { %6666 = vpow2.f32 %v3369_v14  ;;  %v3346_v25 = vsub.f32 %v8361_v33, %v3326_v8  ;;  %v3347_v46 = vsub.f32 %v8364_v2, %v3328_v0  ;;  %6157 = vmatprep.mubr.bf16.mxu1 %v3415_v52 }
 0xca8   : > { %v6655_v22 = vpop.eup %6654  ;;  %6668 = vpow2.f32 %v3371_v12 }
 0xca9   : > { %v6657_v38 = vpop.eup %6656  ;;  %v3373_v56 = vmul.f32 1.442695, %v3346_v25  ;;  %v3375_v59 = vmul.f32 1.442695, %v3347_v46  ;;  %3389 = vadd.xlane.f32.xlu1 %v6655_v22  ;;  %v3416_v21 = vpack.c.bf16 %v6655_v22, %v6653_v1 }
 0xcaa   : > { %3391 = vadd.xlane.f32.xlu0 %v6657_v38  ;;  %v3330_v29 = vpop.xlane.xlu1 %3329  ;;  %v3332_v5 = vpop.xlane.xlu0 %3331 }
 0xcab   : > { %6670 = vpow2.f32 %v3373_v56  ;;  %v3348_v63 = vsub.f32 %v8372_v62, %v3330_v29  ;;  %v3349_v18 = vsub.f32 %v8369_v47, %v3332_v5  ;;  %6158 = vmatmul.mubr.bf16.vlgmr.msra.gmra.mxu1 %v3416_v21 }
 0xcac   : > { %v6659_v33 = vpop.eup %6658  ;;  %6672 = vpow2.f32 %v3375_v59  ;;  %6174 = vmatpush3.bf16.msra.mxu1 %v6342_v54 }
 0xcad   : > { %v6661_v2 = vpop.eup %6660  ;;  %v3377_v42 = vmul.f32 1.442695, %v3348_v63  ;;  %v3379_v20 = vmul.f32 1.442695, %v3349_v18  ;;  %3393 = vadd.xlane.f32.xlu1 %v6659_v33  ;;  %v3417_v24 = vpack.c.bf16 %v6659_v33, %v6657_v38  ;;  %6175 = vmatprep.subr.bf16.mxu1 %v6343_v15 }
 0xcae   : > { %3395 = vadd.xlane.f32.xlu0 %v6661_v2  ;;  %v3334_v4 = vpop.xlane.xlu1 %3333 }
 0xcaf   : > { %6674 = vpow2.f32 %v3377_v42  ;;  %v3350_v40 = vsub.f32 %v8377_v39, %v3334_v4  ;;  %6161 = vmatprep.mubr.bf16.mxu1 %v3417_v24 }
 0xcb0   : > { %v6663_v23 = vpop.eup %6662  ;;  %6676 = vpow2.f32 %v3379_v20  ;;  %6176 = vmatpush3.bf16.msra.mxu1 %v6343_v15 }
 0xcb1   : > { %v6665_v31 = vpop.eup %6664  ;;  %v3381_v62 = vmul.f32 1.442695, %v3350_v40  ;;  %3397 = vadd.xlane.f32.xlu1 %v6663_v23  ;;  %v3418_v47 = vpack.c.bf16 %v6663_v23, %v6661_v2 }
 0xcb2   : > { %3399 = vadd.xlane.f32.xlu0 %v6665_v31 }
 0xcb3   : > { %6678 = vpow2.f32 %v3381_v62  ;;  %6162 = vmatmul.mubr.bf16.gmra.mxu1 %v3418_v47 }
 0xcb4   : > { %v6667_v19 = vpop.eup %6666 }
 0xcb5   : > { %v6669_v7 = vpop.eup %6668  ;;  %3401 = vadd.xlane.f32.xlu1 %v6667_v19  ;;  %v3419_v37 = vpack.c.bf16 %v6667_v19, %v6665_v31 }
 0xcb6   : > { %3403 = vadd.xlane.f32.xlu0 %v6669_v7 }
 0xcb7   : > { %6165 = vmatprep.mubr.bf16.mxu1 %v3419_v37 }
 0xcb8   : > { %v6671_v58 = vpop.eup %6670 }
 0xcb9   : > { %v6673_v6 = vpop.eup %6672  ;;  %3405 = vadd.xlane.f32.xlu1 %v6671_v58  ;;  %v3420_v39 = vpack.c.bf16 %v6671_v58, %v6669_v7 }
 0xcba   : > { %3407 = vadd.xlane.f32.xlu0 %v6673_v6 }
 0xcbb   : > { %6166 = vmatmul.mubr.bf16.gmra.mxu1 %v3420_v39 }
 0xcbc   : > { %v6675_v17 = vpop.eup %6674 }
 0xcbd   : > { %v6677_v26 = vpop.eup %6676  ;;  %3409 = vadd.xlane.f32.xlu1 %v6675_v17  ;;  %v3421_v60 = vpack.c.bf16 %v6675_v17, %v6673_v6 }
 0xcbe   : > { %3411 = vadd.xlane.f32.xlu0 %v6677_v26 }
 0xcbf   : > { %6169 = vmatprep.mubr.bf16.mxu1 %v3421_v60 }
 0xcc0   : > { %v6679_v50 = vpop.eup %6678 }
 0xcc1   : > { %3413 = vadd.xlane.f32.xlu1 %v6679_v50  ;;  %v3422_v32 = vpack.c.bf16 %v6679_v50, %v6677_v26 }
 0xcc3   : > { %6170 = vmatmul.mubr.bf16.gmra.mxu1 %v3422_v32 }
 0xd2a   : > { %v3384_v10 = vpop.xlane.xlu0 %3383 }
 0xd2b   : > { %6680 = vrcp.f32 %v3384_v10 }
 0xd2e   : > { %v3386_v57 = vpop.xlane.xlu1 %3385 }
 0xd2f   : > { %v3388_v48 = vpop.xlane.xlu0 %3387 }
 0xd32   : > { %v3390_v44 = vpop.xlane.xlu1 %3389 }
 0xd33   : > { %v3392_v27 = vpop.xlane.xlu0 %3391  ;;  %6682 = vrcp.f32 %v3390_v44 }
 0xd34   : > { %6684 = vrcp.f32 %v3386_v57 }
 0xd35   : > { %6686 = vrcp.f32 %v3388_v48 }
 0xd36   : > { %v3394_v61 = vpop.xlane.xlu1 %3393  ;;  %6688 = vrcp.f32 %v3392_v27 }
 0xd37   : > { %v3396_v1 = vpop.xlane.xlu0 %3395 }
 0xd38   : > { %v6681_v46 = vpop.eup %6680 }
 0xd3a   : > { %v3398_v55 = vpop.xlane.xlu1 %3397 }
 0xd3b   : > { %v3400_v12 = vpop.xlane.xlu0 %3399  ;;  %6690 = vrcp.f32 %v3398_v55 }
 0xd3c   : > { %6692 = vrcp.f32 %v3394_v61 }
 0xd3d   : > { %6694 = vrcp.f32 %v3396_v1 }
 0xd3e   : > { %v3402_v14 = vpop.xlane.xlu1 %3401  ;;  %6696 = vrcp.f32 %v3400_v12 }
 0xd3f   : > { %v3404_v25 = vpop.xlane.xlu0 %3403 }
 0xd40   : > { %v6683_v38 = vpop.eup %6682 }
 0xd41   : > { %v6685_v56 = vpop.eup %6684 }
 0xd42   : > { %v3406_v8 = vpop.xlane.xlu1 %3405  ;;  %v6687_v29 = vpop.eup %6686 }
 0xd43   : > { %6698 = vrcp.f32 %v3406_v8  ;;  %v3408_v42 = vpop.xlane.xlu0 %3407  ;;  %v6689_v40 = vpop.eup %6688 }
 0xd44   : > { %6700 = vrcp.f32 %v3402_v14 }
 0xd45   : > { %6702 = vrcp.f32 %v3404_v25 }
 0xd46   : > { %v3410_v5 = vpop.xlane.xlu1 %3409  ;;  %6704 = vrcp.f32 %v3408_v42  ;;  %v9011_v42 = vld [vmem:[#allocation29_spill] sm:$0xff] }
 0xd47   : > { %v3412_v58 = vpop.xlane.xlu0 %3411 }
 0xd48   : > { %v6691_v31 = vpop.eup %6690 }
 0xd49   : > { %v6693_v47 = vpop.eup %6692 }
 0xd4a   : > { %v3414_v62 = vpop.xlane.xlu1 %3413  ;;  %v6695_v37 = vpop.eup %6694 }
 0xd4b   : > { %6706 = vrcp.f32 %v3414_v62  ;;  %v6697_v54 = vpop.eup %6696  ;;  %v6760_v62 = vld [vmem:[%s7109_s24] sm:$0xff] }
 0xd4c   : > { %6708 = vrcp.f32 %v3410_v5 }
 0xd4d   : > { %6710 = vrcp.f32 %v3412_v58 }
 0xd50   : > { %v6699_v57 = vpop.eup %6698 }
 0xd51   : > { %v6701_v10 = vpop.eup %6700 }
 0xd52   : > { %v6703_v61 = vpop.eup %6702 }
 0xd6b   : > { %v6159_v52 = vpop.f32.mrf.mxu1 }
 0xd6c   : > { %v3538_v33 = vmul.f32 %v6687_v29, %v6159_v52 }
 0xd6d   : > { %v3457_v0 = vpop.f32.mrf.mxu1 }
 0xd6e   : > { %v3536_v63 = vmul.f32 %v6681_v46, %v3457_v0  ;;  %v6705_v0 = vpop.eup %6704 }
 0xd6f   : > { %v6160_v22 = vpop.f32.mrf.mxu1  ;;  %v6707_v46 = vpop.eup %6706 }
 0xd70   : > { %v3539_v59 = vmul.f32 %v6683_v38, %v6160_v22  ;;  %v6709_v22 = vpop.eup %6708 }
 0xd71   : > { %v3460_v21 = vpop.f32.mrf.mxu1 }
 0xd72   : > { %v3537_v18 = vmul.f32 %v6685_v56, %v3460_v21  ;;  %v3553_v24 = vpack.c.bf16 %v3539_v59, %v3538_v33  ;;  %v6711_v59 = vpop.eup %6710 }
 0xd73   : > { %v6163_v2 = vpop.f32.mrf.mxu1 }
 0xd74   : > { %v3552_v20 = vpack.c.bf16 %v3537_v18, %v3536_v63  ;;  %v3542_v17 = vmul.f32 %v6695_v37, %v6163_v2  ;;  %v6761_v37 = vld [vmem:[%s7109_s24 + $0x10] sm:$0xff] }
 0xd75   : > { %v3473_v4 = vpop.f32.mrf.mxu1 }
 0xd76   : > { %6177 = vmatprep.mubr.msk.bf16.mxu1 %vm940_vm0, %v3552_v20  ;;  %v3540_v6 = vmul.f32 %v6689_v40, %v3473_v4  ;;  %v9012_v20 = vld [vmem:[#allocation25_spill] sm:$0xff] }
 0xd77   : > { %v6164_v23 = vpop.f32.mrf.mxu1  ;;  %6178 = vmatmul.mubr.msk.bf16.vlgmr.msra.gmra.mxu1 %vm940_vm0, %v3553_v24  ;;  %v2155_v24 = vadd.f32 %v9012_v20, %v9011_v42 }
 0xd78   : > { %v3543_v19 = vmul.f32 %v6691_v31, %v6164_v23 }
 0xd79   : > { %v3476_v7 = vpop.f32.mrf.mxu1  ;;  %v2949_v31 = vadd.f32 %v8311_v13, %v2155_v24  ;;  %v6762_v13 = vld [vmem:[%s7109_s24 + $0x8] sm:$0xff] }
 0xd7a   : > { %v3541_v39 = vmul.f32 %v6693_v47, %v3476_v7  ;;  %v3555_v50 = vpack.c.bf16 %v3543_v19, %v3542_v17  ;;  %v8409_v7 = vld [vmem:[%s8851_s4] ss:$0 sm:$0xff] }
 0xd7b   : > { %v6167_v26 = vpop.f32.mrf.mxu1 }
 0xd7c   : > { %v3554_v60 = vpack.c.bf16 %v3541_v39, %v3540_v6  ;;  %v3546_v1 = vmul.f32 %v6703_v61, %v6167_v26  ;;  %v9013_v26 = vld [vmem:[#allocation26_spill] sm:$0xff] }
 0xd7d   : > { %v3489_v32 = vpop.f32.mrf.mxu1 }
 0xd7e   : > { %6181 = vmatprep.mubr.msk.bf16.mxu1 %vm940_vm0, %v3554_v60  ;;  %v3544_v27 = vmul.f32 %v6697_v54, %v3489_v32  ;;  %v9014_v60 = vld [vmem:[#allocation27_spill] sm:$0xff] }
 0xd7f   : > { %v6168_v15 = vpop.f32.mrf.mxu1  ;;  %6182 = vmatmul.mubr.msk.bf16.gmra.mxu1 %vm940_vm0, %v3555_v50  ;;  %v2171_v50 = vadd.f32 %v9014_v60, %v9013_v26 }
 0xd80   : > { %v3547_v44 = vmul.f32 %v6699_v57, %v6168_v15  ;;  %v6763_v15 = vld [vmem:[%s7109_s24 + $0x18] sm:$0xff] }
 0xd81   : > { %v3492_v48 = vpop.f32.mrf.mxu1  ;;  %v2953_v61 = vadd.f32 %v8322_v36, %v2171_v50  ;;  %v6772_v50 = vld [vmem:[%s7109_s24 + $0x60] sm:$0xff] }
 0xd82   : > { %v3545_v55 = vmul.f32 %v6701_v10, %v3492_v48  ;;  %v3557_v52 = vpack.c.bf16 %v3547_v44, %v3546_v1 }
 0xd83   : > { %v6171_v14 = vpop.f32.mrf.mxu1 }
 0xd84   : > { %v3556_v12 = vpack.c.bf16 %v3545_v55, %v3544_v27  ;;  %v3550_v5 = vmul.f32 %v6711_v59, %v6171_v14  ;;  %v6764_v27 = vld [vmem:[%s7109_s24 + $0x20] sm:$0xff]  ;;  %v6767_v59 = vld [vmem:[%s7109_s24 + $0x38] sm:$0xff] }
 0xd85   : > { %v3505_v8 = vpop.f32.mrf.mxu1 }
 0xd86   : > { %6185 = vmatprep.mubr.msk.bf16.mxu1 %vm940_vm0, %v3556_v12  ;;  %v3548_v21 = vmul.f32 %v6705_v0, %v3505_v8  ;;  %v6766_v0 = vld [vmem:[%s7109_s24 + $0x28] sm:$0xff] }
 0xd87   : > { %v6172_v25 = vpop.f32.mrf.mxu1  ;;  %6186 = vmatmul.mubr.msk.bf16.gmra.mxu1 %vm940_vm0, %v3557_v52 }
 0xd88   : > { %v3551_v38 = vmul.f32 %v6707_v46, %v6172_v25  ;;  %v9015_v46 = vld [vmem:[#allocation31_spill] sm:$0xff] }
 0xd89   : > { %v3508_v56 = vpop.f32.mrf.mxu1 }
 0xd8a   : > { %v3549_v29 = vmul.f32 %v6709_v22, %v3508_v56  ;;  %v3559_v18 = vpack.c.bf16 %v3551_v38, %v3550_v5  ;;  %v9016_v22 = vld [vmem:[#allocation28_spill] sm:$0xff] }
 0xd8b   : > { %v2187_v38 = vadd.f32 %v9016_v22, %v9015_v46 }
 0xd8c   : > { %v3558_v63 = vpack.c.bf16 %v3549_v29, %v3548_v21 }
 0xd8e   : > { %6189 = vmatprep.mubr.msk.bf16.mxu1 %vm940_vm0, %v3558_v63 }
 0xd8f   : > { %6190 = vmatmul.mubr.msk.bf16.gmra.mxu1 %vm940_vm0, %v3559_v18 }
 0xe37   : > { %v6179_v33 = vpop.f32.mrf.mxu1 }
 0xe38   : > { %v3700_v4 = vadd.f32 %v6179_v33, %v8303_v45  ;;  %v2957_v33 = vadd.f32 %v8333_v28, %v2187_v38 }
 0xe39   : > { %v3635_v2 = vpop.f32.mrf.mxu1 }
 0xe3a   : > { %v3698_v40 = vadd.f32 %v3635_v2, %v8306_v51  ;;  %v3716_v58 = vadd.f32 %v6761_v37, %v3700_v4  ;;  %v6768_v2 = vld [vmem:[%s7109_s24 + $0x40] sm:$0xff]  ;;  %v6771_v37 = vld [vmem:[%s7109_s24 + $0x58] sm:$0xff] }
 0xe3b   : > { %v6180_v23 = vpop.f32.mrf.mxu1 }
 0xe3c   : > { %v3714_v47 = vadd.f32 %v6760_v62, %v3698_v40  ;;  %v3701_v6 = vadd.f32 %v6180_v23, %v8309_v41  ;;  %v8424_v10 = vadd.f32 %v8409_v7, %v3716_v58 }
 0xe3d   : > { %v3638_v19 = vpop.f32.mrf.mxu1 }
 0xe3e   : > { %v3699_v39 = vadd.f32 %v3638_v19, %v2949_v31  ;;  %v8414_v45 = vadd.f32 %v8409_v7, %v3714_v47  ;;  %v3717_v57 = vadd.f32 %v6763_v15, %v3701_v6  ;;  %v6770_v31 = vld [vmem:[%s7109_s24 + $0x48] sm:$0xff]  ;;  %v9017_v47 = vld [vmem:[#allocation35_spill] sm:$0xff] }
 0xe3f   : > { %v6183_v51 = vpop.f32.mrf.mxu1 }
 0xe40   : > { %v3715_v17 = vadd.f32 %v6762_v13, %v3699_v39  ;;  %3755 = vadd.xlane.f32.xlu0 %v8414_v45  ;;  %v3704_v32 = vadd.f32 %v6183_v51, %v8314_v11  ;;  %v6765_v11 = vld [vmem:[%s7109_s24 + $0x30] sm:$0xff]  ;;  %v8436_v52 = vadd.f32 %v8409_v7, %v3717_v57 }
 0xe41   : > { %v3651_v54 = vpop.f32.mrf.mxu1 }
 0xe42   : > { %v3702_v41 = vadd.f32 %v3651_v54, %v8317_v9  ;;  %v8427_v44 = vadd.f32 %v8409_v7, %v3715_v17  ;;  %v3720_v1 = vadd.f32 %v6765_v11, %v3704_v32  ;;  %v6773_v54 = vld [vmem:[%s7109_s24 + $0x70] sm:$0xff] }
 0xe43   : > { %v6184_v48 = vpop.f32.mrf.mxu1 }
 0xe44   : > { %v3718_v55 = vadd.f32 %v6764_v27, %v3702_v41  ;;  %3759 = vadd.xlane.f32.xlu0 %v8424_v10  ;;  %3757 = vadd.xlane.f32.xlu1 %v8427_v44  ;;  %v3705_v14 = vadd.f32 %v6184_v48, %v8320_v34  ;;  %v8447_v56 = vadd.f32 %v8409_v7, %v3720_v1  ;;  %v6775_v27 = vld [vmem:[%s7109_s24 + $0x78] sm:$0xff] }
 0xe45   : > { %v3654_v9 = vpop.f32.mrf.mxu1 }
 0xe46   : > { %v3703_v12 = vadd.f32 %v3654_v9, %v2953_v61  ;;  %v8439_v8 = vadd.f32 %v8409_v7, %v3718_v55  ;;  %v3721_v21 = vadd.f32 %v6767_v59, %v3705_v14  ;;  %v6344_v9 = vld [vmem:[#allocation5 + $0xe0] ss:$16 sps:$4 sm:$0xff]   ;;  %v6346_v14 = vld [vmem:[#allocation5 + $0xe4] ss:$16 sps:$4 sm:$0xff]  }
 0xe47   : > { %v6187_v36 = vpop.f32.mrf.mxu1  ;;  %4197 = vmatprep.subr.bf16.mxu0 %v6346_v14  ;;  %v6361_v14 = vld [vmem:[#allocation5 + $0xac] ss:$16 sps:$4 sm:$0xff]  }
 0xe48   : > { %v3719_v25 = vadd.f32 %v6766_v0, %v3703_v12  ;;  %3761 = vadd.xlane.f32.xlu1 %v8436_v52  ;;  %3763 = vadd.xlane.f32.xlu0 %v8439_v8  ;;  %v3708_v29 = vadd.f32 %v6187_v36, %v8325_v35  ;;  %v6769_v35 = vld [vmem:[%s7109_s24 + $0x50] sm:$0xff]  ;;  %v8462_v40 = vadd.f32 %v8409_v7, %v3721_v21  ;;  %v6347_v12 = vld [vmem:[#allocation5 + $0xe8] ss:$16 sps:$4 sm:$0xff]   ;;  %v6349_v36 = vld [vmem:[#allocation5 + $0xec] ss:$16 sps:$4 sm:$0xff]  }
 0xe49   : > { %v3667_v34 = vpop.f32.mrf.mxu1  ;;  %4198 = vmatpush1.bf16.msra.mxu0 %v6344_v9  ;;  %4310 = vmatprep.subr.bf16.mxu1 %v6349_v36  ;;  %v6358_v9 = vld [vmem:[#allocation5 + $0xa4] ss:$16 sps:$4 sm:$0xff]  }
 0xe4a   : > { %v3706_v5 = vadd.f32 %v3667_v34, %v8328_v43  ;;  %v8453_v63 = vadd.f32 %v8409_v7, %v3719_v25  ;;  %v3724_v4 = vadd.f32 %v6769_v35, %v3708_v29  ;;  %4311 = vmatpush1.bf16.msra.mxu1 %v6347_v12 }
 0xe4b   : > { %v6188_v18 = vpop.f32.mrf.mxu1 }
 0xe4c   : > { %v3722_v42 = vadd.f32 %v6768_v2, %v3706_v5  ;;  %3767 = vadd.xlane.f32.xlu0 %v8447_v56  ;;  %3765 = vadd.xlane.f32.xlu1 %v8453_v63  ;;  %v3709_v20 = vadd.f32 %v6188_v18, %v8331_v30  ;;  %v9018_v30 = vld [vmem:[#allocation37_spill] sm:$0xff]  ;;  %v8476_v13 = vadd.f32 %v8409_v7, %v3724_v4 }
 0xe4d   : > { %v3670_v24 = vpop.f32.mrf.mxu1  ;;  %v2203_v19 = vadd.f32 %v9018_v30, %v9017_v47 }
 0xe4e   : > { %v3707_v43 = vadd.f32 %v3670_v24, %v2957_v33  ;;  %v8465_v23 = vadd.f32 %v8409_v7, %v3722_v42  ;;  %v3725_v58 = vadd.f32 %v6771_v37, %v3709_v20 }
 0xe4f   : > { %v6191_v28 = vpop.f32.mrf.mxu1  ;;  %v2961_v60 = vadd.f32 %v8344_v16, %v2203_v19  ;;  %v6774_v16 = vld [vmem:[%s7109_s24 + $0x68] sm:$0xff] }
 0xe50   : > { %v3723_v62 = vadd.f32 %v6770_v31, %v3707_v43  ;;  %3769 = vadd.xlane.f32.xlu1 %v8462_v40  ;;  %3771 = vadd.xlane.f32.xlu0 %v8465_v23  ;;  %v3712_v39 = vadd.f32 %v6191_v28, %v8336_v53 }
 0xe51   : > { %v3683_v6 = vpop.f32.mrf.mxu1 }
 0xe52   : > { %v3710_v51 = vadd.f32 %v3683_v6, %v8339_v49  ;;  %v8479_v17 = vadd.f32 %v8409_v7, %v3723_v62  ;;  %v8486_v49 = vadd.f32 %v8409_v7, %v3725_v58  ;;  %v3728_v15 = vadd.f32 %v6773_v54, %v3712_v39  ;;  %v6350_v54 = vld [vmem:[#allocation5 + $0xc0] ss:$16 sps:$4 sm:$0xff]  }
 0xe53   : > { %v6192_v26 = vpop.f32.mrf.mxu1 }
 0xe54   : > { %v3726_v32 = vadd.f32 %v6772_v50, %v3710_v51  ;;  %3775 = vadd.xlane.f32.xlu0 %v8476_v13  ;;  %3773 = vadd.xlane.f32.xlu1 %v8479_v17  ;;  %v3713_v57 = vadd.f32 %v6192_v26, %v8342_v3  ;;  %v8501_v1 = vadd.f32 %v8409_v7, %v3728_v15  ;;  %v6355_v50 = vld [vmem:[#allocation5 + $0xcc] ss:$16 sps:$4 sm:$0xff]   ;;  %v6353_v15 = vld [vmem:[#allocation5 + $0xc8] ss:$16 sps:$4 sm:$0xff]  }
 0xe55   : > { %v3686_v53 = vpop.f32.mrf.mxu1  ;;  %4312 = vmatprep.subr.bf16.mxu1 %v6355_v50 }
 0xe56   : > { %v3711_v41 = vadd.f32 %v3686_v53, %v2961_v60  ;;  %v8491_v48 = vadd.f32 %v8409_v7, %v3726_v32  ;;  %v3729_v55 = vadd.f32 %v6775_v27, %v3713_v57  ;;  %v6352_v60 = vld [vmem:[#allocation5 + $0xc4] ss:$16 sps:$4 sm:$0xff]   ;;  %4313 = vmatpush1.bf16.msra.mxu1 %v6353_v15 }
 0xe57   : > { %4199 = vmatprep.subr.bf16.mxu0 %v6352_v60  ;;  %4314 = vmatprep.subr.bf16.mxu1 %v6361_v14  ;;  %v6371_v60 = vld [vmem:[#allocation5 + $0x68] ss:$16 sps:$4 sm:$0xff]   ;;  %v6382_v14 = vld [vmem:[#allocation5 + $0x24] ss:$16 sps:$4 sm:$0xff]  }
 0xe58   : > { %v3727_v61 = vadd.f32 %v6774_v16, %v3711_v41  ;;  %3777 = vadd.xlane.f32.xlu1 %v8486_v49  ;;  %3779 = vadd.xlane.f32.xlu0 %v8491_v48  ;;  %v8506_v3 = vadd.f32 %v8409_v7, %v3729_v55 }
 0xe59   : > { %4200 = vmatpush1.bf16.msra.mxu0 %v6350_v54 }
 0xe5a   : > { %v8498_v11 = vadd.f32 %v8409_v7, %v3727_v61  ;;  %4201 = vmatprep.subr.bf16.mxu0 %v6358_v9 }
 0xe5c   : > { %3781 = vadd.xlane.f32.xlu1 %v8498_v11  ;;  %3783 = vadd.xlane.f32.xlu0 %v8501_v1 }
 0xe60   : > { %3785 = vadd.xlane.f32.xlu1 %v8506_v3 }
 0xec9   : > { %v3756_v0 = vpop.xlane.xlu0 %3755 }
 0xeca   : > { %v3787_v25 = vmul.f32 0.0078125, %v3756_v0  ;;  %v6356_v0 = vld [vmem:[#allocation5 + $0xa0] ss:$16 sps:$4 sm:$0xff]  }
 0xecb   : > { %4202 = vmatpush1.bf16.msra.mxu0 %v6356_v0  ;;  %v6385_v0 = vld [vmem:[#allocation5 + $0x2c] ss:$16 sps:$4 sm:$0xff]  }
 0xecc   : > { %v8510_v46 = vsub.f32 %v8414_v45, %v3787_v25  ;;  %v6359_v25 = vld [vmem:[#allocation5 + $0xa8] ss:$16 sps:$4 sm:$0xff]  }
 0xecd   : > { %v3758_v22 = vpop.xlane.xlu1 %3757  ;;  %v3760_v38 = vpop.xlane.xlu0 %3759  ;;  %4315 = vmatpush1.bf16.msra.mxu1 %v6359_v25  ;;  %v6380_v25 = vld [vmem:[#allocation5 + $0x20] ss:$16 sps:$4 sm:$0xff]  }
 0xece   : > { %v3788_v34 = vmul.f32 0.0078125, %v3758_v22  ;;  %v3789_v7 = vmul.f32 0.0078125, %v3760_v38  ;;  %v3819_v59 = vmul.f32 %v8510_v46, %v8510_v46 }
 0xed0   : > { %v8515_v21 = vsub.f32 %v8427_v44, %v3788_v34  ;;  %v8518_v29 = vsub.f32 %v8424_v10, %v3789_v7  ;;  %3835 = vadd.xlane.f32.xlu0 %v3819_v59 }
 0xed1   : > { %v3762_v5 = vpop.xlane.xlu1 %3761  ;;  %v3764_v18 = vpop.xlane.xlu0 %3763 }
 0xed2   : > { %v3790_v33 = vmul.f32 0.0078125, %v3762_v5  ;;  %v3791_v2 = vmul.f32 0.0078125, %v3764_v18  ;;  %v3820_v42 = vmul.f32 %v8515_v21, %v8515_v21  ;;  %v3821_v20 = vmul.f32 %v8518_v29, %v8518_v29  ;;  %v6364_v18 = vld [vmem:[#allocation5 + $0x84] ss:$16 sps:$4 sm:$0xff]  }
 0xed3   : > { %4203 = vmatprep.subr.bf16.mxu0 %v6364_v18  ;;  %v6392_v18 = vld [vmem:[#allocation7 + $0x78] sm:$0xff]  }
 0xed4   : > { %v8525_v24 = vsub.f32 %v8436_v52, %v3790_v33  ;;  %v8528_v35 = vsub.f32 %v8439_v8, %v3791_v2  ;;  %3837 = vadd.xlane.f32.xlu1 %v3820_v42  ;;  %3839 = vadd.xlane.f32.xlu0 %v3821_v20  ;;  %v6367_v33 = vld [vmem:[#allocation5 + $0x8c] ss:$16 sps:$4 sm:$0xff]   ;;  %v6362_v20 = vld [vmem:[#allocation5 + $0x80] ss:$16 sps:$4 sm:$0xff]  }
 0xed5   : > { %v3766_v4 = vpop.xlane.xlu1 %3765  ;;  %v3768_v43 = vpop.xlane.xlu0 %3767  ;;  %4316 = vmatprep.subr.bf16.mxu1 %v6367_v33  ;;  %4204 = vmatpush1.bf16.msra.mxu0 %v6362_v20  ;;  %v6394_v33 = vld [vmem:[#allocation7 + $0xf8] sm:$0xff]  }
 0xed6   : > { %v3792_v28 = vmul.f32 0.0078125, %v3766_v4  ;;  %v3793_v31 = vmul.f32 0.0078125, %v3768_v43  ;;  %v3822_v62 = vmul.f32 %v8525_v24, %v8525_v24  ;;  %v3823_v47 = vmul.f32 %v8528_v35, %v8528_v35  ;;  %v6365_v4 = vld [vmem:[#allocation5 + $0x88] ss:$16 sps:$4 sm:$0xff]  }
 0xed7   : > { %4317 = vmatpush1.bf16.msra.mxu1 %v6365_v4 }
 0xed8   : > { %v8535_v30 = vsub.f32 %v8453_v63, %v3792_v28  ;;  %v8538_v19 = vsub.f32 %v8447_v56, %v3793_v31  ;;  %3841 = vadd.xlane.f32.xlu1 %v3822_v62  ;;  %3843 = vadd.xlane.f32.xlu0 %v3823_v47 }
 0xed9   : > { %v3770_v37 = vpop.xlane.xlu1 %3769  ;;  %v3772_v58 = vpop.xlane.xlu0 %3771 }
 0xeda   : > { %v3794_v6 = vmul.f32 0.0078125, %v3770_v37  ;;  %v3795_v39 = vmul.f32 0.0078125, %v3772_v58  ;;  %v3824_v51 = vmul.f32 %v8535_v30, %v8535_v30  ;;  %v3825_v26 = vmul.f32 %v8538_v19, %v8538_v19  ;;  %v6370_v58 = vld [vmem:[#allocation5 + $0x64] ss:$16 sps:$4 sm:$0xff]  }
 0xedb   : > { %4205 = vmatprep.subr.bf16.mxu0 %v6370_v58 }
 0xedc   : > { %v8545_v32 = vsub.f32 %v8462_v40, %v3794_v6  ;;  %v8548_v53 = vsub.f32 %v8465_v23, %v3795_v39  ;;  %3845 = vadd.xlane.f32.xlu1 %v3824_v51  ;;  %3847 = vadd.xlane.f32.xlu0 %v3825_v26  ;;  %v6373_v6 = vld [vmem:[#allocation5 + $0x6c] ss:$16 sps:$4 sm:$0xff]   ;;  %v6368_v26 = vld [vmem:[#allocation5 + $0x60] ss:$16 sps:$4 sm:$0xff]  }
 0xedd   : > { %v3774_v57 = vpop.xlane.xlu1 %3773  ;;  %v3776_v41 = vpop.xlane.xlu0 %3775  ;;  %4318 = vmatprep.subr.bf16.mxu1 %v6373_v6  ;;  %4206 = vmatpush1.bf16.msra.mxu0 %v6368_v26 }
 0xede   : > { %v3796_v16 = vmul.f32 0.0078125, %v3774_v57  ;;  %v3797_v61 = vmul.f32 0.0078125, %v3776_v41  ;;  %v3826_v27 = vmul.f32 %v8545_v32, %v8545_v32  ;;  %v3827_v55 = vmul.f32 %v8548_v53, %v8548_v53  ;;  %4319 = vmatpush1.bf16.msra.mxu1 %v6371_v60  ;;  %v6376_v41 = vld [vmem:[#allocation5 + $0x44] ss:$16 sps:$4 sm:$0xff]  }
 0xedf   : > { %4207 = vmatprep.subr.bf16.mxu0 %v6376_v41 }
 0xee0   : > { %v8555_v12 = vsub.f32 %v8479_v17, %v3796_v16  ;;  %v8558_v36 = vsub.f32 %v8476_v13, %v3797_v61  ;;  %3849 = vadd.xlane.f32.xlu1 %v3826_v27  ;;  %3851 = vadd.xlane.f32.xlu0 %v3827_v55  ;;  %v6379_v16 = vld [vmem:[#allocation5 + $0x4c] ss:$16 sps:$4 sm:$0xff]   ;;  %v6374_v27 = vld [vmem:[#allocation5 + $0x40] ss:$16 sps:$4 sm:$0xff]   ;;  %v6377_v55 = vld [vmem:[#allocation5 + $0x48] ss:$16 sps:$4 sm:$0xff]  }
 0xee1   : > { %v3778_v22 = vpop.xlane.xlu1 %3777  ;;  %v3780_v38 = vpop.xlane.xlu0 %3779  ;;  %4320 = vmatprep.subr.bf16.mxu1 %v6379_v16  ;;  %4208 = vmatpush1.bf16.msra.mxu0 %v6374_v27 }
 0xee2   : > { %v3798_v34 = vmul.f32 0.0078125, %v3778_v22  ;;  %v3799_v7 = vmul.f32 0.0078125, %v3780_v38  ;;  %v3828_v59 = vmul.f32 %v8555_v12, %v8555_v12  ;;  %v3829_v5 = vmul.f32 %v8558_v36, %v8558_v36  ;;  %4321 = vmatpush1.bf16.msra.mxu1 %v6377_v55  ;;  %v6383_v22 = vld [vmem:[#allocation5 + $0x28] ss:$16 sps:$4 sm:$0xff]   ;;  %4209 = vmatprep.subr.bf16.mxu0 %v6382_v14  ;;  %v6388_v38 = vld [vmem:[#allocation5 + $0x4] ss:$16 sps:$4 sm:$0xff]  }
 0xee3   : > { %4322 = vmatprep.subr.bf16.mxu1 %v6385_v0 }
 0xee4   : > { %v8565_v2 = vsub.f32 %v8486_v49, %v3798_v34  ;;  %v8568_v42 = vsub.f32 %v8491_v48, %v3799_v7  ;;  %3853 = vadd.xlane.f32.xlu1 %v3828_v59  ;;  %3855 = vadd.xlane.f32.xlu0 %v3829_v5  ;;  %v6391_v34 = vld [vmem:[#allocation5 + $0xc] ss:$16 sps:$4 sm:$0xff]   ;;  %v6386_v7 = vld [vmem:[#allocation5] ss:$16 sps:$4 sm:$0xff]   ;;  %v6389_v59 = vld [vmem:[#allocation5 + $0x8] ss:$16 sps:$4 sm:$0xff]  }
 0xee5   : > { %v3782_v43 = vpop.xlane.xlu1 %3781  ;;  %v3784_v28 = vpop.xlane.xlu0 %3783  ;;  %4210 = vmatpush1.bf16.msra.mxu0 %v6380_v25  ;;  %v6933_v5 = vmov 0  }
 0xee6   : > { %v3800_v31 = vmul.f32 0.0078125, %v3782_v43  ;;  %v3801_v62 = vmul.f32 0.0078125, %v3784_v28  ;;  %v3830_v47 = vmul.f32 %v8565_v2, %v8565_v2  ;;  %v3831_v37 = vmul.f32 %v8568_v42, %v8568_v42  ;;  %4323 = vmatpush1.bf16.msra.mxu1 %v6383_v22  ;;  %4211 = vmatprep.subr.bf16.mxu0 %v6388_v38  ;;  %v8595_v22 = vld [vmem:[%s8854_s7] ss:$0 sm:$0xff] }
 0xee7   : > { %4324 = vmatprep.subr.bf16.mxu1 %v6391_v34  ;;  %4229 = vmatprep.mubr.bf16.mxu0 %v6933_v5 }
 0xee8   : > { %v8575_v39 = vsub.f32 %v8498_v11, %v3800_v31  ;;  %v8578_v51 = vsub.f32 %v8501_v1, %v3801_v62  ;;  %3857 = vadd.xlane.f32.xlu1 %v3830_v47  ;;  %3859 = vadd.xlane.f32.xlu0 %v3831_v37 }
 0xee9   : > { %v3786_v50 = vpop.xlane.xlu1 %3785  ;;  %4212 = vmatpush1.bf16.msra.mxu0 %v6386_v7  ;;  %4342 = vmatprep.mubr.bf16.mxu1 %v6933_v5 }
 0xeea   : > { %v3802_v54 = vmul.f32 0.0078125, %v3786_v50  ;;  %v3832_v15 = vmul.f32 %v8575_v39, %v8575_v39  ;;  %v3833_v57 = vmul.f32 %v8578_v51, %v8578_v51  ;;  %4325 = vmatpush1.bf16.msra.mxu1 %v6389_v59  ;;  %5601 = vmatprep.subr.bf16.mxu0 %v6392_v18 }
 0xeeb   : > { %5665 = vmatprep.subr.bf16.mxu1 %v6394_v33 }
 0xeec   : > { %v8585_v61 = vsub.f32 %v8506_v3, %v3802_v54  ;;  %3861 = vadd.xlane.f32.xlu1 %v3832_v15  ;;  %3863 = vadd.xlane.f32.xlu0 %v3833_v57 }
 0xeee   : > { %v3834_v9 = vmul.f32 %v8585_v61, %v8585_v61 }
 0xef0   : > { %3865 = vadd.xlane.f32.xlu1 %v3834_v9 }
 0xf59   : > { %v3836_v20 = vpop.xlane.xlu0 %3835 }
 0xf5a   : > { %v3867_v4 = vmul.f32 0.0078125, %v3836_v20 }
 0xf5c   : > { %v3883_v43 = vadd.f32 1e-05, %v3867_v4 }
 0xf5d   : > { %v3838_v28 = vpop.xlane.xlu1 %3837  ;;  %v3840_v31 = vpop.xlane.xlu0 %3839 }
 0xf5e   : > { %6712 = vrsqrt.f32 %v3883_v43  ;;  %v3868_v62 = vmul.f32 0.0078125, %v3838_v28  ;;  %v3869_v47 = vmul.f32 0.0078125, %v3840_v31 }
 0xf60   : > { %v3884_v37 = vadd.f32 1e-05, %v3868_v62  ;;  %v3885_v58 = vadd.f32 1e-05, %v3869_v47 }
 0xf61   : > { %v3842_v6 = vpop.xlane.xlu1 %3841  ;;  %v3844_v26 = vpop.xlane.xlu0 %3843 }
 0xf62   : > { %6714 = vrsqrt.f32 %v3884_v37  ;;  %v3870_v60 = vmul.f32 0.0078125, %v3842_v6  ;;  %v3871_v54 = vmul.f32 0.0078125, %v3844_v26 }
 0xf63   : > { %6716 = vrsqrt.f32 %v3885_v58 }
 0xf64   : > { %v3886_v50 = vadd.f32 1e-05, %v3870_v60  ;;  %v3887_v41 = vadd.f32 1e-05, %v3871_v54  ;;  %v6393_v60 = vld [vmem:[#allocation7 + $0x38] sm:$0xff]  }
 0xf65   : > { %v3846_v15 = vpop.xlane.xlu1 %3845  ;;  %v3848_v27 = vpop.xlane.xlu0 %3847 }
 0xf66   : > { %6718 = vrsqrt.f32 %v3886_v50  ;;  %v3872_v57 = vmul.f32 0.0078125, %v3846_v15  ;;  %v3873_v0 = vmul.f32 0.0078125, %v3848_v27  ;;  %v6395_v50 = vld [vmem:[#allocation7 + $0xb8] sm:$0xff]  }
 0xf68   : > { %v3888_v16 = vadd.f32 1e-05, %v3872_v57  ;;  %v3889_v7 = vadd.f32 1e-05, %v3873_v0 }
 0xf69   : > { %v3850_v55 = vpop.xlane.xlu1 %3849  ;;  %v3852_v20 = vpop.xlane.xlu0 %3851 }
 0xf6a   : > { %6720 = vrsqrt.f32 %v3888_v16  ;;  %v3874_v9 = vmul.f32 0.0078125, %v3850_v55  ;;  %v3875_v62 = vmul.f32 0.0078125, %v3852_v20  ;;  %v6398_v16 = vld [vmem:[#allocation7 + $0xf0] sm:$0xff]  }
 0xf6b   : > { %v6713_v14 = vpop.eup %6712  ;;  %6722 = vrsqrt.f32 %v3887_v41  ;;  %v6396_v41 = vld [vmem:[#allocation7 + $0x70] sm:$0xff]  }
 0xf6c   : > { %v3915_v25 = vmul.f32 %v6713_v14, %v8510_v46  ;;  %v3890_v38 = vadd.f32 1e-05, %v3874_v9  ;;  %v8602_v46 = vld [vmem:[%s8855_s8] ss:$0 sm:$0xff]  ;;  %v3891_v27 = vadd.f32 1e-05, %v3875_v62 }
 0xf6d   : > { %v3854_v59 = vpop.xlane.xlu1 %3853  ;;  %v3856_v14 = vpop.xlane.xlu0 %3855 }
 0xf6e   : > { %v3937_v18 = vmul.f32 %v8595_v22, %v3915_v25  ;;  %6724 = vrsqrt.f32 %v3890_v38  ;;  %v3876_v28 = vmul.f32 0.0078125, %v3854_v59  ;;  %v6397_v25 = vld [vmem:[#allocation7 + $0x30] sm:$0xff]   ;;  %v3877_v59 = vmul.f32 0.0078125, %v3856_v14 }
 0xf6f   : > { %v6715_v34 = vpop.eup %6714  ;;  %6726 = vrsqrt.f32 %v3889_v7  ;;  %v6399_v38 = vld [vmem:[#allocation7 + $0xb0] sm:$0xff]   ;;  %v6402_v7 = vld [vmem:[#allocation7 + $0xe8] sm:$0xff]  }
 0xf70   : > { %v3916_v33 = vmul.f32 %v6715_v34, %v8515_v21  ;;  %v6717_v4 = vpop.eup %6716  ;;  %v3959_v47 = vadd.f32 %v8602_v46, %v3937_v18  ;;  %v3892_v6 = vadd.f32 1e-05, %v3876_v28  ;;  %v6400_v34 = vld [vmem:[#allocation7 + $0x68] sm:$0xff]  }
 0xf71   : > { %v3917_v21 = vmul.f32 %v6717_v4, %v8518_v29  ;;  %v3858_v15 = vpop.xlane.xlu1 %3857  ;;  %v6403_v28 = vld [vmem:[#allocation7 + $0xa8] sm:$0xff]  }
 0xf72   : > { %v3938_v43 = vmul.f32 %v8595_v22, %v3916_v33  ;;  %6728 = vrsqrt.f32 %v3892_v6  ;;  %v3878_v29 = vmul.f32 0.0078125, %v3858_v15  ;;  %v3860_v6 = vpop.xlane.xlu0 %3859  ;;  %v6407_v15 = vld [vmem:[#allocation7 + $0xa0] sm:$0xff]  }
 0xf73   : > { %v6719_v31 = vpop.eup %6718  ;;  %v3939_v55 = vmul.f32 %v8595_v22, %v3917_v21  ;;  %6730 = vrsqrt.f32 %v3891_v27 }
 0xf74   : > { %v3960_v37 = vadd.f32 %v8602_v46, %v3938_v43  ;;  %v3918_v58 = vmul.f32 %v6719_v31, %v8525_v24  ;;  %v3894_v20 = vadd.f32 1e-05, %v3878_v29 }
 0xf75   : > { %v3961_v18 = vadd.f32 %v8602_v46, %v3939_v55  ;;  %v3862_v62 = vpop.xlane.xlu1 %3861 }
 0xf76   : > { %v3975_v26 = vpack.c.bf16 %v3960_v37, %v3959_v47  ;;  %v3940_v57 = vmul.f32 %v8595_v22, %v3918_v58  ;;  %v6404_v47 = vld [vmem:[#allocation7 + $0x60] sm:$0xff]   ;;  %v3893_v58 = vadd.f32 1e-05, %v3877_v59  ;;  %6732 = vrsqrt.f32 %v3894_v20 }
 0xf77   : > { %v6721_v54 = vpop.eup %6720  ;;  %v6406_v37 = vld [vmem:[#allocation7 + $0xe0] sm:$0xff]  }
 0xf78   : > { %4230 = vmatmul.mubr.bf16.vlgmr.msra.gmra.mxu0 %v3975_v26  ;;  %4343 = vmatmul.mubr.bf16.vlgmr.msra.gmra.mxu1 %v3975_v26  ;;  %v6723_v9 = vpop.eup %6722  ;;  %v3962_v24 = vadd.f32 %v8602_v46, %v3940_v57  ;;  %v3920_v0 = vmul.f32 %v6721_v54, %v8535_v30  ;;  %v6401_v30 = vld [vmem:[#allocation7 + $0x28] sm:$0xff]   ;;  %v3880_v26 = vmul.f32 0.0078125, %v3862_v62  ;;  %v6405_v54 = vld [vmem:[#allocation7 + $0x20] sm:$0xff]   ;;  %v6408_v57 = vld [vmem:[#allocation7 + $0x58] sm:$0xff]   ;;  %6734 = vrsqrt.f32 %v3893_v58 }
 0xf79   : > { %4239 = vmatprep.mubr.bf16.mxu0 %v6933_v5  ;;  %4352 = vmatprep.mubr.bf16.mxu1 %v6933_v5  ;;  %v3919_v33 = vmul.f32 %v6723_v9, %v8528_v35 }
 0xf7a   : > { %5602 = vmatpush3.bf16.msra.mxu0 %v6393_v60  ;;  %5666 = vmatpush3.bf16.msra.mxu1 %v6395_v50  ;;  %v3976_v4 = vpack.c.bf16 %v3962_v24, %v3961_v18  ;;  %v3942_v43 = vmul.f32 %v8595_v22, %v3920_v0  ;;  %v3896_v9 = vadd.f32 1e-05, %v3880_v26  ;;  %v6411_v24 = vld [vmem:[#allocation7 + $0x98] sm:$0xff]   ;;  %v3864_v18 = vpop.xlane.xlu0 %3863 }
 0xf7b   : > { %5603 = vmatprep.subr.bf16.mxu0 %v6396_v41  ;;  %5667 = vmatprep.subr.bf16.mxu1 %v6398_v16  ;;  %v6725_v31 = vpop.eup %6724  ;;  %v3941_v35 = vmul.f32 %v8595_v22, %v3919_v33  ;;  %v6410_v41 = vld [vmem:[#allocation7 + $0xd8] sm:$0xff]   ;;  %v3879_v16 = vmul.f32 0.0078125, %v3860_v6  ;;  %v3881_v62 = vmul.f32 0.0078125, %v3864_v18 }
 0xf7c   : > { %v6727_v21 = vpop.eup %6726  ;;  %v3964_v60 = vadd.f32 %v8602_v46, %v3942_v43  ;;  %v3922_v50 = vmul.f32 %v6725_v31, %v8545_v32  ;;  %v6409_v32 = vld [vmem:[#allocation7 + $0x18] sm:$0xff]   ;;  %6736 = vrsqrt.f32 %v3896_v9  ;;  %v6413_v43 = vld [vmem:[#allocation7 + $0x10] sm:$0xff]   ;;  %v6418_v31 = vld [vmem:[#allocation7 + $0xc8] sm:$0xff]  }
 0xf7d   : > { %v3963_v27 = vadd.f32 %v8602_v46, %v3941_v35  ;;  %v3921_v55 = vmul.f32 %v6727_v21, %v8538_v19  ;;  %v3897_v26 = vadd.f32 1e-05, %v3881_v62 }
 0xf7e   : > { %5604 = vmatpush3.bf16.msra.mxu0 %v6397_v25  ;;  %5668 = vmatpush3.bf16.msra.mxu1 %v6399_v38  ;;  %v3944_v29 = vmul.f32 %v8595_v22, %v3922_v50  ;;  %v3866_v25 = vpop.xlane.xlu1 %3865  ;;  %v6412_v38 = vld [vmem:[#allocation7 + $0x50] sm:$0xff]  }
 0xf7f   : > { %5605 = vmatprep.subr.bf16.mxu0 %v6400_v34  ;;  %5669 = vmatprep.subr.bf16.mxu1 %v6402_v7  ;;  %v3977_v14 = vpack.c.bf16 %v3964_v60, %v3963_v27  ;;  %v6729_v0 = vpop.eup %6728  ;;  %v6414_v34 = vld [vmem:[#allocation7 + $0xd0] sm:$0xff]   ;;  %v3895_v7 = vadd.f32 1e-05, %v3879_v16  ;;  %v3943_v59 = vmul.f32 %v8595_v22, %v3921_v55  ;;  %v3882_v33 = vmul.f32 0.0078125, %v3866_v25 }
 0xf80   : > { %4240 = vmatmul.mubr.bf16.gmra.mxu0 %v3976_v4  ;;  %4353 = vmatmul.mubr.bf16.gmra.mxu1 %v3976_v4  ;;  %v6731_v19 = vpop.eup %6730  ;;  %v3966_v20 = vadd.f32 %v8602_v46, %v3944_v29  ;;  %v3924_v4 = vmul.f32 %v6729_v0, %v8555_v12  ;;  %v6417_v12 = vld [vmem:[#allocation7 + $0x8] sm:$0xff]  }
 0xf81   : > { %4249 = vmatprep.mubr.bf16.mxu0 %v6933_v5  ;;  %4362 = vmatprep.mubr.bf16.mxu1 %v6933_v5  ;;  %6738 = vrsqrt.f32 %v3895_v7  ;;  %v3898_v21 = vadd.f32 1e-05, %v3882_v33 }
 0xf82   : > { %5606 = vmatpush3.bf16.msra.mxu0 %v6401_v30  ;;  %5670 = vmatpush3.bf16.msra.mxu1 %v6403_v28  ;;  %v6415_v30 = vld [vmem:[#allocation7 + $0x90] sm:$0xff]   ;;  %v6416_v28 = vld [vmem:[#allocation7 + $0x48] sm:$0xff]   ;;  %v3946_v35 = vmul.f32 %v8595_v22, %v3924_v4 }
 0xf83   : > { %5607 = vmatprep.subr.bf16.mxu0 %v6404_v47  ;;  %5671 = vmatprep.subr.bf16.mxu1 %v6406_v37  ;;  %v3965_v47 = vadd.f32 %v8602_v46, %v3943_v59  ;;  %v3923_v37 = vmul.f32 %v6731_v19, %v8548_v53  ;;  %v6733_v6 = vpop.eup %6732  ;;  %6740 = vrsqrt.f32 %v3898_v21  ;;  %v6419_v4 = vld [vmem:[#allocation7 + $0x88] sm:$0xff]  }
 0xf84   : > { %v3968_v53 = vadd.f32 %v8602_v46, %v3946_v35  ;;  %6742 = vrsqrt.f32 %v3897_v26 }
 0xf85   : > { %v3978_v58 = vpack.c.bf16 %v3966_v20, %v3965_v47  ;;  %v3945_v60 = vmul.f32 %v8595_v22, %v3923_v37  ;;  %v6735_v50 = vpop.eup %6734 }
 0xf86   : > { %5608 = vmatpush3.bf16.msra.mxu0 %v6405_v54  ;;  %5672 = vmatpush3.bf16.msra.mxu1 %v6407_v15  ;;  %v3926_v54 = vmul.f32 %v6733_v6, %v8565_v2 }
 0xf87   : > { %5609 = vmatprep.subr.bf16.mxu0 %v6408_v57  ;;  %5673 = vmatprep.subr.bf16.mxu1 %v6410_v41  ;;  %v3967_v15 = vadd.f32 %v8602_v46, %v3945_v60  ;;  %v3925_v57 = vmul.f32 %v6735_v50, %v8558_v36 }
 0xf88   : > { %4250 = vmatmul.mubr.bf16.gmra.mxu0 %v3977_v14  ;;  %4363 = vmatmul.mubr.bf16.gmra.mxu1 %v3977_v14  ;;  %v3948_v16 = vmul.f32 %v8595_v22, %v3926_v54 }
 0xf89   : > { %4259 = vmatprep.mubr.bf16.mxu0 %v6933_v5  ;;  %4372 = vmatprep.mubr.bf16.mxu1 %v6933_v5  ;;  %v3979_v41 = vpack.c.bf16 %v3968_v53, %v3967_v15  ;;  %v6737_v27 = vpop.eup %6736  ;;  %v3947_v55 = vmul.f32 %v8595_v22, %v3925_v57 }
 0xf8a   : > { %5610 = vmatpush3.bf16.msra.mxu0 %v6409_v32  ;;  %5674 = vmatpush3.bf16.msra.mxu1 %v6411_v24  ;;  %v3970_v2 = vadd.f32 %v8602_v46, %v3948_v16  ;;  %v3928_v14 = vmul.f32 %v6737_v27, %v8575_v39 }
 0xf8b   : > { %5611 = vmatprep.subr.bf16.mxu0 %v6412_v38  ;;  %5675 = vmatprep.subr.bf16.mxu1 %v6414_v34  ;;  %v3969_v29 = vadd.f32 %v8602_v46, %v3947_v55 }
 0xf8c   : > { %v3950_v24 = vmul.f32 %v8595_v22, %v3928_v14 }
 0xf8d   : > { %v3980_v32 = vpack.c.bf16 %v3970_v2, %v3969_v29 }
 0xf8e   : > { %5612 = vmatpush3.bf16.msra.mxu0 %v6413_v43  ;;  %5676 = vmatpush3.bf16.msra.mxu1 %v6415_v30  ;;  %v6739_v9 = vpop.eup %6738  ;;  %v3972_v34 = vadd.f32 %v8602_v46, %v3950_v24  ;;  %v6422_v43 = vld [vmem:[#allocation7 + $0xc0] sm:$0xff]  }
 0xf8f   : > { %5613 = vmatprep.subr.bf16.mxu0 %v6416_v28  ;;  %5677 = vmatprep.subr.bf16.mxu1 %v6418_v31  ;;  %v3927_v36 = vmul.f32 %v6739_v9, %v8568_v42  ;;  %v6421_v30 = vld [vmem:[#allocation7] sm:$0xff]  }
 0xf90   : > { %4260 = vmatmul.mubr.bf16.gmra.mxu0 %v3978_v58  ;;  %4373 = vmatmul.mubr.bf16.gmra.mxu1 %v3978_v58  ;;  %v6741_v0 = vpop.eup %6740  ;;  %v6423_v28 = vld [vmem:[#allocation7 + $0x80] sm:$0xff]  }
 0xf91   : > { %4269 = vmatprep.mubr.bf16.mxu0 %v6933_v5  ;;  %4382 = vmatprep.mubr.bf16.mxu1 %v6933_v5  ;;  %v3949_v25 = vmul.f32 %v8595_v22, %v3927_v36  ;;  %v6743_v38 = vpop.eup %6742  ;;  %v3930_v39 = vmul.f32 %v6741_v0, %v8585_v61 }
 0xf92   : > { %5614 = vmatpush3.bf16.msra.mxu0 %v6417_v12  ;;  %v3929_v42 = vmul.f32 %v6743_v38, %v8578_v51  ;;  %5678 = vmatpush3.bf16.msra.mxu1 %v6419_v4  ;;  %v6420_v51 = vld [vmem:[#allocation7 + $0x40] sm:$0xff]  }
 0xf93   : > { %v3971_v7 = vadd.f32 %v8602_v46, %v3949_v25  ;;  %v3952_v19 = vmul.f32 %v8595_v22, %v3930_v39  ;;  %5615 = vmatprep.subr.bf16.mxu0 %v6420_v51  ;;  %5679 = vmatprep.subr.bf16.mxu1 %v6422_v43 }
 0xf94   : > { %v3951_v18 = vmul.f32 %v8595_v22, %v3929_v42  ;;  %v4017_v22 = vlaneseq }
 0xf95   : > { %v3981_v59 = vpack.c.bf16 %v3972_v34, %v3971_v7  ;;  %v3974_v33 = vadd.f32 %v8602_v46, %v3952_v19 }
 0xf96   : > { %v3973_v20 = vadd.f32 %v8602_v46, %v3951_v18  ;;  %5616 = vmatpush3.bf16.msra.mxu0 %v6421_v30  ;;  %5680 = vmatpush3.bf16.msra.mxu1 %v6423_v28  ;;  %v4018_v31 = vshrl.u32 %v4017_v22, 7  ;;  %v4015_v46 = vld [vmem:[%s8857_s10] sm:$0xf] }
 0xf98   : > { %4270 = vmatmul.mubr.bf16.gmra.mxu0 %v3979_v41  ;;  %4383 = vmatmul.mubr.bf16.gmra.mxu1 %v3979_v41  ;;  %v3982_v61 = vpack.c.bf16 %v3974_v33, %v3973_v20  ;;  %v4031_v62 = vsub.s32 3, %v4018_v31  ;;  %v4019_v47 = vsub.s32 0, %v4018_v31  ;;  %v4027_v37 = vsub.s32 2, %v4018_v31 }
 0xf99   : > { %4279 = vmatprep.mubr.bf16.mxu0 %v6933_v5  ;;  %4392 = vmatprep.mubr.bf16.mxu1 %v6933_v5 }
 0xf9a   : > { %v8668_v12 = vrot.slane %v4015_v46, %v4031_v62  ;;  %v8670_v6 = vrot.slane %v4015_v46, %v4019_v47  ;;  %v8672_v26 = vrot.slane %v4015_v46, %v4027_v37 }
 0xfa0   : > { %4280 = vmatmul.mubr.bf16.gmra.mxu0 %v3980_v32  ;;  %4393 = vmatmul.mubr.bf16.gmra.mxu1 %v3980_v32 }
 0xfa1   : > { %4289 = vmatprep.mubr.bf16.mxu0 %v6933_v5  ;;  %4402 = vmatprep.mubr.bf16.mxu1 %v6933_v5 }
 0xfa8   : > { %4290 = vmatmul.mubr.bf16.gmra.mxu0 %v3981_v59  ;;  %4403 = vmatmul.mubr.bf16.gmra.mxu1 %v3981_v59 }
 0xfa9   : > { %4299 = vmatprep.mubr.bf16.mxu0 %v6933_v5  ;;  %4412 = vmatprep.mubr.bf16.mxu1 %v6933_v5  ;;  %v4023_v5 = vsub.s32 1, %v4018_v31 }
 0xfab   : > { %v8666_v35 = vrot.slane %v4015_v46, %v4023_v5 }
 0xfb0   : > { %4300 = vmatmul.mubr.bf16.gmra.mxu0 %v3982_v61  ;;  %4413 = vmatmul.mubr.bf16.gmra.mxu1 %v3982_v61 }
0x1038   : > { %v4231_v21 = vpop.f32.mrf.mxu0  ;;  %v4344_v58 = vpop.f32.mrf.mxu1 }
0x1039   : > { %v4232_v27 = vadd.f32 %v4231_v21, %v8670_v6  ;;  %v4345_v55 = vadd.f32 %v4344_v58, %v8672_v26 }
0x103a   : > { %v4233_v60 = vpop.f32.mrf.mxu0  ;;  %v4346_v50 = vpop.f32.mrf.mxu1 }
0x103b   : > { %v4234_v15 = vadd.f32 %v4233_v60, %v8666_v35  ;;  %v4347_v57 = vadd.f32 %v4346_v50, %v8668_v12  ;;  %v4423_v7 = vmax.f32 %v4232_v27, 0.0  ;;  %v4425_v42 = vmax.f32 %v4345_v55, 0.0 }
0x103c   : > { %v4235_v53 = vpop.f32.mrf.mxu0  ;;  %v4348_v54 = vpop.f32.mrf.mxu1 }
0x103d   : > { %v4236_v41 = vadd.f32 %v4235_v53, %v8670_v6  ;;  %v4349_v16 = vadd.f32 %v4348_v54, %v8672_v26  ;;  %v4424_v25 = vmax.f32 %v4234_v15, 0.0  ;;  %v4426_v38 = vmax.f32 %v4347_v57, 0.0 }
0x103e   : > { %v4237_v9 = vpop.f32.mrf.mxu0  ;;  %v4350_v2 = vpop.f32.mrf.mxu1 }
0x103f   : > { %v4238_v14 = vadd.f32 %v4237_v9, %v8666_v35  ;;  %v4351_v29 = vadd.f32 %v4350_v2, %v8668_v12  ;;  %v4427_v36 = vmax.f32 %v4236_v41, 0.0  ;;  %v4429_v32 = vmax.f32 %v4349_v16, 0.0 }
0x1040   : > { %v4241_v24 = vpop.f32.mrf.mxu0  ;;  %v4354_v0 = vpop.f32.mrf.mxu1 }
0x1041   : > { %v4428_v34 = vmax.f32 %v4238_v14, 0.0  ;;  %v4430_v39 = vmax.f32 %v4351_v29, 0.0  ;;  %v4487_v20 = vpack.c.bf16 %v4427_v36, %v4423_v7  ;;  %v4489_v61 = vpack.c.bf16 %v4429_v32, %v4425_v42 }
0x1042   : > { %v4243_v59 = vpop.f32.mrf.mxu0  ;;  %v4356_v19 = vpop.f32.mrf.mxu1  ;;  %v4242_v31 = vadd.f32 %v4241_v24, %v8670_v6  ;;  %v4355_v5 = vadd.f32 %v4354_v0, %v8672_v26 }
0x1043   : > { %v4488_v18 = vpack.c.bf16 %v4428_v34, %v4424_v25  ;;  %v4490_v33 = vpack.c.bf16 %v4430_v39, %v4426_v38  ;;  %v4244_v4 = vadd.f32 %v4243_v59, %v8666_v35  ;;  %v4357_v30 = vadd.f32 %v4356_v19, %v8668_v12 }
0x1044   : > { %v4245_v51 = vpop.f32.mrf.mxu0  ;;  %v4358_v43 = vpop.f32.mrf.mxu1  ;;  %v4431_v41 = vmax.f32 %v4242_v31, 0.0  ;;  %v4433_v16 = vmax.f32 %v4355_v5, 0.0 }
0x1045   : > { %v4246_v28 = vadd.f32 %v4245_v51, %v8670_v6  ;;  %v4359_v22 = vadd.f32 %v4358_v43, %v8672_v26  ;;  %4814 = vmatprep.mubr.bf16.mxu0 %v4488_v18  ;;  %4911 = vmatprep.mubr.bf16.mxu1 %v4490_v33  ;;  %v4432_v53 = vmax.f32 %v4244_v4, 0.0  ;;  %v4434_v54 = vmax.f32 %v4357_v30, 0.0 }
0x1046   : > { %v4247_v62 = vpop.f32.mrf.mxu0  ;;  %v4360_v47 = vpop.f32.mrf.mxu1  ;;  %4815 = vmatmul.mubr.bf16.vlgmr.msra.gmra.mxu0 %v4487_v20  ;;  %4912 = vmatmul.mubr.bf16.vlgmr.msra.gmra.mxu1 %v4489_v61 }
0x1047   : > { %v4248_v37 = vadd.f32 %v4247_v62, %v8666_v35  ;;  %v4361_v46 = vadd.f32 %v4360_v47, %v8668_v12  ;;  %v4435_v21 = vmax.f32 %v4246_v28, 0.0  ;;  %v4437_v58 = vmax.f32 %v4359_v22, 0.0 }
0x1048   : > { %v4251_v60 = vpop.f32.mrf.mxu0  ;;  %v4364_v50 = vpop.f32.mrf.mxu1 }
0x1049   : > { %v4436_v15 = vmax.f32 %v4248_v37, 0.0  ;;  %v4438_v57 = vmax.f32 %v4361_v46, 0.0  ;;  %v4491_v14 = vpack.c.bf16 %v4435_v21, %v4431_v41  ;;  %v4493_v29 = vpack.c.bf16 %v4437_v58, %v4433_v16 }
0x104a   : > { %v4253_v27 = vpop.f32.mrf.mxu0  ;;  %v4366_v55 = vpop.f32.mrf.mxu1  ;;  %v4252_v34 = vadd.f32 %v4251_v60, %v8670_v6  ;;  %v4365_v39 = vadd.f32 %v4364_v50, %v8672_v26 }
0x104b   : > { %v4492_v9 = vpack.c.bf16 %v4436_v15, %v4432_v53  ;;  %v4494_v2 = vpack.c.bf16 %v4438_v57, %v4434_v54  ;;  %v4254_v36 = vadd.f32 %v4253_v27, %v8666_v35  ;;  %v4367_v0 = vadd.f32 %v4366_v55, %v8668_v12 }
0x104c   : > { %v4255_v32 = vpop.f32.mrf.mxu0  ;;  %v4368_v24 = vpop.f32.mrf.mxu1  ;;  %v4439_v28 = vmax.f32 %v4252_v34, 0.0  ;;  %v4441_v22 = vmax.f32 %v4365_v39, 0.0 }
0x104d   : > { %v4256_v25 = vadd.f32 %v4255_v32, %v8670_v6  ;;  %v4369_v38 = vadd.f32 %v4368_v24, %v8672_v26  ;;  %4822 = vmatprep.mubr.bf16.mxu0 %v4492_v9  ;;  %4919 = vmatprep.mubr.bf16.mxu1 %v4494_v2  ;;  %v4440_v4 = vmax.f32 %v4254_v36, 0.0  ;;  %v4442_v51 = vmax.f32 %v4367_v0, 0.0 }
0x104e   : > { %v4257_v7 = vpop.f32.mrf.mxu0  ;;  %v4370_v42 = vpop.f32.mrf.mxu1  ;;  %4823 = vmatmul.mubr.bf16.gmra.mxu0 %v4491_v14  ;;  %4920 = vmatmul.mubr.bf16.gmra.mxu1 %v4493_v29 }
0x104f   : > { %v4258_v59 = vadd.f32 %v4257_v7, %v8666_v35  ;;  %v4371_v19 = vadd.f32 %v4370_v42, %v8668_v12  ;;  %v4443_v18 = vmax.f32 %v4256_v25, 0.0  ;;  %v4445_v33 = vmax.f32 %v4369_v38, 0.0 }
0x1050   : > { %v4261_v20 = vpop.f32.mrf.mxu0  ;;  %v4374_v61 = vpop.f32.mrf.mxu1 }
0x1051   : > { %v4444_v43 = vmax.f32 %v4258_v59, 0.0  ;;  %v4446_v30 = vmax.f32 %v4371_v19, 0.0  ;;  %v4495_v37 = vpack.c.bf16 %v4443_v18, %v4439_v28  ;;  %v4497_v46 = vpack.c.bf16 %v4445_v33, %v4441_v22 }
0x1052   : > { %v4263_v31 = vpop.f32.mrf.mxu0  ;;  %v4376_v5 = vpop.f32.mrf.mxu1  ;;  %v4262_v15 = vadd.f32 %v4261_v20, %v8670_v6  ;;  %v4375_v57 = vadd.f32 %v4374_v61, %v8672_v26 }
0x1053   : > { %v4496_v62 = vpack.c.bf16 %v4444_v43, %v4440_v4  ;;  %v4498_v47 = vpack.c.bf16 %v4446_v30, %v4442_v51  ;;  %v4264_v21 = vadd.f32 %v4263_v31, %v8666_v35  ;;  %v4377_v50 = vadd.f32 %v4376_v5, %v8668_v12 }
0x1054   : > { %v4265_v58 = vpop.f32.mrf.mxu0  ;;  %v4378_v60 = vpop.f32.mrf.mxu1  ;;  %v4447_v25 = vmax.f32 %v4262_v15, 0.0  ;;  %v4449_v38 = vmax.f32 %v4375_v57, 0.0 }
0x1055   : > { %v4266_v53 = vadd.f32 %v4265_v58, %v8670_v6  ;;  %v4379_v54 = vadd.f32 %v4378_v60, %v8672_v26  ;;  %4830 = vmatprep.mubr.bf16.mxu0 %v4496_v62  ;;  %4927 = vmatprep.mubr.bf16.mxu1 %v4498_v47  ;;  %v4448_v36 = vmax.f32 %v4264_v21, 0.0  ;;  %v4450_v32 = vmax.f32 %v4377_v50, 0.0 }
0x1056   : > { %v4267_v41 = vpop.f32.mrf.mxu0  ;;  %v4380_v16 = vpop.f32.mrf.mxu1  ;;  %4831 = vmatmul.mubr.bf16.gmra.mxu0 %v4495_v37  ;;  %4928 = vmatmul.mubr.bf16.gmra.mxu1 %v4497_v46 }
0x1057   : > { %v4268_v27 = vadd.f32 %v4267_v41, %v8666_v35  ;;  %v4381_v55 = vadd.f32 %v4380_v16, %v8668_v12  ;;  %v4451_v9 = vmax.f32 %v4266_v53, 0.0  ;;  %v4453_v2 = vmax.f32 %v4379_v54, 0.0 }
0x1058   : > { %v4271_v14 = vpop.f32.mrf.mxu0  ;;  %v4384_v29 = vpop.f32.mrf.mxu1 }
0x1059   : > { %v4452_v24 = vmax.f32 %v4268_v27, 0.0  ;;  %v4454_v0 = vmax.f32 %v4381_v55, 0.0  ;;  %v4499_v59 = vpack.c.bf16 %v4451_v9, %v4447_v25  ;;  %v4501_v19 = vpack.c.bf16 %v4453_v2, %v4449_v38 }
0x105a   : > { %v4273_v34 = vpop.f32.mrf.mxu0  ;;  %v4386_v39 = vpop.f32.mrf.mxu1  ;;  %v4272_v43 = vadd.f32 %v4271_v14, %v8670_v6  ;;  %v4385_v30 = vadd.f32 %v4384_v29, %v8672_v26 }
0x105b   : > { %v4500_v7 = vpack.c.bf16 %v4452_v24, %v4448_v36  ;;  %v4502_v42 = vpack.c.bf16 %v4454_v0, %v4450_v32  ;;  %v4274_v18 = vadd.f32 %v4273_v34, %v8666_v35  ;;  %v4387_v61 = vadd.f32 %v4386_v39, %v8668_v12 }
0x105c   : > { %v4275_v33 = vpop.f32.mrf.mxu0  ;;  %v4388_v20 = vpop.f32.mrf.mxu1  ;;  %v4455_v53 = vmax.f32 %v4272_v43, 0.0  ;;  %v4457_v54 = vmax.f32 %v4385_v30, 0.0 }
0x105d   : > { %v4276_v4 = vadd.f32 %v4275_v33, %v8670_v6  ;;  %v4389_v51 = vadd.f32 %v4388_v20, %v8672_v26  ;;  %4838 = vmatprep.mubr.bf16.mxu0 %v4500_v7  ;;  %4935 = vmatprep.mubr.bf16.mxu1 %v4502_v42  ;;  %v4456_v21 = vmax.f32 %v4274_v18, 0.0  ;;  %v4458_v58 = vmax.f32 %v4387_v61, 0.0 }
0x105e   : > { %v4277_v28 = vpop.f32.mrf.mxu0  ;;  %v4390_v22 = vpop.f32.mrf.mxu1  ;;  %4839 = vmatmul.mubr.bf16.gmra.mxu0 %v4499_v59  ;;  %4936 = vmatmul.mubr.bf16.gmra.mxu1 %v4501_v19 }
0x105f   : > { %v4278_v31 = vadd.f32 %v4277_v28, %v8666_v35  ;;  %v4391_v5 = vadd.f32 %v4390_v22, %v8668_v12  ;;  %v4459_v62 = vmax.f32 %v4276_v4, 0.0  ;;  %v4461_v47 = vmax.f32 %v4389_v51, 0.0 }
0x1060   : > { %v4281_v37 = vpop.f32.mrf.mxu0  ;;  %v4394_v46 = vpop.f32.mrf.mxu1 }
0x1061   : > { %v4460_v60 = vmax.f32 %v4278_v31, 0.0  ;;  %v4462_v50 = vmax.f32 %v4391_v5, 0.0  ;;  %v4503_v27 = vpack.c.bf16 %v4459_v62, %v4455_v53  ;;  %v4505_v55 = vpack.c.bf16 %v4461_v47, %v4457_v54 }
0x1062   : > { %v4283_v15 = vpop.f32.mrf.mxu0  ;;  %v4396_v57 = vpop.f32.mrf.mxu1  ;;  %v4282_v24 = vadd.f32 %v4281_v37, %v8670_v6  ;;  %v4395_v0 = vadd.f32 %v4394_v46, %v8672_v26 }
0x1063   : > { %v4504_v41 = vpack.c.bf16 %v4460_v60, %v4456_v21  ;;  %v4506_v16 = vpack.c.bf16 %v4462_v50, %v4458_v58  ;;  %v4284_v9 = vadd.f32 %v4283_v15, %v8666_v35  ;;  %v4397_v29 = vadd.f32 %v4396_v57, %v8668_v12 }
0x1064   : > { %v4285_v2 = vpop.f32.mrf.mxu0  ;;  %v4398_v14 = vpop.f32.mrf.mxu1  ;;  %v4463_v4 = vmax.f32 %v4282_v24, 0.0  ;;  %v4465_v51 = vmax.f32 %v4395_v0, 0.0 }
0x1065   : > { %v4286_v36 = vadd.f32 %v4285_v2, %v8670_v6  ;;  %v4399_v32 = vadd.f32 %v4398_v14, %v8672_v26  ;;  %4846 = vmatprep.mubr.bf16.mxu0 %v4504_v41  ;;  %4943 = vmatprep.mubr.bf16.mxu1 %v4506_v16  ;;  %v4464_v18 = vmax.f32 %v4284_v9, 0.0  ;;  %v4466_v33 = vmax.f32 %v4397_v29, 0.0 }
0x1066   : > { %v4287_v25 = vpop.f32.mrf.mxu0  ;;  %v4400_v38 = vpop.f32.mrf.mxu1  ;;  %4847 = vmatmul.mubr.bf16.gmra.mxu0 %v4503_v27  ;;  %4944 = vmatmul.mubr.bf16.gmra.mxu1 %v4505_v55 }
0x1067   : > { %v4288_v34 = vadd.f32 %v4287_v25, %v8666_v35  ;;  %v4401_v39 = vadd.f32 %v4400_v38, %v8668_v12  ;;  %v4467_v7 = vmax.f32 %v4286_v36, 0.0  ;;  %v4469_v42 = vmax.f32 %v4399_v32, 0.0 }
0x1068   : > { %v4291_v59 = vpop.f32.mrf.mxu0  ;;  %v4404_v19 = vpop.f32.mrf.mxu1 }
0x1069   : > { %v4468_v20 = vmax.f32 %v4288_v34, 0.0  ;;  %v4470_v61 = vmax.f32 %v4401_v39, 0.0  ;;  %v4507_v31 = vpack.c.bf16 %v4467_v7, %v4463_v4  ;;  %v4509_v5 = vpack.c.bf16 %v4469_v42, %v4465_v51 }
0x106a   : > { %v4293_v43 = vpop.f32.mrf.mxu0  ;;  %v4406_v30 = vpop.f32.mrf.mxu1  ;;  %v4292_v60 = vadd.f32 %v4291_v59, %v8670_v6  ;;  %v4405_v50 = vadd.f32 %v4404_v19, %v8672_v26 }
0x106b   : > { %v4508_v28 = vpack.c.bf16 %v4468_v20, %v4464_v18  ;;  %v4510_v22 = vpack.c.bf16 %v4470_v61, %v4466_v33  ;;  %v4294_v62 = vadd.f32 %v4293_v43, %v8666_v35  ;;  %v4407_v46 = vadd.f32 %v4406_v30, %v8668_v12 }
0x106c   : > { %v4295_v47 = vpop.f32.mrf.mxu0  ;;  %v4408_v37 = vpop.f32.mrf.mxu1  ;;  %v4471_v36 = vmax.f32 %v4292_v60, 0.0  ;;  %v4473_v32 = vmax.f32 %v4405_v50, 0.0  ;;  %v8741_v60 = vld [vmem:[%s8859_s12] ss:$0 sm:$0xff] }
0x106d   : > { %v4296_v21 = vadd.f32 %v4295_v47, %v8670_v6  ;;  %v4409_v58 = vadd.f32 %v4408_v37, %v8672_v26  ;;  %4854 = vmatprep.mubr.bf16.mxu0 %v4508_v28  ;;  %4951 = vmatprep.mubr.bf16.mxu1 %v4510_v22  ;;  %v4472_v9 = vmax.f32 %v4294_v62, 0.0  ;;  %v4474_v2 = vmax.f32 %v4407_v46, 0.0 }
0x106e   : > { %v4297_v53 = vpop.f32.mrf.mxu0  ;;  %v4410_v54 = vpop.f32.mrf.mxu1  ;;  %4855 = vmatmul.mubr.bf16.gmra.mxu0 %v4507_v31  ;;  %4952 = vmatmul.mubr.bf16.gmra.mxu1 %v4509_v5 }
0x106f   : > { %v4298_v15 = vadd.f32 %v4297_v53, %v8666_v35  ;;  %v4411_v57 = vadd.f32 %v4410_v54, %v8668_v12  ;;  %v4475_v41 = vmax.f32 %v4296_v21, 0.0  ;;  %v4477_v16 = vmax.f32 %v4409_v58, 0.0 }
0x1070   : > { %v4301_v27 = vpop.f32.mrf.mxu0  ;;  %v4414_v55 = vpop.f32.mrf.mxu1 }
0x1071   : > { %v4476_v14 = vmax.f32 %v4298_v15, 0.0  ;;  %v4478_v29 = vmax.f32 %v4411_v57, 0.0  ;;  %v4511_v34 = vpack.c.bf16 %v4475_v41, %v4471_v36  ;;  %v4513_v39 = vpack.c.bf16 %v4477_v16, %v4473_v32 }
0x1072   : > { %v4303_v24 = vpop.f32.mrf.mxu0  ;;  %v4416_v0 = vpop.f32.mrf.mxu1  ;;  %v4302_v20 = vadd.f32 %v4301_v27, %v8670_v6  ;;  %v4415_v61 = vadd.f32 %v4414_v55, %v8672_v26 }
0x1073   : > { %v4512_v25 = vpack.c.bf16 %v4476_v14, %v4472_v9  ;;  %v4514_v38 = vpack.c.bf16 %v4478_v29, %v4474_v2  ;;  %v4304_v7 = vadd.f32 %v4303_v24, %v8666_v35  ;;  %v4417_v19 = vadd.f32 %v4416_v0, %v8668_v12 }
0x1074   : > { %v4305_v42 = vpop.f32.mrf.mxu0  ;;  %v4418_v59 = vpop.f32.mrf.mxu1  ;;  %v4479_v37 = vmax.f32 %v4302_v20, 0.0  ;;  %v4481_v46 = vmax.f32 %v4415_v61, 0.0 }
0x1075   : > { %v4306_v18 = vadd.f32 %v4305_v42, %v8670_v6  ;;  %v4419_v33 = vadd.f32 %v4418_v59, %v8672_v26  ;;  %4862 = vmatprep.mubr.bf16.mxu0 %v4512_v25  ;;  %4959 = vmatprep.mubr.bf16.mxu1 %v4514_v38  ;;  %v4480_v31 = vmax.f32 %v4304_v7, 0.0  ;;  %v4482_v5 = vmax.f32 %v4417_v19, 0.0 }
0x1076   : > { %v4307_v4 = vpop.f32.mrf.mxu0  ;;  %v4420_v51 = vpop.f32.mrf.mxu1  ;;  %4863 = vmatmul.mubr.bf16.gmra.mxu0 %v4511_v34  ;;  %4960 = vmatmul.mubr.bf16.gmra.mxu1 %v4513_v39 }
0x1077   : > { %v4308_v43 = vadd.f32 %v4307_v4, %v8666_v35  ;;  %v4421_v30 = vadd.f32 %v4420_v51, %v8668_v12  ;;  %v4483_v28 = vmax.f32 %v4306_v18, 0.0  ;;  %v4485_v22 = vmax.f32 %v4419_v33, 0.0 }
0x1079   : > { %v4484_v62 = vmax.f32 %v4308_v43, 0.0  ;;  %v4486_v47 = vmax.f32 %v4421_v30, 0.0  ;;  %v4515_v26 = vpack.c.bf16 %v4483_v28, %v4479_v37  ;;  %v4517_v58 = vpack.c.bf16 %v4485_v22, %v4481_v46 }
0x107b   : > { %v4516_v6 = vpack.c.bf16 %v4484_v62, %v4480_v31  ;;  %v4518_v21 = vpack.c.bf16 %v4486_v47, %v4482_v5 }
0x107d   : > { %4870 = vmatprep.mubr.bf16.mxu0 %v4516_v6  ;;  %4967 = vmatprep.mubr.bf16.mxu1 %v4518_v21 }
0x107e   : > { %4871 = vmatmul.mubr.bf16.gmra.mxu0 %v4515_v26  ;;  %4968 = vmatmul.mubr.bf16.gmra.mxu1 %v4517_v58 }
0x1106   : > { %v5617_v35 = vpop.f32.mrf.mxu0  ;;  %v5681_v12 = vpop.f32.mrf.mxu1 }
0x1108   : > { %v5618_v50 = vpop.f32.mrf.mxu0  ;;  %v5682_v53 = vpop.f32.mrf.mxu1 }
0x1109   : > { %v5619_v54 = vadd.f32 %v5618_v50, %v5617_v35  ;;  %v5683_v16 = vadd.f32 %v5682_v53, %v5681_v12 }
0x110a   : > { %v5620_v15 = vpop.f32.mrf.mxu0  ;;  %v5684_v57 = vpop.f32.mrf.mxu1 }
0x110b   : > { %v4817_v41 = vadd.f32 %v5619_v54, %v8741_v60 }
0x110c   : > { %v5621_v27 = vpop.f32.mrf.mxu0  ;;  %v5685_v55 = vpop.f32.mrf.mxu1 }
0x110d   : > { %v4914_v9 = vadd.f32 %v5683_v16, %v4817_v41  ;;  %v5622_v2 = vadd.f32 %v5621_v27, %v5620_v15  ;;  %v5686_v24 = vadd.f32 %v5685_v55, %v5684_v57 }
0x110e   : > { %v5623_v14 = vpop.f32.mrf.mxu0  ;;  %v5687_v29 = vpop.f32.mrf.mxu1 }
0x110f   : > { %v4976_v36 = vadd.f32 %v4914_v9, %v8414_v45  ;;  %v4820_v32 = vadd.f32 %v5622_v2, %v8741_v60 }
0x1110   : > { %v5624_v0 = vpop.f32.mrf.mxu0  ;;  %v5688_v25 = vpop.f32.mrf.mxu1 }
0x1111   : > { %4992 = vst [vmem:[%s8749_s20] sm:$0xff] %v4976_v36  ;;  %v4917_v38 = vadd.f32 %v5686_v24, %v4820_v32  ;;  %v5625_v34 = vadd.f32 %v5624_v0, %v5623_v14  ;;  %v5689_v45 = vadd.f32 %v5688_v25, %v5687_v29 }
0x1112   : > { %v5626_v39 = vpop.f32.mrf.mxu0  ;;  %v5690_v7 = vpop.f32.mrf.mxu1 }
0x1113   : > { %v4977_v42 = vadd.f32 %v4917_v38, %v8427_v44  ;;  %v4825_v59 = vadd.f32 %v5625_v34, %v8741_v60 }
0x1114   : > { %v5627_v19 = vpop.f32.mrf.mxu0  ;;  %v5691_v18 = vpop.f32.mrf.mxu1 }
0x1115   : > { %4993 = vst [vmem:[%s8749_s20 + $0x8] sm:$0xff] %v4977_v42  ;;  %v4922_v33 = vadd.f32 %v5689_v45, %v4825_v59  ;;  %v5628_v20 = vadd.f32 %v5627_v19, %v5626_v39  ;;  %v5692_v30 = vadd.f32 %v5691_v18, %v5690_v7 }
0x1116   : > { %v5629_v61 = vpop.f32.mrf.mxu0  ;;  %v5693_v4 = vpop.f32.mrf.mxu1 }
0x1117   : > { %v4978_v51 = vadd.f32 %v4922_v33, %v8424_v10  ;;  %v4828_v43 = vadd.f32 %v5628_v20, %v8741_v60 }
0x1118   : > { %v5630_v28 = vpop.f32.mrf.mxu0  ;;  %v5694_v22 = vpop.f32.mrf.mxu1 }
0x1119   : > { %4994 = vst [vmem:[%s8749_s20 + $0x10] sm:$0xff] %v4978_v51  ;;  %v4925_v44 = vadd.f32 %v5692_v30, %v4828_v43  ;;  %v5631_v31 = vadd.f32 %v5630_v28, %v5629_v61  ;;  %v5695_v46 = vadd.f32 %v5694_v22, %v5693_v4 }
0x111a   : > { %v5632_v5 = vpop.f32.mrf.mxu0  ;;  %v5696_v62 = vpop.f32.mrf.mxu1 }
0x111b   : > { %v4979_v47 = vadd.f32 %v4925_v44, %v8436_v52  ;;  %v4833_v37 = vadd.f32 %v5631_v31, %v8741_v60 }
0x111c   : > { %v5633_v6 = vpop.f32.mrf.mxu0  ;;  %v5697_v21 = vpop.f32.mrf.mxu1 }
0x111d   : > { %4995 = vst [vmem:[%s8749_s20 + $0x18] sm:$0xff] %v4979_v47  ;;  %v4930_v10 = vadd.f32 %v5695_v46, %v4833_v37  ;;  %v5634_v26 = vadd.f32 %v5633_v6, %v5632_v5  ;;  %v5698_v53 = vadd.f32 %v5697_v21, %v5696_v62 }
0x111e   : > { %v5635_v58 = vpop.f32.mrf.mxu0  ;;  %v5699_v35 = vpop.f32.mrf.mxu1 }
0x111f   : > { %v4980_v12 = vadd.f32 %v4930_v10, %v8439_v8  ;;  %v4836_v50 = vadd.f32 %v5634_v26, %v8741_v60 }
0x1120   : > { %v5636_v54 = vpop.f32.mrf.mxu0  ;;  %v5700_v15 = vpop.f32.mrf.mxu1 }
0x1121   : > { %4996 = vst [vmem:[%s8749_s20 + $0x20] sm:$0xff] %v4980_v12  ;;  %v4933_v52 = vadd.f32 %v5698_v53, %v4836_v50  ;;  %v5637_v57 = vadd.f32 %v5636_v54, %v5635_v58  ;;  %v5701_v9 = vadd.f32 %v5700_v15, %v5699_v35 }
0x1122   : > { %v5638_v41 = vpop.f32.mrf.mxu0  ;;  %v5702_v16 = vpop.f32.mrf.mxu1 }
0x1123   : > { %v4981_v27 = vadd.f32 %v4933_v52, %v8453_v63  ;;  %v4841_v55 = vadd.f32 %v5637_v57, %v8741_v60 }
0x1124   : > { %v5639_v2 = vpop.f32.mrf.mxu0  ;;  %v5703_v14 = vpop.f32.mrf.mxu1 }
0x1125   : > { %4997 = vst [vmem:[%s8749_s20 + $0x28] sm:$0xff] %v4981_v27  ;;  %v4938_v8 = vadd.f32 %v5701_v9, %v4841_v55  ;;  %v5640_v29 = vadd.f32 %v5639_v2, %v5638_v41  ;;  %v5704_v25 = vadd.f32 %v5703_v14, %v5702_v16 }
0x1126   : > { %v5641_v36 = vpop.f32.mrf.mxu0  ;;  %v5705_v32 = vpop.f32.mrf.mxu1 }
0x1127   : > { %v4982_v24 = vadd.f32 %v4938_v8, %v8447_v56  ;;  %v4844_v0 = vadd.f32 %v5640_v29, %v8741_v60 }
0x1128   : > { %v5642_v38 = vpop.f32.mrf.mxu0  ;;  %v5706_v34 = vpop.f32.mrf.mxu1 }
0x1129   : > { %4998 = vst [vmem:[%s8749_s20 + $0x30] sm:$0xff] %v4982_v24  ;;  %v4941_v63 = vadd.f32 %v5704_v25, %v4844_v0  ;;  %v5643_v39 = vadd.f32 %v5642_v38, %v5641_v36  ;;  %v5707_v19 = vadd.f32 %v5706_v34, %v5705_v32 }
0x112a   : > { %v5644_v7 = vpop.f32.mrf.mxu0  ;;  %v5708_v42 = vpop.f32.mrf.mxu1 }
0x112b   : > { %v4983_v59 = vadd.f32 %v4941_v63, %v8462_v40  ;;  %v4849_v45 = vadd.f32 %v5643_v39, %v8741_v60 }
0x112c   : > { %v5645_v18 = vpop.f32.mrf.mxu0  ;;  %v5709_v33 = vpop.f32.mrf.mxu1 }
0x112d   : > { %4999 = vst [vmem:[%s8749_s20 + $0x38] sm:$0xff] %v4983_v59  ;;  %v4946_v56 = vadd.f32 %v5707_v19, %v4849_v45  ;;  %v5646_v20 = vadd.f32 %v5645_v18, %v5644_v7  ;;  %v5710_v30 = vadd.f32 %v5709_v33, %v5708_v42 }
0x112e   : > { %v5647_v61 = vpop.f32.mrf.mxu0  ;;  %v5711_v4 = vpop.f32.mrf.mxu1 }
0x112f   : > { %v4984_v51 = vadd.f32 %v4946_v56, %v8465_v23  ;;  %v4852_v43 = vadd.f32 %v5646_v20, %v8741_v60 }
0x1130   : > { %v5648_v28 = vpop.f32.mrf.mxu0  ;;  %v5712_v22 = vpop.f32.mrf.mxu1 }
0x1131   : > { %5000 = vst [vmem:[%s8749_s20 + $0x40] sm:$0xff] %v4984_v51  ;;  %v4949_v40 = vadd.f32 %v5710_v30, %v4852_v43  ;;  %v5649_v44 = vadd.f32 %v5648_v28, %v5647_v61  ;;  %v5713_v37 = vadd.f32 %v5712_v22, %v5711_v4 }
0x1132   : > { %v5650_v31 = vpop.f32.mrf.mxu0  ;;  %v5714_v5 = vpop.f32.mrf.mxu1 }
0x1133   : > { %v4985_v62 = vadd.f32 %v4949_v40, %v8479_v17  ;;  %v4857_v47 = vadd.f32 %v5649_v44, %v8741_v60 }
0x1134   : > { %v5651_v46 = vpop.f32.mrf.mxu0  ;;  %v5715_v6 = vpop.f32.mrf.mxu1 }
0x1135   : > { %5001 = vst [vmem:[%s8749_s20 + $0x48] sm:$0xff] %v4985_v62  ;;  %v4954_v23 = vadd.f32 %v5713_v37, %v4857_v47  ;;  %v5652_v21 = vadd.f32 %v5651_v46, %v5650_v31  ;;  %v5716_v12 = vadd.f32 %v5715_v6, %v5714_v5 }
0x1136   : > { %v5653_v10 = vpop.f32.mrf.mxu0  ;;  %v5717_v26 = vpop.f32.mrf.mxu1 }
0x1137   : > { %v4986_v58 = vadd.f32 %v4954_v23, %v8476_v13  ;;  %v4860_v35 = vadd.f32 %v5652_v21, %v8741_v60 }
0x1138   : > { %v5654_v50 = vpop.f32.mrf.mxu0  ;;  %v5718_v53 = vpop.f32.mrf.mxu1 }
0x1139   : > { %5002 = vst [vmem:[%s8749_s20 + $0x50] sm:$0xff] %v4986_v58  ;;  %v4957_v17 = vadd.f32 %v5716_v12, %v4860_v35  ;;  %v5655_v54 = vadd.f32 %v5654_v50, %v5653_v10  ;;  %v5719_v16 = vadd.f32 %v5718_v53, %v5717_v26 }
0x113a   : > { %v5656_v15 = vpop.f32.mrf.mxu0  ;;  %v5720_v52 = vpop.f32.mrf.mxu1 }
0x113b   : > { %v4987_v57 = vadd.f32 %v4957_v17, %v8486_v49  ;;  %v4865_v41 = vadd.f32 %v5655_v54, %v8741_v60 }
0x113c   : > { %v5657_v27 = vpop.f32.mrf.mxu0  ;;  %v5721_v55 = vpop.f32.mrf.mxu1 }
0x113d   : > { %5003 = vst [vmem:[%s8749_s20 + $0x58] sm:$0xff] %v4987_v57  ;;  %v4962_v13 = vadd.f32 %v5719_v16, %v4865_v41  ;;  %v5658_v9 = vadd.f32 %v5657_v27, %v5656_v15  ;;  %v5722_v36 = vadd.f32 %v5721_v55, %v5720_v52 }
0x113e   : > { %v5659_v2 = vpop.f32.mrf.mxu0  ;;  %v5723_v14 = vpop.f32.mrf.mxu1 }
0x113f   : > { %v4988_v8 = vadd.f32 %v4962_v13, %v8491_v48  ;;  %v4868_v29 = vadd.f32 %v5658_v9, %v8741_v60 }
0x1140   : > { %v5660_v32 = vpop.f32.mrf.mxu0  ;;  %v5724_v24 = vpop.f32.mrf.mxu1 }
0x1141   : > { %5004 = vst [vmem:[%s8749_s20 + $0x60] sm:$0xff] %v4988_v8  ;;  %v4965_v49 = vadd.f32 %v5722_v36, %v4868_v29  ;;  %v5661_v0 = vadd.f32 %v5660_v32, %v5659_v2  ;;  %v5725_v39 = vadd.f32 %v5724_v24, %v5723_v14 }
0x1142   : > { %v5662_v25 = vpop.f32.mrf.mxu0  ;;  %v5726_v38 = vpop.f32.mrf.mxu1 }
0x1143   : > { %v4989_v34 = vadd.f32 %v4965_v49, %v8498_v11  ;;  %v4873_v63 = vadd.f32 %v5661_v0, %v8741_v60 }
0x1144   : > { %v5663_v48 = vpop.f32.mrf.mxu0  ;;  %v5727_v7 = vpop.f32.mrf.mxu1 }
0x1145   : > { %5005 = vst [vmem:[%s8749_s20 + $0x68] sm:$0xff] %v4989_v34  ;;  %v4970_v42 = vadd.f32 %v5725_v39, %v4873_v63  ;;  %v5664_v59 = vadd.f32 %v5663_v48, %v5662_v25  ;;  %v5728_v18 = vadd.f32 %v5727_v7, %v5726_v38 }
0x1147   : > { %v4990_v45 = vadd.f32 %v4970_v42, %v8501_v1  ;;  %v4876_v19 = vadd.f32 %v5664_v59, %v8741_v60 }
0x1149   : > { %5006 = vst [vmem:[%s8749_s20 + $0x70] sm:$0xff] %v4990_v45  ;;  %v4973_v11 = vadd.f32 %v5728_v18, %v4876_v19 }
0x114b   : > { %v4991_v33 = vadd.f32 %v4973_v11, %v8506_v3 }
0x114d   : > { %5007 = vst [vmem:[%s8749_s20 + $0x78] sm:$0xff] %v4991_v33 }
0x114e   : > { %6867 = shalt.err (!%p6864_p11)
}
0x114f   : > { %s6868_s19 = scalar_lea.hbm %s8799_s16, 2048  ;;  %s6872_s20 = scalar_lea.hbm %s8860_s13, 4096 }
0x1150   : > { %p6869_p0 = scmp.ne.s32.totalorder %s8799_s16, %s6868_s19  ;;  %p6873_p3 = scmp.lt.s32.totalorder %s8799_s16, %s8860_s13 }
0x1151   : > { %p6874_p2 = scmp.lt.s32.totalorder %s6872_s20, %s6868_s19 }
0x1152   : > { %p6870_p1 = pnand %p6869_p0, %p7045_p5 }
0x1153   : > { %p6875_p4 = por %p6874_p2, %p6873_p3 }
0x1154   : > { %p6871_p13 = pneg %p6870_p1 }
0x1156   : > { %p6876_p10 = pnand %p6875_p4, %p6871_p13 }
0x1158   : > { %6879 = shalt.err (!%p6876_p10)
}
0x1159   : > { %s6935_s22 = smov 128   ;;  %s6936_s29 = smov 8  }
0x115a   : > { %6237 = dma.vmem_to_hbm [thread:$0]  (%p7045_p5), %s8801_s17, 2048, %s8799_s16, %s8807_s27, %s6935_s22, %s6935_s22, %s6936_s29  }
0x115b PF: > { %s9019_s21 = sld [smem:[#allocation12_spill]]  ;;  %p6259_p12 = scmp.ge.s32.totalorder %s6922_s28, 2 }
0x115c   : > { %s9020_s25 = sld [smem:[#allocation16_spill]] }
0x1161   : > { %s5037_s14 = sand.u32 1, %s9019_s21  }
0x1162   : > { %p9021_p7 = scmp.ne.s32.totalorder %s9020_s25, 0  ;;  %s5038_s19 = scalar_lea.sflag [#allocation4], %s5037_s14 }
0x1164   : > { %p6250_p6 = pnand %p6259_p12, %p9021_p7 }
0x1166   : > { %p6251_p9 = pneg %p6250_p6 }
0x1168   : > { %6905 = dma.done.wait (%p6251_p9), %s5038_s19, 2048  }
0x1169   : > { %6907 = vsyncadd (%p6251_p9), %s5038_s19, 4294965248  ;;  %s9022_s28 = sld [smem:[#allocation14_spill]]  ;;  %s9025_s25 = smov %s6914_s26 }
0x116a   : > { %s9023_s23 = sld [smem:[#allocation13_spill]] }
0x116b   : > { %s9024_s27 = sld [smem:[#allocation15_spill]] }
0x116f   : > { %p25_p8 = scmp.ge.s32.totalorder %s9022_s28, 4  }
0x1170   : > { %s9026_s26 = smov %s9023_s23 }
0x1171   :  { %27 = sbr.rel (!%p25_p8) target bundleno = 5 (0x5), region = 126 }
0x1176   :  { %5043 = vsyncpa [#allocation3], 1 }
0x1177   :  { %5045 = vsyncpa [#allocation3 + $0x1], 1 }
0x1178   :  { %5046 = vsyncpa [#allocation6], 1 }
0x1179   :  { %5047 = vsyncpa [#allocation4], 1 }
0x117a   :  { %5049 = vsyncpa [#allocation4 + $0x1], 1 }

</bundles_post_ra>
